<compile_context>
chip_gen: v6e
topology: v6e:2x2x1
jax: 0.10.0
libtpu: 0.0.40
codegen_flags: <defaults>
</compile_context>

<pallas_src>
import numpy as np
import jax
import jax.numpy as jnp
from jax.experimental import pallas as pl
from jax.experimental.pallas import tpu as pltpu


# ----------------------------------------------------------------------------
# One-time host-side weight transforms (analogous to model loading)
# ----------------------------------------------------------------------------
def _banded_conv_weight(w_oihw, in_w):
    """(Cout,Cin,KH,KW) -> (KH, in_w*Cin, out_w*Cout) so that a VALID stride-1 conv is
       y[oh, ow*Cout+co] = sum_kh  xrow[oh+kh, :] @ W[kh]   with xrow lane = iw*Cin+ci."""
    w = np.asarray(w_oihw, dtype=np.float32)
    cout, cin, kh, kw = w.shape
    out_w = in_w - kw + 1
    W = np.zeros((kh, in_w * cin, out_w * cout), dtype=np.float32)
    for k in range(kh):
        for dkw in range(kw):
            blk = w[:, :, k, dkw].T                     # (cin, cout)
            for ow in range(out_w):
                iw = ow + dkw
                W[k, iw * cin:(iw + 1) * cin, ow * cout:(ow + 1) * cout] = blk
    return jnp.asarray(W)


def _pool_row_select(out_h):
    """0/1 matrices selecting even / odd rows: (out_h//2, out_h)."""
    ph = out_h // 2
    re = np.zeros((ph, out_h), np.float32)
    ro = np.zeros((ph, out_h), np.float32)
    re[np.arange(ph), 2 * np.arange(ph)] = 1.0
    ro[np.arange(ph), 2 * np.arange(ph) + 1] = 1.0
    return jnp.asarray(re), jnp.asarray(ro)


def _pool_col_select(out_w, c):
    """0/1 matrices selecting even / odd 'ow' channel-blocks in the lane dim:
       (out_w*c, (out_w//2)*c), lane layout ow*c + ci -> pw*c + ci."""
    pw = out_w // 2
    ce = np.zeros((out_w * c, pw * c), np.float32)
    co = np.zeros((out_w * c, pw * c), np.float32)
    for p in range(pw):
        for ci in range(c):
            ce[(2 * p) * c + ci, p * c + ci] = 1.0
            co[(2 * p + 1) * c + ci, p * c + ci] = 1.0
    return jnp.asarray(ce), jnp.asarray(co)


def prepare_kernel_params(params):
    """One-time transform of PyTorch-layout params into kernel constants."""
    # conv1: 1->24, 5x5 on 28x28 ; conv2: 24->32, 3x3 on 12x12
    w1b = _banded_conv_weight(params["conv1_w"], in_w=28)        # (5, 28, 576)
    w2b = _banded_conv_weight(params["conv2_w"], in_w=12)        # (3, 288, 320)
    b1r = jnp.tile(params["conv1_b"], 24).reshape(1, 24 * 24)    # (1, 576)  lane = ow*24+co
    b2r = jnp.tile(params["conv2_b"], 10).reshape(1, 10 * 32)    # (1, 320)  lane = ow*32+co
    re1, ro1 = _pool_row_select(24)                              # (12, 24)
    ce1, co1 = _pool_col_select(24, 24)                          # (576, 288)
    re2, ro2 = _pool_row_select(10)                              # (5, 10)
    ce2, co2 = _pool_col_select(10, 32)                          # (320, 160)
    # fc1 weights permuted to the kernel feature order (h, w*32+c); this replaces the
    # runtime NCHW flatten transpose with a one-time weight permutation.
    h_i, w_i, c_i = np.meshgrid(np.arange(5), np.arange(5), np.arange(32), indexing="ij")
    src = (c_i * 25 + h_i * 5 + w_i).reshape(5, 5 * 32)          # torch flat index c*25+h*5+w
    fc1p = jnp.asarray(np.asarray(params["fc1_w"], np.float32)[src])   # (5, 160, 256)
    return dict(
        w1b=w1b, b1r=b1r, re1=re1, ro1=ro1, ce1=ce1, co1=co1,
        w2b=w2b, b2r=b2r, re2=re2, ro2=ro2, ce2=ce2, co2=co2,
        fc1w=fc1p, fc1b=params["fc1_b"].reshape(1, -1),
        fc2w=params["fc2_w"], fc2b=params["fc2_b"].reshape(1, -1),
        fc3w=params["fc3_w"], fc3b=params["fc3_b"].reshape(1, -1),
    )


_ORDER = ("w1b", "b1r", "re1", "ro1", "ce1", "co1",
          "w2b", "b2r", "re2", "ro2", "ce2", "co2",
          "fc1w", "fc1b", "fc2w", "fc2b", "fc3w", "fc3b")


# ----------------------------------------------------------------------------
# The fused kernel: conv1 + pool + relu + conv2 + pool + relu + MLP + softmax
# (one image per grid step; everything stays in VMEM)
# ----------------------------------------------------------------------------
def _cnn_kernel(x_ref, w1b_ref, b1_ref, re1_ref, ro1_ref, ce1_ref, co1_ref,
                w2b_ref, b2_ref, re2_ref, ro2_ref, ce2_ref, co2_ref,
                fc1w_ref, fc1b_ref, fc2w_ref, fc2b_ref, fc3w_ref, fc3b_ref,
                out_ref):
    f32 = jnp.float32
    x = x_ref[...]                                               # (28, 28)

    # conv1 (5x5, 1->24) as banded matmuls -> (24, 576), lane = ow*24 + co
    y1 = jnp.dot(x[0:24, :], w1b_ref[0], preferred_element_type=f32)
    for kh in range(1, 5):
        y1 += jnp.dot(x[kh:kh + 24, :], w1b_ref[kh], preferred_element_type=f32)
    y1 += b1_ref[...]

    # 2x2 max-pool + ReLU (exact 0/1 selection matmuls) -> (12, 288), lane = w*24 + ci
    rp1 = jnp.maximum(jnp.dot(re1_ref[...], y1, preferred_element_type=f32),
                      jnp.dot(ro1_ref[...], y1, preferred_element_type=f32))
    p1 = jnp.maximum(jnp.dot(rp1, ce1_ref[...], preferred_element_type=f32),
                     jnp.dot(rp1, co1_ref[...], preferred_element_type=f32))
    p1 = jnp.maximum(p1, 0.0)

    # conv2 (3x3, 24->32) -> (10, 320), lane = ow*32 + co
    y2 = jnp.dot(p1[0:10, :], w2b_ref[0], preferred_element_type=f32)
    for kh in range(1, 3):
        y2 += jnp.dot(p1[kh:kh + 10, :], w2b_ref[kh], preferred_element_type=f32)
    y2 += b2_ref[...]

    # 2x2 max-pool + ReLU -> (5, 160), lane = w*32 + c
    rp2 = jnp.maximum(jnp.dot(re2_ref[...], y2, preferred_element_type=f32),
                      jnp.dot(ro2_ref[...], y2, preferred_element_type=f32))
    p2 = jnp.maximum(jnp.dot(rp2, ce2_ref[...], preferred_element_type=f32),
                     jnp.dot(rp2, co2_ref[...], preferred_element_type=f32))
    p2 = jnp.maximum(p2, 0.0)

    # classifier MLP (fc1 weights pre-permuted to this feature layout -> no flatten)
    h1 = jnp.dot(p2[0:1, :], fc1w_ref[0], preferred_element_type=f32)
    for h in range(1, 5):
        h1 += jnp.dot(p2[h:h + 1, :], fc1w_ref[h], preferred_element_type=f32)
    h1 = jnp.maximum(h1 + fc1b_ref[...], 0.0)                                          # (1, 256)
    h2 = jnp.maximum(jnp.dot(h1, fc2w_ref[...], preferred_element_type=f32)
                     + fc2b_ref[...], 0.0)                                             # (1, 64)
    z = jnp.dot(h2, fc3w_ref[...], preferred_element_type=f32) + fc3b_ref[...]         # (1, 10)

    # softmax over dim=1 (EUP approx reciprocal)
    z = z - jnp.max(z, axis=-1, keepdims=True)
    e = jnp.exp(z)
    out_ref[...] = e * pl.reciprocal(jnp.sum(e, axis=-1, keepdims=True), approx=True)


def _const_spec(arr):
    zeros = (0,) * arr.ndim
    return pl.BlockSpec(arr.shape, lambda b, _z=zeros: _z)   # same block every step


def cnn_forward(kparams, x_nchw):
    B = x_nchw.shape[0]
    x = x_nchw.reshape(B, 28, 28)                # single input channel
    consts = [kparams[k] for k in _ORDER]
    in_specs = [pl.BlockSpec((None, 28, 28), lambda b: (b, 0, 0))]
    in_specs += [_const_spec(a) for a in consts]
    out = pl.pallas_call(
        _cnn_kernel,
        out_shape=jax.ShapeDtypeStruct((B, 1, 10), jnp.float32),
        grid=(B,),
        in_specs=in_specs,
        out_specs=pl.BlockSpec((None, 1, 10), lambda b: (b, 0, 0)),
        compiler_params=pltpu.CompilerParams(dimension_semantics=("parallel",)),
    )(x, *consts)
    return out.reshape(B, 10)


# ----------------------------------------------------------------------------
# Raw (PyTorch-layout) params + pure-JAX reference for verification
# ----------------------------------------------------------------------------
def init_params(key):
    ks = jax.random.split(key, 10)
    return {
        "conv1_w": jax.random.normal(ks[0], (24, 1, 5, 5), jnp.float32) * 0.05,
        "conv1_b": jax.random.normal(ks[1], (24,), jnp.float32) * 0.01,
        "conv2_w": jax.random.normal(ks[2], (32, 24, 3, 3), jnp.float32) * 0.05,
        "conv2_b": jax.random.normal(ks[3], (32,), jnp.float32) * 0.01,
        "fc1_w": jax.random.normal(ks[4], (800, 256), jnp.float32) * 0.02,
        "fc1_b": jax.random.normal(ks[5], (256,), jnp.float32) * 0.01,
        "fc2_w": jax.random.normal(ks[6], (256, 64), jnp.float32) * 0.02,
        "fc2_b": jax.random.normal(ks[7], (64,), jnp.float32) * 0.01,
        "fc3_w": jax.random.normal(ks[8], (64, 10), jnp.float32) * 0.02,
        "fc3_b": jax.random.normal(ks[9], (10,), jnp.float32) * 0.01,
    }


def _ref_forward(params, x):
    def conv(x, w, b):
        y = jax.lax.conv_general_dilated(
            x, w, window_strides=(1, 1), padding="VALID",
            dimension_numbers=("NCHW", "OIHW", "NCHW"))
        return y + b[None, :, None, None]

    def pool_relu(x):
        B, C, H, W = x.shape
        y = x.reshape(B, C, H // 2, 2, W // 2, 2).max(axis=(3, 5))
        return jnp.maximum(y, 0.0)

    x = pool_relu(conv(x, params["conv1_w"], params["conv1_b"]))
    x = pool_relu(conv(x, params["conv2_w"], params["conv2_b"]))
    x = x.reshape(x.shape[0], -1)
    x = jnp.maximum(x @ params["fc1_w"] + params["fc1_b"], 0.0)
    x = jnp.maximum(x @ params["fc2_w"] + params["fc2_b"], 0.0)
    x = x @ params["fc3_w"] + params["fc3_b"]
    return jax.nn.softmax(x, axis=1)


if __name__ == "__main__":
    key = jax.random.PRNGKey(0)
    k_param, k_x = jax.random.split(key)
    params = init_params(k_param)
    kparams = prepare_kernel_params(params)      # one-time weight transforms

    # MNIST-shaped input: 28x28 single channel (so flattened features = 32*5*5 = 800,
    # matching MNISTClassifier(800, 10)).
    x = jax.random.normal(k_x, (2, 1, 28, 28), jnp.float32)

    out = jax.block_until_ready(cnn_forward(kparams, x))
    ref = jax.block_until_ready(_ref_forward(params, x))

    assert out.shape == (2, 10), out.shape
    # tolerances account for the EUP approximate reciprocal in the softmax epilogue
    assert jnp.allclose(jnp.sum(out, axis=1), 1.0, atol=5e-3)
    assert jnp.allclose(out, ref, atol=5e-3, rtol=5e-3), float(jnp.max(jnp.abs(out - ref)))

    print("KERNEL_OK")
</pallas_src>

<mosaic_0001>
module attributes {stable_mosaic.version = 11 : i64} {
  func.func @_cnn_kernel(%arg0: i32, %arg1: memref<1x28x28xf32, #tpu.memory_space<vmem>>, %arg2: memref<5x28x576xf32, #tpu.memory_space<vmem>>, %arg3: memref<1x576xf32, #tpu.memory_space<vmem>>, %arg4: memref<12x24xf32, #tpu.memory_space<vmem>>, %arg5: memref<12x24xf32, #tpu.memory_space<vmem>>, %arg6: memref<576x288xf32, #tpu.memory_space<vmem>>, %arg7: memref<576x288xf32, #tpu.memory_space<vmem>>, %arg8: memref<3x288x320xf32, #tpu.memory_space<vmem>>, %arg9: memref<1x320xf32, #tpu.memory_space<vmem>>, %arg10: memref<5x10xf32, #tpu.memory_space<vmem>>, %arg11: memref<5x10xf32, #tpu.memory_space<vmem>>, %arg12: memref<320x160xf32, #tpu.memory_space<vmem>>, %arg13: memref<320x160xf32, #tpu.memory_space<vmem>>, %arg14: memref<5x160x256xf32, #tpu.memory_space<vmem>>, %arg15: memref<1x256xf32, #tpu.memory_space<vmem>>, %arg16: memref<256x64xf32, #tpu.memory_space<vmem>>, %arg17: memref<1x64xf32, #tpu.memory_space<vmem>>, %arg18: memref<64x10xf32, #tpu.memory_space<vmem>>, %arg19: memref<1x10xf32, #tpu.memory_space<vmem>>, %arg20: memref<1x1x10xf32, #tpu.memory_space<vmem>>) attributes {dimension_semantics = [#tpu.dimension_semantics<parallel>], iteration_bounds = array<i64: 2>, scalar_prefetch = 0 : i64, scratch_operands = 0 : i64, tpu.core_type = #tpu.core_type<tc>, window_params = [{transform_indices = @transform_0, window_bounds = array<i64: 1, 28, 28>}, {pipeline_mode = #tpu.pipeline_mode<synchronous>, transform_indices = @transform_1, window_bounds = array<i64: 5, 28, 576>}, {pipeline_mode = #tpu.pipeline_mode<synchronous>, transform_indices = @transform_2, window_bounds = array<i64: 1, 576>}, {pipeline_mode = #tpu.pipeline_mode<synchronous>, transform_indices = @transform_3, window_bounds = array<i64: 12, 24>}, {pipeline_mode = #tpu.pipeline_mode<synchronous>, transform_indices = @transform_4, window_bounds = array<i64: 12, 24>}, {pipeline_mode = #tpu.pipeline_mode<synchronous>, transform_indices = @transform_5, window_bounds = array<i64: 576, 288>}, {pipeline_mode = #tpu.pipeline_mode<synchronous>, transform_indices = @transform_6, window_bounds = array<i64: 576, 288>}, {pipeline_mode = #tpu.pipeline_mode<synchronous>, transform_indices = @transform_7, window_bounds = array<i64: 3, 288, 320>}, {pipeline_mode = #tpu.pipeline_mode<synchronous>, transform_indices = @transform_8, window_bounds = array<i64: 1, 320>}, {pipeline_mode = #tpu.pipeline_mode<synchronous>, transform_indices = @transform_9, window_bounds = array<i64: 5, 10>}, {pipeline_mode = #tpu.pipeline_mode<synchronous>, transform_indices = @transform_10, window_bounds = array<i64: 5, 10>}, {pipeline_mode = #tpu.pipeline_mode<synchronous>, transform_indices = @transform_11, window_bounds = array<i64: 320, 160>}, {pipeline_mode = #tpu.pipeline_mode<synchronous>, transform_indices = @transform_12, window_bounds = array<i64: 320, 160>}, {pipeline_mode = #tpu.pipeline_mode<synchronous>, transform_indices = @transform_13, window_bounds = array<i64: 5, 160, 256>}, {pipeline_mode = #tpu.pipeline_mode<synchronous>, transform_indices = @transform_14, window_bounds = array<i64: 1, 256>}, {pipeline_mode = #tpu.pipeline_mode<synchronous>, transform_indices = @transform_15, window_bounds = array<i64: 256, 64>}, {pipeline_mode = #tpu.pipeline_mode<synchronous>, transform_indices = @transform_16, window_bounds = array<i64: 1, 64>}, {pipeline_mode = #tpu.pipeline_mode<synchronous>, transform_indices = @transform_17, window_bounds = array<i64: 64, 10>}, {pipeline_mode = #tpu.pipeline_mode<synchronous>, transform_indices = @transform_18, window_bounds = array<i64: 1, 10>}, {transform_indices = @transform_19, window_bounds = array<i64: 1, 1, 10>}]} {
    %c0 = arith.constant 0 : index
    %c0_0 = arith.constant 0 : index
    %c0_1 = arith.constant 0 : index
    %0 = vector.load %arg1[%c0, %c0_0, %c0_1] : memref<1x28x28xf32, #tpu.memory_space<vmem>>, vector<1x28x28xf32>
    %1 = vector.shape_cast %0 : vector<1x28x28xf32> to vector<28x28xf32>
    %2 = vector.extract_strided_slice %1 {offsets = [0, 0], sizes = [24, 28], strides = [1, 1]} : vector<28x28xf32> to vector<24x28xf32>
    %c0_2 = arith.constant 0 : index
    %c0_3 = arith.constant 0 : index
    %c0_4 = arith.constant 0 : index
    %3 = vector.load %arg2[%c0_2, %c0_3, %c0_4] : memref<5x28x576xf32, #tpu.memory_space<vmem>>, vector<1x28x576xf32>
    %4 = vector.shape_cast %3 : vector<1x28x576xf32> to vector<28x576xf32>
    %cst = arith.constant dense<0.000000e+00> : vector<24x576xf32>
    %5 = tpu.matmul %2, %4, %cst {dimension_numbers = #tpu.dot_dimension_numbers<[1], [0], [0], [1], [0, 0, 1, 1], [], []>} : vector<24x28xf32>, vector<28x576xf32>, vector<24x576xf32> -> vector<24x576xf32>
    %6 = vector.extract_strided_slice %1 {offsets = [1, 0], sizes = [24, 28], strides = [1, 1]} : vector<28x28xf32> to vector<24x28xf32>
    %c1 = arith.constant 1 : index
    %c0_5 = arith.constant 0 : index
    %c0_6 = arith.constant 0 : index
    %7 = vector.load %arg2[%c1, %c0_5, %c0_6] : memref<5x28x576xf32, #tpu.memory_space<vmem>>, vector<1x28x576xf32>
    %8 = vector.shape_cast %7 : vector<1x28x576xf32> to vector<28x576xf32>
    %cst_7 = arith.constant dense<0.000000e+00> : vector<24x576xf32>
    %9 = tpu.matmul %6, %8, %cst_7 {dimension_numbers = #tpu.dot_dimension_numbers<[1], [0], [0], [1], [0, 0, 1, 1], [], []>} : vector<24x28xf32>, vector<28x576xf32>, vector<24x576xf32> -> vector<24x576xf32>
    %10 = arith.addf %5, %9 : vector<24x576xf32>
    %11 = vector.extract_strided_slice %1 {offsets = [2, 0], sizes = [24, 28], strides = [1, 1]} : vector<28x28xf32> to vector<24x28xf32>
    %c2 = arith.constant 2 : index
    %c0_8 = arith.constant 0 : index
    %c0_9 = arith.constant 0 : index
    %12 = vector.load %arg2[%c2, %c0_8, %c0_9] : memref<5x28x576xf32, #tpu.memory_space<vmem>>, vector<1x28x576xf32>
    %13 = vector.shape_cast %12 : vector<1x28x576xf32> to vector<28x576xf32>
    %cst_10 = arith.constant dense<0.000000e+00> : vector<24x576xf32>
    %14 = tpu.matmul %11, %13, %cst_10 {dimension_numbers = #tpu.dot_dimension_numbers<[1], [0], [0], [1], [0, 0, 1, 1], [], []>} : vector<24x28xf32>, vector<28x576xf32>, vector<24x576xf32> -> vector<24x576xf32>
    %15 = arith.addf %10, %14 : vector<24x576xf32>
    %16 = vector.extract_strided_slice %1 {offsets = [3, 0], sizes = [24, 28], strides = [1, 1]} : vector<28x28xf32> to vector<24x28xf32>
    %c3 = arith.constant 3 : index
    %c0_11 = arith.constant 0 : index
    %c0_12 = arith.constant 0 : index
    %17 = vector.load %arg2[%c3, %c0_11, %c0_12] : memref<5x28x576xf32, #tpu.memory_space<vmem>>, vector<1x28x576xf32>
    %18 = vector.shape_cast %17 : vector<1x28x576xf32> to vector<28x576xf32>
    %cst_13 = arith.constant dense<0.000000e+00> : vector<24x576xf32>
    %19 = tpu.matmul %16, %18, %cst_13 {dimension_numbers = #tpu.dot_dimension_numbers<[1], [0], [0], [1], [0, 0, 1, 1], [], []>} : vector<24x28xf32>, vector<28x576xf32>, vector<24x576xf32> -> vector<24x576xf32>
    %20 = arith.addf %15, %19 : vector<24x576xf32>
    %21 = vector.extract_strided_slice %1 {offsets = [4, 0], sizes = [24, 28], strides = [1, 1]} : vector<28x28xf32> to vector<24x28xf32>
    %c4 = arith.constant 4 : index
    %c0_14 = arith.constant 0 : index
    %c0_15 = arith.constant 0 : index
    %22 = vector.load %arg2[%c4, %c0_14, %c0_15] : memref<5x28x576xf32, #tpu.memory_space<vmem>>, vector<1x28x576xf32>
    %23 = vector.shape_cast %22 : vector<1x28x576xf32> to vector<28x576xf32>
    %cst_16 = arith.constant dense<0.000000e+00> : vector<24x576xf32>
    %24 = tpu.matmul %21, %23, %cst_16 {dimension_numbers = #tpu.dot_dimension_numbers<[1], [0], [0], [1], [0, 0, 1, 1], [], []>} : vector<24x28xf32>, vector<28x576xf32>, vector<24x576xf32> -> vector<24x576xf32>
    %25 = arith.addf %20, %24 : vector<24x576xf32>
    %c0_17 = arith.constant 0 : index
    %c0_18 = arith.constant 0 : index
    %26 = vector.load %arg3[%c0_17, %c0_18] : memref<1x576xf32, #tpu.memory_space<vmem>>, vector<1x576xf32>
    %27 = vector.broadcast %26 : vector<1x576xf32> to vector<24x576xf32>
    %28 = arith.addf %25, %27 : vector<24x576xf32>
    %c0_19 = arith.constant 0 : index
    %c0_20 = arith.constant 0 : index
    %29 = vector.load %arg4[%c0_19, %c0_20] : memref<12x24xf32, #tpu.memory_space<vmem>>, vector<12x24xf32>
    %cst_21 = arith.constant dense<0.000000e+00> : vector<12x576xf32>
    %30 = tpu.matmul %29, %28, %cst_21 {dimension_numbers = #tpu.dot_dimension_numbers<[1], [0], [0], [1], [0, 0, 1, 1], [], []>} : vector<12x24xf32>, vector<24x576xf32>, vector<12x576xf32> -> vector<12x576xf32>
    %c0_22 = arith.constant 0 : index
    %c0_23 = arith.constant 0 : index
    %31 = vector.load %arg5[%c0_22, %c0_23] : memref<12x24xf32, #tpu.memory_space<vmem>>, vector<12x24xf32>
    %cst_24 = arith.constant dense<0.000000e+00> : vector<12x576xf32>
    %32 = tpu.matmul %31, %28, %cst_24 {dimension_numbers = #tpu.dot_dimension_numbers<[1], [0], [0], [1], [0, 0, 1, 1], [], []>} : vector<12x24xf32>, vector<24x576xf32>, vector<12x576xf32> -> vector<12x576xf32>
    %33 = arith.maximumf %30, %32 : vector<12x576xf32>
    %c0_25 = arith.constant 0 : index
    %c0_26 = arith.constant 0 : index
    %34 = vector.load %arg6[%c0_25, %c0_26] : memref<576x288xf32, #tpu.memory_space<vmem>>, vector<576x288xf32>
    %cst_27 = arith.constant dense<0.000000e+00> : vector<12x288xf32>
    %35 = tpu.matmul %33, %34, %cst_27 {dimension_numbers = #tpu.dot_dimension_numbers<[1], [0], [0], [1], [0, 0, 1, 1], [], []>} : vector<12x576xf32>, vector<576x288xf32>, vector<12x288xf32> -> vector<12x288xf32>
    %c0_28 = arith.constant 0 : index
    %c0_29 = arith.constant 0 : index
    %36 = vector.load %arg7[%c0_28, %c0_29] : memref<576x288xf32, #tpu.memory_space<vmem>>, vector<576x288xf32>
    %cst_30 = arith.constant dense<0.000000e+00> : vector<12x288xf32>
    %37 = tpu.matmul %33, %36, %cst_30 {dimension_numbers = #tpu.dot_dimension_numbers<[1], [0], [0], [1], [0, 0, 1, 1], [], []>} : vector<12x576xf32>, vector<576x288xf32>, vector<12x288xf32> -> vector<12x288xf32>
    %38 = arith.maximumf %35, %37 : vector<12x288xf32>
    %cst_31 = arith.constant 0.000000e+00 : f32
    %39 = vector.broadcast %cst_31 : f32 to vector<12x288xf32>
    %40 = arith.maximumf %38, %39 : vector<12x288xf32>
    %41 = vector.extract_strided_slice %40 {offsets = [0, 0], sizes = [10, 288], strides = [1, 1]} : vector<12x288xf32> to vector<10x288xf32>
    %c0_32 = arith.constant 0 : index
    %c0_33 = arith.constant 0 : index
    %c0_34 = arith.constant 0 : index
    %42 = vector.load %arg8[%c0_32, %c0_33, %c0_34] : memref<3x288x320xf32, #tpu.memory_space<vmem>>, vector<1x288x320xf32>
    %43 = vector.shape_cast %42 : vector<1x288x320xf32> to vector<288x320xf32>
    %cst_35 = arith.constant dense<0.000000e+00> : vector<10x320xf32>
    %44 = tpu.matmul %41, %43, %cst_35 {dimension_numbers = #tpu.dot_dimension_numbers<[1], [0], [0], [1], [0, 0, 1, 1], [], []>} : vector<10x288xf32>, vector<288x320xf32>, vector<10x320xf32> -> vector<10x320xf32>
    %45 = vector.extract_strided_slice %40 {offsets = [1, 0], sizes = [10, 288], strides = [1, 1]} : vector<12x288xf32> to vector<10x288xf32>
    %c1_36 = arith.constant 1 : index
    %c0_37 = arith.constant 0 : index
    %c0_38 = arith.constant 0 : index
    %46 = vector.load %arg8[%c1_36, %c0_37, %c0_38] : memref<3x288x320xf32, #tpu.memory_space<vmem>>, vector<1x288x320xf32>
    %47 = vector.shape_cast %46 : vector<1x288x320xf32> to vector<288x320xf32>
    %cst_39 = arith.constant dense<0.000000e+00> : vector<10x320xf32>
    %48 = tpu.matmul %45, %47, %cst_39 {dimension_numbers = #tpu.dot_dimension_numbers<[1], [0], [0], [1], [0, 0, 1, 1], [], []>} : vector<10x288xf32>, vector<288x320xf32>, vector<10x320xf32> -> vector<10x320xf32>
    %49 = arith.addf %44, %48 : vector<10x320xf32>
    %50 = vector.extract_strided_slice %40 {offsets = [2, 0], sizes = [10, 288], strides = [1, 1]} : vector<12x288xf32> to vector<10x288xf32>
    %c2_40 = arith.constant 2 : index
    %c0_41 = arith.constant 0 : index
    %c0_42 = arith.constant 0 : index
    %51 = vector.load %arg8[%c2_40, %c0_41, %c0_42] : memref<3x288x320xf32, #tpu.memory_space<vmem>>, vector<1x288x320xf32>
    %52 = vector.shape_cast %51 : vector<1x288x320xf32> to vector<288x320xf32>
    %cst_43 = arith.constant dense<0.000000e+00> : vector<10x320xf32>
    %53 = tpu.matmul %50, %52, %cst_43 {dimension_numbers = #tpu.dot_dimension_numbers<[1], [0], [0], [1], [0, 0, 1, 1], [], []>} : vector<10x288xf32>, vector<288x320xf32>, vector<10x320xf32> -> vector<10x320xf32>
    %54 = arith.addf %49, %53 : vector<10x320xf32>
    %c0_44 = arith.constant 0 : index
    %c0_45 = arith.constant 0 : index
    %55 = vector.load %arg9[%c0_44, %c0_45] : memref<1x320xf32, #tpu.memory_space<vmem>>, vector<1x320xf32>
    %56 = vector.broadcast %55 : vector<1x320xf32> to vector<10x320xf32>
    %57 = arith.addf %54, %56 : vector<10x320xf32>
    %c0_46 = arith.constant 0 : index
    %c0_47 = arith.constant 0 : index
    %58 = vector.load %arg10[%c0_46, %c0_47] : memref<5x10xf32, #tpu.memory_space<vmem>>, vector<5x10xf32>
    %cst_48 = arith.constant dense<0.000000e+00> : vector<5x320xf32>
    %59 = tpu.matmul %58, %57, %cst_48 {dimension_numbers = #tpu.dot_dimension_numbers<[1], [0], [0], [1], [0, 0, 1, 1], [], []>} : vector<5x10xf32>, vector<10x320xf32>, vector<5x320xf32> -> vector<5x320xf32>
    %c0_49 = arith.constant 0 : index
    %c0_50 = arith.constant 0 : index
    %60 = vector.load %arg11[%c0_49, %c0_50] : memref<5x10xf32, #tpu.memory_space<vmem>>, vector<5x10xf32>
    %cst_51 = arith.constant dense<0.000000e+00> : vector<5x320xf32>
    %61 = tpu.matmul %60, %57, %cst_51 {dimension_numbers = #tpu.dot_dimension_numbers<[1], [0], [0], [1], [0, 0, 1, 1], [], []>} : vector<5x10xf32>, vector<10x320xf32>, vector<5x320xf32> -> vector<5x320xf32>
    %62 = arith.maximumf %59, %61 : vector<5x320xf32>
    %c0_52 = arith.constant 0 : index
    %c0_53 = arith.constant 0 : index
    %63 = vector.load %arg12[%c0_52, %c0_53] : memref<320x160xf32, #tpu.memory_space<vmem>>, vector<320x160xf32>
    %cst_54 = arith.constant dense<0.000000e+00> : vector<5x160xf32>
    %64 = tpu.matmul %62, %63, %cst_54 {dimension_numbers = #tpu.dot_dimension_numbers<[1], [0], [0], [1], [0, 0, 1, 1], [], []>} : vector<5x320xf32>, vector<320x160xf32>, vector<5x160xf32> -> vector<5x160xf32>
    %c0_55 = arith.constant 0 : index
    %c0_56 = arith.constant 0 : index
    %65 = vector.load %arg13[%c0_55, %c0_56] : memref<320x160xf32, #tpu.memory_space<vmem>>, vector<320x160xf32>
    %cst_57 = arith.constant dense<0.000000e+00> : vector<5x160xf32>
    %66 = tpu.matmul %62, %65, %cst_57 {dimension_numbers = #tpu.dot_dimension_numbers<[1], [0], [0], [1], [0, 0, 1, 1], [], []>} : vector<5x320xf32>, vector<320x160xf32>, vector<5x160xf32> -> vector<5x160xf32>
    %67 = arith.maximumf %64, %66 : vector<5x160xf32>
    %cst_58 = arith.constant 0.000000e+00 : f32
    %68 = vector.broadcast %cst_58 : f32 to vector<5x160xf32>
    %69 = arith.maximumf %67, %68 : vector<5x160xf32>
    %70 = vector.extract_strided_slice %69 {offsets = [0, 0], sizes = [1, 160], strides = [1, 1]} : vector<5x160xf32> to vector<1x160xf32>
    %c0_59 = arith.constant 0 : index
    %c0_60 = arith.constant 0 : index
    %c0_61 = arith.constant 0 : index
    %71 = vector.load %arg14[%c0_59, %c0_60, %c0_61] : memref<5x160x256xf32, #tpu.memory_space<vmem>>, vector<1x160x256xf32>
    %72 = vector.shape_cast %71 : vector<1x160x256xf32> to vector<160x256xf32>
    %cst_62 = arith.constant dense<0.000000e+00> : vector<1x256xf32>
    %73 = tpu.matmul %70, %72, %cst_62 {dimension_numbers = #tpu.dot_dimension_numbers<[1], [0], [0], [1], [0, 0, 1, 1], [], []>} : vector<1x160xf32>, vector<160x256xf32>, vector<1x256xf32> -> vector<1x256xf32>
    %74 = vector.extract_strided_slice %69 {offsets = [1, 0], sizes = [1, 160], strides = [1, 1]} : vector<5x160xf32> to vector<1x160xf32>
    %c1_63 = arith.constant 1 : index
    %c0_64 = arith.constant 0 : index
    %c0_65 = arith.constant 0 : index
    %75 = vector.load %arg14[%c1_63, %c0_64, %c0_65] : memref<5x160x256xf32, #tpu.memory_space<vmem>>, vector<1x160x256xf32>
    %76 = vector.shape_cast %75 : vector<1x160x256xf32> to vector<160x256xf32>
    %cst_66 = arith.constant dense<0.000000e+00> : vector<1x256xf32>
    %77 = tpu.matmul %74, %76, %cst_66 {dimension_numbers = #tpu.dot_dimension_numbers<[1], [0], [0], [1], [0, 0, 1, 1], [], []>} : vector<1x160xf32>, vector<160x256xf32>, vector<1x256xf32> -> vector<1x256xf32>
    %78 = arith.addf %73, %77 : vector<1x256xf32>
    %79 = vector.extract_strided_slice %69 {offsets = [2, 0], sizes = [1, 160], strides = [1, 1]} : vector<5x160xf32> to vector<1x160xf32>
    %c2_67 = arith.constant 2 : index
    %c0_68 = arith.constant 0 : index
    %c0_69 = arith.constant 0 : index
    %80 = vector.load %arg14[%c2_67, %c0_68, %c0_69] : memref<5x160x256xf32, #tpu.memory_space<vmem>>, vector<1x160x256xf32>
    %81 = vector.shape_cast %80 : vector<1x160x256xf32> to vector<160x256xf32>
    %cst_70 = arith.constant dense<0.000000e+00> : vector<1x256xf32>
    %82 = tpu.matmul %79, %81, %cst_70 {dimension_numbers = #tpu.dot_dimension_numbers<[1], [0], [0], [1], [0, 0, 1, 1], [], []>} : vector<1x160xf32>, vector<160x256xf32>, vector<1x256xf32> -> vector<1x256xf32>
    %83 = arith.addf %78, %82 : vector<1x256xf32>
    %84 = vector.extract_strided_slice %69 {offsets = [3, 0], sizes = [1, 160], strides = [1, 1]} : vector<5x160xf32> to vector<1x160xf32>
    %c3_71 = arith.constant 3 : index
    %c0_72 = arith.constant 0 : index
    %c0_73 = arith.constant 0 : index
    %85 = vector.load %arg14[%c3_71, %c0_72, %c0_73] : memref<5x160x256xf32, #tpu.memory_space<vmem>>, vector<1x160x256xf32>
    %86 = vector.shape_cast %85 : vector<1x160x256xf32> to vector<160x256xf32>
    %cst_74 = arith.constant dense<0.000000e+00> : vector<1x256xf32>
    %87 = tpu.matmul %84, %86, %cst_74 {dimension_numbers = #tpu.dot_dimension_numbers<[1], [0], [0], [1], [0, 0, 1, 1], [], []>} : vector<1x160xf32>, vector<160x256xf32>, vector<1x256xf32> -> vector<1x256xf32>
    %88 = arith.addf %83, %87 : vector<1x256xf32>
    %89 = vector.extract_strided_slice %69 {offsets = [4, 0], sizes = [1, 160], strides = [1, 1]} : vector<5x160xf32> to vector<1x160xf32>
    %c4_75 = arith.constant 4 : index
    %c0_76 = arith.constant 0 : index
    %c0_77 = arith.constant 0 : index
    %90 = vector.load %arg14[%c4_75, %c0_76, %c0_77] : memref<5x160x256xf32, #tpu.memory_space<vmem>>, vector<1x160x256xf32>
    %91 = vector.shape_cast %90 : vector<1x160x256xf32> to vector<160x256xf32>
    %cst_78 = arith.constant dense<0.000000e+00> : vector<1x256xf32>
    %92 = tpu.matmul %89, %91, %cst_78 {dimension_numbers = #tpu.dot_dimension_numbers<[1], [0], [0], [1], [0, 0, 1, 1], [], []>} : vector<1x160xf32>, vector<160x256xf32>, vector<1x256xf32> -> vector<1x256xf32>
    %93 = arith.addf %88, %92 : vector<1x256xf32>
    %c0_79 = arith.constant 0 : index
    %c0_80 = arith.constant 0 : index
    %94 = vector.load %arg15[%c0_79, %c0_80] : memref<1x256xf32, #tpu.memory_space<vmem>>, vector<1x256xf32>
    %95 = arith.addf %93, %94 : vector<1x256xf32>
    %cst_81 = arith.constant 0.000000e+00 : f32
    %96 = vector.broadcast %cst_81 : f32 to vector<1x256xf32>
    %97 = arith.maximumf %95, %96 : vector<1x256xf32>
    %c0_82 = arith.constant 0 : index
    %c0_83 = arith.constant 0 : index
    %98 = vector.load %arg16[%c0_82, %c0_83] : memref<256x64xf32, #tpu.memory_space<vmem>>, vector<256x64xf32>
    %cst_84 = arith.constant dense<0.000000e+00> : vector<1x64xf32>
    %99 = tpu.matmul %97, %98, %cst_84 {dimension_numbers = #tpu.dot_dimension_numbers<[1], [0], [0], [1], [0, 0, 1, 1], [], []>} : vector<1x256xf32>, vector<256x64xf32>, vector<1x64xf32> -> vector<1x64xf32>
    %c0_85 = arith.constant 0 : index
    %c0_86 = arith.constant 0 : index
    %100 = vector.load %arg17[%c0_85, %c0_86] : memref<1x64xf32, #tpu.memory_space<vmem>>, vector<1x64xf32>
    %101 = arith.addf %99, %100 : vector<1x64xf32>
    %cst_87 = arith.constant 0.000000e+00 : f32
    %102 = vector.broadcast %cst_87 : f32 to vector<1x64xf32>
    %103 = arith.maximumf %101, %102 : vector<1x64xf32>
    %c0_88 = arith.constant 0 : index
    %c0_89 = arith.constant 0 : index
    %104 = vector.load %arg18[%c0_88, %c0_89] : memref<64x10xf32, #tpu.memory_space<vmem>>, vector<64x10xf32>
    %cst_90 = arith.constant dense<0.000000e+00> : vector<1x10xf32>
    %105 = tpu.matmul %103, %104, %cst_90 {dimension_numbers = #tpu.dot_dimension_numbers<[1], [0], [0], [1], [0, 0, 1, 1], [], []>} : vector<1x64xf32>, vector<64x10xf32>, vector<1x10xf32> -> vector<1x10xf32>
    %c0_91 = arith.constant 0 : index
    %c0_92 = arith.constant 0 : index
    %106 = vector.load %arg19[%c0_91, %c0_92] : memref<1x10xf32, #tpu.memory_space<vmem>>, vector<1x10xf32>
    %107 = arith.addf %105, %106 : vector<1x10xf32>
    %cst_93 = arith.constant dense<0xFF800000> : vector<1xf32>
    %108 = vector.multi_reduction <maximumf>, %107, %cst_93 [1] : vector<1x10xf32> to vector<1xf32>
    %109 = vector.shape_cast %108 : vector<1xf32> to vector<1x1xf32>
    %110 = vector.broadcast %109 : vector<1x1xf32> to vector<1x10xf32>
    %111 = arith.subf %107, %110 : vector<1x10xf32>
    %112 = math.exp %111 : vector<1x10xf32>
    %cst_94 = arith.constant dense<0.000000e+00> : vector<1xf32>
    %113 = vector.multi_reduction <add>, %112, %cst_94 [1] : vector<1x10xf32> to vector<1xf32>
    %114 = vector.shape_cast %113 : vector<1xf32> to vector<1x1xf32>
    %115 = tpu.reciprocal %114 {approx = true} : vector<1x1xf32> -> vector<1x1xf32>
    %116 = vector.broadcast %115 : vector<1x1xf32> to vector<1x10xf32>
    %117 = arith.mulf %112, %116 : vector<1x10xf32>
    %c0_95 = arith.constant 0 : index
    %c0_96 = arith.constant 0 : index
    %c0_97 = arith.constant 0 : index
    %118 = vector.load %arg20[%c0_95, %c0_96, %c0_97] : memref<1x1x10xf32, #tpu.memory_space<vmem>>, vector<1x1x10xf32>
    %119 = vector.shape_cast %118 : vector<1x1x10xf32> to vector<1x10xf32>
    %120 = vector.shape_cast %117 : vector<1x10xf32> to vector<1x1x10xf32>
    tpu.vector_store %arg20[%c0_95, %c0_96, %c0_97], %120 {strides = array<i32>} : memref<1x1x10xf32, #tpu.memory_space<vmem>>, vector<1x1x10xf32>,
    return
  }
  func.func @transform_0(%arg0: i32) -> (i32, i32, i32) {
    %c0_i32 = arith.constant 0 : i32
    %c0_i32_0 = arith.constant 0 : i32
    %c0_i32_1 = arith.constant 0 : i32
    return %arg0, %c0_i32, %c0_i32_0 : i32, i32, i32
  }
  func.func @transform_1(%arg0: i32) -> (i32, i32, i32) {
    %c0_i32 = arith.constant 0 : i32
    %c0_i32_0 = arith.constant 0 : i32
    %c0_i32_1 = arith.constant 0 : i32
    %c0_i32_2 = arith.constant 0 : i32
    return %c0_i32, %c0_i32_0, %c0_i32_1 : i32, i32, i32
  }
  func.func @transform_2(%arg0: i32) -> (i32, i32) {
    %c0_i32 = arith.constant 0 : i32
    %c0_i32_0 = arith.constant 0 : i32
    %c0_i32_1 = arith.constant 0 : i32
    return %c0_i32, %c0_i32_0 : i32, i32
  }
  func.func @transform_3(%arg0: i32) -> (i32, i32) {
    %c0_i32 = arith.constant 0 : i32
    %c0_i32_0 = arith.constant 0 : i32
    %c0_i32_1 = arith.constant 0 : i32
    return %c0_i32, %c0_i32_0 : i32, i32
  }
  func.func @transform_4(%arg0: i32) -> (i32, i32) {
    %c0_i32 = arith.constant 0 : i32
    %c0_i32_0 = arith.constant 0 : i32
    %c0_i32_1 = arith.constant 0 : i32
    return %c0_i32, %c0_i32_0 : i32, i32
  }
  func.func @transform_5(%arg0: i32) -> (i32, i32) {
    %c0_i32 = arith.constant 0 : i32
    %c0_i32_0 = arith.constant 0 : i32
    %c0_i32_1 = arith.constant 0 : i32
    return %c0_i32, %c0_i32_0 : i32, i32
  }
  func.func @transform_6(%arg0: i32) -> (i32, i32) {
    %c0_i32 = arith.constant 0 : i32
    %c0_i32_0 = arith.constant 0 : i32
    %c0_i32_1 = arith.constant 0 : i32
    return %c0_i32, %c0_i32_0 : i32, i32
  }
  func.func @transform_7(%arg0: i32) -> (i32, i32, i32) {
    %c0_i32 = arith.constant 0 : i32
    %c0_i32_0 = arith.constant 0 : i32
    %c0_i32_1 = arith.constant 0 : i32
    %c0_i32_2 = arith.constant 0 : i32
    return %c0_i32, %c0_i32_0, %c0_i32_1 : i32, i32, i32
  }
  func.func @transform_8(%arg0: i32) -> (i32, i32) {
    %c0_i32 = arith.constant 0 : i32
    %c0_i32_0 = arith.constant 0 : i32
    %c0_i32_1 = arith.constant 0 : i32
    return %c0_i32, %c0_i32_0 : i32, i32
  }
  func.func @transform_9(%arg0: i32) -> (i32, i32) {
    %c0_i32 = arith.constant 0 : i32
    %c0_i32_0 = arith.constant 0 : i32
    %c0_i32_1 = arith.constant 0 : i32
    return %c0_i32, %c0_i32_0 : i32, i32
  }
  func.func @transform_10(%arg0: i32) -> (i32, i32) {
    %c0_i32 = arith.constant 0 : i32
    %c0_i32_0 = arith.constant 0 : i32
    %c0_i32_1 = arith.constant 0 : i32
    return %c0_i32, %c0_i32_0 : i32, i32
  }
  func.func @transform_11(%arg0: i32) -> (i32, i32) {
    %c0_i32 = arith.constant 0 : i32
    %c0_i32_0 = arith.constant 0 : i32
    %c0_i32_1 = arith.constant 0 : i32
    return %c0_i32, %c0_i32_0 : i32, i32
  }
  func.func @transform_12(%arg0: i32) -> (i32, i32) {
    %c0_i32 = arith.constant 0 : i32
    %c0_i32_0 = arith.constant 0 : i32
    %c0_i32_1 = arith.constant 0 : i32
    return %c0_i32, %c0_i32_0 : i32, i32
  }
  func.func @transform_13(%arg0: i32) -> (i32, i32, i32) {
    %c0_i32 = arith.constant 0 : i32
    %c0_i32_0 = arith.constant 0 : i32
    %c0_i32_1 = arith.constant 0 : i32
    %c0_i32_2 = arith.constant 0 : i32
    return %c0_i32, %c0_i32_0, %c0_i32_1 : i32, i32, i32
  }
  func.func @transform_14(%arg0: i32) -> (i32, i32) {
    %c0_i32 = arith.constant 0 : i32
    %c0_i32_0 = arith.constant 0 : i32
    %c0_i32_1 = arith.constant 0 : i32
    return %c0_i32, %c0_i32_0 : i32, i32
  }
  func.func @transform_15(%arg0: i32) -> (i32, i32) {
    %c0_i32 = arith.constant 0 : i32
    %c0_i32_0 = arith.constant 0 : i32
    %c0_i32_1 = arith.constant 0 : i32
    return %c0_i32, %c0_i32_0 : i32, i32
  }
  func.func @transform_16(%arg0: i32) -> (i32, i32) {
    %c0_i32 = arith.constant 0 : i32
    %c0_i32_0 = arith.constant 0 : i32
    %c0_i32_1 = arith.constant 0 : i32
    return %c0_i32, %c0_i32_0 : i32, i32
  }
  func.func @transform_17(%arg0: i32) -> (i32, i32) {
    %c0_i32 = arith.constant 0 : i32
    %c0_i32_0 = arith.constant 0 : i32
    %c0_i32_1 = arith.constant 0 : i32
    return %c0_i32, %c0_i32_0 : i32, i32
  }
  func.func @transform_18(%arg0: i32) -> (i32, i32) {
    %c0_i32 = arith.constant 0 : i32
    %c0_i32_0 = arith.constant 0 : i32
    %c0_i32_1 = arith.constant 0 : i32
    return %c0_i32, %c0_i32_0 : i32, i32
  }
  func.func @transform_19(%arg0: i32) -> (i32, i32, i32) {
    %c0_i32 = arith.constant 0 : i32
    %c0_i32_0 = arith.constant 0 : i32
    %c0_i32_1 = arith.constant 0 : i32
    return %arg0, %c0_i32, %c0_i32_0 : i32, i32, i32
  }
}

</mosaic_0001>

<bundles_post_ra>
// kernel: tpu_custom_call.1
= control target key start
LH: loop header
LB: loop body
LE: loop exit
PB: predicated region body
PF: predicated region fallthrough
CT: control target
= control target key end

     0   :  { %s12964_s0 = inlined_call_operand.vmem [shape: f32[2,28,28], index: 0, kind: input, shape index: {}]   ;;  %s12965_s1 = inlined_call_operand.vmem [shape: f32[5,28,576], index: 1, kind: input, shape index: {}]   ;;  %s12966_s2 = inlined_call_operand.vmem [shape: f32[1,576], index: 2, kind: input, shape index: {}]   ;;  %s12967_s3 = inlined_call_operand.vmem [shape: f32[12,24], index: 3, kind: input, shape index: {}]   ;;  %s12968_s4 = inlined_call_operand.vmem [shape: f32[12,24], index: 4, kind: input, shape index: {}]   ;;  %s12969_s5 = inlined_call_operand.vmem [shape: f32[576,288], index: 5, kind: input, shape index: {}]   ;;  %s12970_s6 = inlined_call_operand.vmem [shape: f32[576,288], index: 6, kind: input, shape index: {}]   ;;  %s12971_s7 = inlined_call_operand.vmem [shape: f32[3,288,320], index: 7, kind: input, shape index: {}]   ;;  %s12972_s8 = inlined_call_operand.vmem [shape: f32[1,320], index: 8, kind: input, shape index: {}]   ;;  %s12973_s9 = inlined_call_operand.vmem [shape: f32[5,10], index: 9, kind: input, shape index: {}]   ;;  %s12974_s10 = inlined_call_operand.vmem [shape: f32[5,10], index: 10, kind: input, shape index: {}]   ;;  %s12975_s11 = inlined_call_operand.vmem [shape: f32[320,160], index: 11, kind: input, shape index: {}]   ;;  %s12976_s12 = inlined_call_operand.vmem [shape: f32[320,160], index: 12, kind: input, shape index: {}]   ;;  %s12977_s13 = inlined_call_operand.vmem [shape: f32[5,160,256], index: 13, kind: input, shape index: {}]   ;;  %s12978_s14 = inlined_call_operand.vmem [shape: f32[1,256], index: 14, kind: input, shape index: {}]   ;;  %s12979_s15 = inlined_call_operand.vmem [shape: f32[256,64], index: 15, kind: input, shape index: {}]   ;;  %s12980_s16 = inlined_call_operand.vmem [shape: f32[1,64], index: 16, kind: input, shape index: {}]   ;;  %s12981_s17 = inlined_call_operand.vmem [shape: f32[64,10], index: 17, kind: input, shape index: {}]   ;;  %s12982_s18 = inlined_call_operand.vmem [shape: f32[1,10], index: 18, kind: input, shape index: {}]   ;;  %s12983_s19 = inlined_call_operand.hbm [shape: f32[2,1,10], index: 19, kind: output, shape index: {}]  }
   0x1   :  { %13003 = sst [smem:[#allocation22_spill]] %s12964_s0 }
   0x2   :  { %13004 = sst [smem:[#allocation23_spill]] %s12965_s1 }
   0x3   :  { %13005 = sst [smem:[#allocation24_spill]] %s12966_s2 }
   0x4   :  { %13006 = sst [smem:[#allocation25_spill]] %s12967_s3 }
   0x5   :  { %13007 = sst [smem:[#allocation26_spill]] %s12968_s4 }
   0x6   :  { %13008 = sst [smem:[#allocation27_spill]] %s12969_s5 }
   0x7   :  { %13009 = sst [smem:[#allocation28_spill]] %s12983_s19 }
   0x8   :  { %24 = vsyncpa [#allocation3], 0 }
   0x9   :  { %26 = vsyncpa [#allocation3 + $0x1], 0  ;;  %s8356_s0 = smov 0   ;;  %s8358_s30 = smov 0  }
   0xa   :  { %s8360_s20 = smov 0   ;;  %s8362_s21 = smov 0  }
   0xb LB: > { %13010 = sst [smem:[#allocation5_spill]] %s8239_s0  ;;  %s8377_s1 = sadd.s32 4294967295, %s8251_s21   ;;  %s8251_s21 = sphi %s8362_s21, %s13052_s21   ;;  %s8247_s20 = sphi %s8360_s20, %s13054_s20   ;;  %s8243_s30 = sphi %s8358_s30, %s13056_s30   ;;  %s8239_s0 = sphi %s8356_s0, %s13055_s0  }
   0xc   : > { %13011 = sst [smem:[#allocation6_spill]] %s8247_s20  ;;  %s6954_s22 = sadd.s32 4294967294, %s8251_s21  }
   0xd   : > { %13012 = sst [smem:[#allocation7_spill]] %s8251_s21  ;;  %s8381_s2 = sadd.s32 1, %s8251_s21  }
   0xe   : > { %13013 = sst [smem:[#allocation8_spill]] %s8381_s2  ;;  %s443_s23 = sadd.s32 1, %s8247_s20 }
   0xf   : > { %s440_s24 = ssub.s32 %s8251_s21, %s8381_s2  ;;  %p453_p0 = scmp.ne.s32.totalorder %s8247_s20, %s8243_s30 }
  0x10   : > { %p441_p1 = scmp.eq.s32.totalorder %s440_s24, 0  ;;  %p454_p2 = scmp.eq.s32.totalorder %s8377_s1, 1 }
  0x11   : > { %p459_p3 = scmp.ne.s32.totalorder %s8243_s30, %s8239_s0  ;;  %p460_p4 = scmp.eq.s32.totalorder %s6954_s22, 1 }
  0x12   : > { %s8392_s25 = scalar_select %p441_p1, %s8247_s20, %s443_s23  }
  0x13   : > { %p8394_p5 = por %p454_p2, %p453_p0  ;;  %p8398_p6 = por %p460_p4, %p459_p3 }
  0x14   : > { %13014 = sst [smem:[#allocation9_spill]] %s8392_s25  ;;  %p6957_p7 = scmp.ge.s32.totalorder %s8251_s21, 1 }
  0x15   : > { %s13016_s26 = scalar_select %p8398_p6, 1, 0 }
  0x16   : > { %p540_p8 = scmp.lt.s32.totalorder %s8251_s21, 3 }
  0x17   : > { %13017 = sst [smem:[#allocation10_spill]] %s13016_s26 }
  0x18   : > { %p541_p9 = pnand %p6957_p7, %p540_p8 }
  0x1a   : > { %544 = sbr.rel (%p541_p9) target bundleno = 2778 (0xada), region = 96 }
  0x1f   : > { %s13018_s29 = sld [smem:[#allocation23_spill]]  ;;  %vm664_vm0 = vcmask 1043456   ;;  %p595_p10 = scmp.lt.s32.totalorder %s8377_s1, 1  ;;  %v12993_v17 = vmov 0.0   ;;  %vm649_vm1 = vcmask 1046528   ;;  %vm657_vm2 = vcmask 228352  }
  0x20   : > { %s13019_s2 = sld [smem:[#allocation22_spill]]  ;;  %744 = vmatprep.mubr.f32.mxu0 %v12993_v17  ;;  %827 = vmatprep.mubr.f32.mxu1 %v12993_v17  ;;  %vm8254_vm3 = vmmov 0   ;;  %vm1214_vm4 = vcmask 1045504   ;;  %vm1525_vm5 = vcmask 1044480   ;;  %vm2169_vm6 = vcmask 195584   ;;  %s593_s21 = sand.u32 1, %s8243_s30  }
  0x21   : > { %s596_s0 = scalar_select %p595_p10, %s8377_s1, 1  ;;  %vm2868_vm7 = vcmask 523264   ;;  %vm4251_vm8 = vcmask 261120   ;;  %vm5332_vm9 = vcmask 1041408   ;;  %vm5328_vm10 = vcmask 80896  }
  0x22   : > { %s13030_s19 = sld [smem:[#allocation24_spill]]  ;;  %vm6873_vm11 = vcmask 73728   ;;  %s594_s27 = scalar_lea.vmem [#allocation2], %s593_s21 }
  0x23   : > { %s7539_s22 = sshll.u32 %s596_s0, 5  ;;  %s13035_s26 = sld [smem:[#allocation25_spill]] }
  0x24   : > { %s13043_s4 = sld [smem:[#allocation26_spill]]  ;;  %s7536_s0 = sshll.u32 %s8377_s1, 4 }
  0x25   : > { %v6976_v0 = vld [vmem:[%s13018_s29 + $0x120] sm:$0xf]  ;;  %v6978_v1 = vld [vmem:[%s13018_s29 + $0x130] sm:$0xf]  ;;  %v6971_v2 = vld [vmem:[%s13018_s29 + $0xf8] sm:$0xff]  ;;  %s13044_s5 = sld [smem:[#allocation27_spill]] }
  0x26   : > { %6980 = vmatprep.subr.msk.mxu0 %vm664_vm0, %v6976_v0  ;;  %6985 = vmatprep.subr.msk.mxu1 %vm664_vm0, %v6978_v1  ;;  %v6975_v3 = vld [vmem:[%s13018_s29 + $0x118] sm:$0xf]  ;;  %v6977_v4 = vld [vmem:[%s13018_s29 + $0x128] sm:$0xf]  ;;  %v6970_v6 = vld [vmem:[%s13018_s29 + $0xf0] sm:$0xff]  ;;  %s599_s24 = scalar_lea.vmem %s13019_s2, %s7539_s22  ;;  %s6899_s28 = sshll.u32 %s594_s27, 4  ;;  %s6900_s28 = int_to_ptr.vmem [resolvable:$true] %s6899_s28 }
  0x27   : > { %v6973_v5 = vld [vmem:[%s13018_s29 + $0x108] sm:$0xff]  ;;  %6981 = vmatpush1.msk.msra.mxu0 %vm664_vm0, %v6975_v3  ;;  %6986 = vmatpush1.msk.msra.mxu1 %vm664_vm0, %v6977_v4  ;;  %v6972_v7 = vld [vmem:[%s13018_s29 + $0x100] sm:$0xff]  ;;  %v6966_v8 = vld [vmem:[%s13018_s29 + $0xd0] sm:$0xff]  ;;  %s13048_s23 = sld [smem:[#allocation28_spill]]  ;;  %s6887_s2 = scalar_lea.sflag [#allocation3], %s593_s21 }
  0x28   : > { %706 = vmatprep.subr.mxu0 %v6971_v2  ;;  %789 = vmatprep.subr.mxu1 %v6973_v5  ;;  %v6968_v9 = vld [vmem:[%s13018_s29 + $0xe0] sm:$0xff]  ;;  %v6965_v10 = vld [vmem:[%s13018_s29 + $0xc8] sm:$0xff]  ;;  %v6967_v11 = vld [vmem:[%s13018_s29 + $0xd8] sm:$0xff] }
  0x29   : > { %707 = vmatpush1.msra.mxu0 %v6970_v6  ;;  %790 = vmatpush1.msra.mxu1 %v6972_v7  ;;  %v6961_v12 = vld [vmem:[%s13018_s29 + $0xa8] sm:$0xff]  ;;  %v6963_v13 = vld [vmem:[%s13018_s29 + $0xb8] sm:$0xff]  ;;  %v6960_v14 = vld [vmem:[%s13018_s29 + $0xa0] sm:$0xff] }
  0x2a   : > { %708 = vmatprep.subr.mxu0 %v6966_v8  ;;  %791 = vmatprep.subr.mxu1 %v6968_v9  ;;  %v6962_v15 = vld [vmem:[%s13018_s29 + $0xb0] sm:$0xff]  ;;  %v620_v16 = vld [vmem:[%s13018_s29 + $0x80] sm:$0xf]  ;;  %v8467_v19 = vld [vmem:[%s599_s24 + $0x8] sm:$0xff] }
  0x2b   : > { %709 = vmatpush1.msra.mxu0 %v6965_v10  ;;  %792 = vmatpush1.msra.mxu1 %v6967_v11  ;;  %v8465_v18 = vld [vmem:[%s599_s24] sm:$0xff]  ;;  %v8469_v20 = vld [vmem:[%s599_s24 + $0x10] sm:$0xff]  ;;  %v651_v22 = vrot.slane %v8467_v19, 1  ;;  %v8477_v24 = vld [vmem:[%s599_s24 + $0x18] sm:$0xf]  ;;  %v1837_v35 = vrot.slane %v8467_v19, 4 }
  0x2c   : > { %710 = vmatprep.subr.mxu0 %v6961_v12  ;;  %793 = vmatprep.subr.mxu1 %v6963_v13  ;;  %v650_v21 = vrot.slane %v8465_v18, 1  ;;  %v653_v23 = vrot.slane %v8469_v20, 1  ;;  %v6979_v26 = vld [vmem:[%s13018_s29 + $0x138] sm:$0xf]  ;;  %v655_v30 = vrot.slane %v8477_v24, 1  ;;  %v1836_v31 = vrot.slane %v8465_v18, 4 }
  0x2d   : > { %711 = vmatpush1.msra.mxu0 %v6960_v14  ;;  %794 = vmatpush1.msra.mxu1 %v6962_v15  ;;  %v619_v27 = vld [vmem:[%s13018_s29 + $0x78] sm:$0xf]  ;;  %v6974_v32 = vld [vmem:[%s13018_s29 + $0x110] sm:$0xff]  ;;  %v1839_v36 = vrot.slane %v8469_v20, 4  ;;  %v1841_v38 = vrot.slane %v8477_v24, 4  ;;  %v6969_v39 = vld [vmem:[%s13018_s29 + $0xe8] sm:$0xff]  ;;  %s6897_s20 = scalar_lea.hbm %s13048_s23, %s7536_s0 }
  0x2e   : > { %7939 = vmatprep.subr.mxu0 %v12993_v17  ;;  %6994 = vmatprep.subr.msk.mxu1 %vm664_vm0, %v620_v16  ;;  %v652_v25 = vsel %vm649_vm1, %v650_v21, %v651_v22  ;;  %v615_v28 = vld [vmem:[%s13018_s29 + $0x58] sm:$0xff]  ;;  %v654_v29 = vsel %vm649_vm1, %v651_v22, %v653_v23  ;;  %v614_v33 = vld [vmem:[%s13018_s29 + $0x50] sm:$0xff]  ;;  %v656_v37 = vsel %vm649_vm1, %v653_v23, %v655_v30  ;;  %v609_v40 = vld [vmem:[%s13018_s29 + $0x28] sm:$0xff]  ;;  %v1215_v7 = vrot.slane %v8465_v18, 2  ;;  %s8191_s24 = scalar_lea.vmem %s6900_s28, 16 }
  0x2f   : > { %6982 = vmatmul.mubr.msk.f32.vlgmr.msra.gmra.mxu0 %vm657_vm2, %v652_v25  ;;  %6987 = vmatmul.mubr.msk.f32.vlgmr.msra.gmra.mxu1 %vm657_vm2, %v652_v25  ;;  %v610_v34 = vld [vmem:[%s13018_s29 + $0x30] sm:$0xff]  ;;  %v8523_v41 = vsel %vm664_vm0, %v1836_v31, %v1837_v35  ;;  %v8526_v42 = vsel %vm664_vm0, %v1837_v35, %v1839_v36  ;;  %v605_v43 = vld [vmem:[%s13018_s29 + $0x8] sm:$0xff]  ;;  %v8533_v44 = vsel %vm664_vm0, %v1839_v36, %v1841_v38  ;;  %v6964_v45 = vld [vmem:[%s13018_s29 + $0xc0] sm:$0xff]  ;;  %v1216_v8 = vrot.slane %v8467_v19, 2  ;;  %p8192_p11 = scmp.ne.s32.totalorder %s6900_s28, %s8191_s24 }
  0x30   : > { %750 = vmatprep.mubr.f32.mxu0 %v12993_v17  ;;  %833 = vmatprep.mubr.f32.mxu1 %v12993_v17  ;;  %v604_v46 = vld [vmem:[%s13018_s29] sm:$0xff]  ;;  %v622_v47 = vld [vmem:[%s13018_s29 + $0x90] sm:$0xf]  ;;  %v621_v48 = vld [vmem:[%s13018_s29 + $0x88] sm:$0xf]  ;;  %v1218_v14 = vrot.slane %v8469_v20, 2 }
  0x31   : > { %7940 = vmatpush3.msk.msra.mxu0 %vm664_vm0, %v6979_v26  ;;  %6995 = vmatpush1.msk.msra.mxu1 %vm664_vm0, %v619_v27  ;;  %v623_v49 = vld [vmem:[%s13018_s29 + $0x98] sm:$0xf]  ;;  %v617_v50 = vld [vmem:[%s13018_s29 + $0x68] sm:$0xff]  ;;  %v616_v51 = vld [vmem:[%s13018_s29 + $0x60] sm:$0xff]  ;;  %v1217_v13 = vsel %vm1214_vm4, %v1215_v7, %v1216_v8  ;;  %v1220_v23 = vrot.slane %v8477_v24, 2  ;;  %v1529_v36 = vrot.slane %v8469_v20, 3  ;;  %p8193_p12 = pnand %p8192_p11, %p8394_p5 }
  0x32   : > { %7941 = vmatprep.subr.mxu0 %v12993_v17  ;;  %973 = vmatprep.subr.mxu1 %v615_v28  ;;  %v618_v52 = vld [vmem:[%s13018_s29 + $0x70] sm:$0xff]  ;;  %v612_v53 = vld [vmem:[%s13018_s29 + $0x40] sm:$0xff]  ;;  %v611_v54 = vld [vmem:[%s13018_s29 + $0x38] sm:$0xff]  ;;  %v1219_v22 = vsel %vm1214_vm4, %v1216_v8, %v1218_v14 }
  0x33   : > { %6983 = vmatmul.mubr.msk.f32.gmra.mxu0 %vm657_vm2, %v654_v29  ;;  %6988 = vmatmul.mubr.msk.f32.gmra.mxu1 %vm657_vm2, %v654_v29  ;;  %v613_v55 = vld [vmem:[%s13018_s29 + $0x48] sm:$0xff]  ;;  %v607_v56 = vld [vmem:[%s13018_s29 + $0x18] sm:$0xff]  ;;  %v606_v57 = vld [vmem:[%s13018_s29 + $0x10] sm:$0xff]  ;;  %v1221_v28 = vsel %vm1214_vm4, %v1218_v14, %v1220_v23  ;;  %p8194_p13 = pneg %p8193_p12 }
  0x34   : > { %756 = vmatprep.mubr.f32.mxu0 %v12993_v17  ;;  %839 = vmatprep.mubr.f32.mxu1 %v12993_v17  ;;  %v608_v58 = vld [vmem:[%s13018_s29 + $0x20] sm:$0xff]  ;;  %v7026_v60 = vld [vmem:[%s13018_s29 + $0x1d0] sm:$0xf]  ;;  %v7023_v61 = vld [vmem:[%s13018_s29 + $0x1b8] sm:$0xf] }
  0x35   : > { %7942 = vmatpush3.msra.mxu0 %v6974_v32  ;;  %974 = vmatpush1.msra.mxu1 %v614_v33  ;;  %v7024_v59 = vld [vmem:[%s13018_s29 + $0x1c0] sm:$0xf]  ;;  %v7025_v62 = vld [vmem:[%s13018_s29 + $0x1c8] sm:$0xf]  ;;  %v7019_v63 = vld [vmem:[%s13018_s29 + $0x198] sm:$0xff]  ;;  %v1526_v32 = vrot.slane %v8465_v18, 3 }
  0x36   : > { %7943 = vmatprep.subr.mxu0 %v12993_v17  ;;  %975 = vmatprep.subr.mxu1 %v610_v34  ;;  %v7021_v0 = vld [vmem:[%s13018_s29 + $0x1a8] sm:$0xff]  ;;  %v7018_v1 = vld [vmem:[%s13018_s29 + $0x190] sm:$0xff]  ;;  %v7020_v2 = vld [vmem:[%s13018_s29 + $0x1a0] sm:$0xff]  ;;  %v1527_v33 = vrot.slane %v8467_v19, 3 }
  0x37   : > { %6984 = vmatmul.mubr.msk.f32.gmra.mxu0 %vm657_vm2, %v656_v37  ;;  %6989 = vmatmul.mubr.msk.f32.gmra.mxu1 %vm657_vm2, %v656_v37  ;;  %v7014_v3 = vld [vmem:[%s13018_s29 + $0x170] sm:$0xff]  ;;  %v7016_v4 = vld [vmem:[%s13018_s29 + $0x180] sm:$0xff]  ;;  %v7013_v5 = vld [vmem:[%s13018_s29 + $0x168] sm:$0xff] }
  0x38   : > { %7944 = vmatpush3.msra.mxu0 %v6969_v39  ;;  %976 = vmatpush1.msra.mxu1 %v609_v40  ;;  %v7015_v6 = vld [vmem:[%s13018_s29 + $0x178] sm:$0xff]  ;;  %v7009_v9 = vld [vmem:[%s13018_s29 + $0x148] sm:$0xff]  ;;  %v7008_v11 = vld [vmem:[%s13018_s29 + $0x140] sm:$0xff]  ;;  %v1530_v39 = vsel %vm1525_vm5, %v1527_v33, %v1529_v36  ;;  %v1531_v40 = vrot.slane %v8477_v24, 3 }
  0x39   : > { %7945 = vmatprep.subr.mxu0 %v12993_v17  ;;  %977 = vmatprep.subr.mxu1 %v605_v43  ;;  %v7011_v10 = vld [vmem:[%s13018_s29 + $0x158] sm:$0xff]  ;;  %v7010_v12 = vld [vmem:[%s13018_s29 + $0x150] sm:$0xff]  ;;  %v7058_v15 = vld [vmem:[%s13018_s29 + $0x260] sm:$0xf] }
  0x3a   : > { %7946 = vmatpush3.msra.mxu0 %v6964_v45  ;;  %7947 = vmatprep.mubr.msk.f32.mxu0 %vm8254_vm3, %v12993_v17  ;;  %v7027_v16 = vld [vmem:[%s13018_s29 + $0x1d8] sm:$0xf]  ;;  %v7022_v26 = vld [vmem:[%s13018_s29 + $0x1b0] sm:$0xff]  ;;  %v7017_v30 = vld [vmem:[%s13018_s29 + $0x188] sm:$0xff] }
  0x3b   : > { %978 = vmatpush1.msra.mxu1 %v604_v46  ;;  %1011 = vmatprep.mubr.f32.mxu1 %v12993_v17  ;;  %v7057_v21 = vld [vmem:[%s13018_s29 + $0x258] sm:$0xf]  ;;  %v7052_v27 = vld [vmem:[%s13018_s29 + $0x230] sm:$0xff]  ;;  %v7047_v31 = vld [vmem:[%s13018_s29 + $0x208] sm:$0xff]  ;;  %v1532_v46 = vsel %vm1525_vm5, %v1529_v36, %v1531_v40 }
  0x3c   : > { %7948 = vmatmul.mubr.msk.f32.vlgmr.msra.gmra.mxu0 %vm657_vm2, %v652_v25  ;;  %6996 = vmatmul.mubr.msk.f32.vlgmr.msra.gmra.mxu1 %vm657_vm2, %v8465_v18  ;;  %v7053_v25 = vld [vmem:[%s13018_s29 + $0x238] sm:$0xff]  ;;  %v7043_v34 = vld [vmem:[%s13018_s29 + $0x1e8] sm:$0xff]  ;;  %v7012_v35 = vld [vmem:[%s13018_s29 + $0x160] sm:$0xff] }
  0x3d   : > { %7950 = vmatprep.mubr.msk.f32.mxu0 %vm8254_vm3, %v12993_v17  ;;  %1017 = vmatprep.mubr.f32.mxu1 %v12993_v17  ;;  %v7059_v38 = vld [vmem:[%s13018_s29 + $0x268] sm:$0xf]  ;;  %v7054_v24 = vld [vmem:[%s13018_s29 + $0x240] sm:$0xff]  ;;  %v7056_v45 = vld [vmem:[%s13018_s29 + $0x250] sm:$0xff] }
  0x3e   : > { %6999 = vmatprep.subr.msk.mxu0 %vm664_vm0, %v622_v47  ;;  %7956 = vmatprep.subr.mxu1 %v12993_v17  ;;  %v7055_v43 = vld [vmem:[%s13018_s29 + $0x248] sm:$0xff]  ;;  %v7050_v47 = vld [vmem:[%s13018_s29 + $0x220] sm:$0xff] }
  0x3f   : > { %7000 = vmatpush1.msk.msra.mxu0 %vm664_vm0, %v621_v48  ;;  %7957 = vmatpush3.msk.msra.mxu1 %vm664_vm0, %v623_v49  ;;  %v7049_v48 = vld [vmem:[%s13018_s29 + $0x218] sm:$0xff]  ;;  %v7051_v49 = vld [vmem:[%s13018_s29 + $0x228] sm:$0xff]  ;;  %v7080_v8 = vld [vmem:[%s13018_s29 + $0x2a0] sm:$0xff] }
  0x40   : > { %7951 = vmatmul.mubr.msk.f32.gmra.mxu0 %vm657_vm2, %v654_v29  ;;  %6997 = vmatmul.mubr.msk.f32.gmra.mxu1 %vm657_vm2, %v8467_v19  ;;  %v7048_v29 = vld [vmem:[%s13018_s29 + $0x210] sm:$0xff]  ;;  %v7085_v7 = vld [vmem:[%s13018_s29 + $0x2c8] sm:$0xff] }
  0x41   : > { %1056 = vmatprep.subr.mxu0 %v617_v50  ;;  %7958 = vmatprep.subr.mxu1 %v12993_v17  ;;  %v7045_v50 = vld [vmem:[%s13018_s29 + $0x1f8] sm:$0xff] }
  0x42   : > { %7953 = vmatprep.mubr.msk.f32.mxu0 %vm8254_vm3, %v12993_v17  ;;  %1023 = vmatprep.mubr.f32.mxu1 %v12993_v17 }
  0x43   : > { %1057 = vmatpush1.msra.mxu0 %v616_v51  ;;  %7959 = vmatpush3.msra.mxu1 %v618_v52  ;;  %v7044_v51 = vld [vmem:[%s13018_s29 + $0x1f0] sm:$0xff]  ;;  %v7046_v52 = vld [vmem:[%s13018_s29 + $0x200] sm:$0xff] }
  0x44   : > { %7954 = vmatmul.mubr.msk.f32.gmra.mxu0 %vm657_vm2, %v656_v37  ;;  %6998 = vmatmul.mubr.msk.f32.gmra.mxu1 %vm657_vm2, %v8469_v20  ;;  %v7060_v37 = vld [vmem:[%s13018_s29 + $0x270] sm:$0xf] }
  0x45   : > { %1058 = vmatprep.subr.mxu0 %v612_v53  ;;  %7960 = vmatprep.subr.mxu1 %v12993_v17  ;;  %v7092_v53 = vld [vmem:[%s13018_s29 + $0x300] sm:$0xf] }
  0x46   : > { %1059 = vmatpush1.msra.mxu0 %v611_v54  ;;  %7961 = vmatpush3.msra.mxu1 %v613_v55  ;;  %v7094_v54 = vld [vmem:[%s13018_s29 + $0x310] sm:$0xf]  ;;  %v7091_v55 = vld [vmem:[%s13018_s29 + $0x2f8] sm:$0xf] }
  0x47   : > { %1060 = vmatprep.subr.mxu0 %v607_v56  ;;  %7962 = vmatprep.subr.mxu1 %v12993_v17  ;;  %v7093_v56 = vld [vmem:[%s13018_s29 + $0x308] sm:$0xf] }
  0x48   : > { %1061 = vmatpush1.msra.mxu0 %v606_v57  ;;  %1094 = vmatprep.mubr.f32.mxu0 %v12993_v17  ;;  %v7087_v57 = vld [vmem:[%s13018_s29 + $0x2d8] sm:$0xff] }
  0x49   : > { %7963 = vmatpush3.msra.mxu1 %v608_v58  ;;  %7964 = vmatprep.mubr.msk.f32.mxu1 %vm8254_vm3, %v12993_v17  ;;  %v7089_v58 = vld [vmem:[%s13018_s29 + $0x2e8] sm:$0xff] }
  0x4a   : > { %7001 = vmatmul.mubr.msk.f32.vlgmr.msra.gmra.mxu0 %vm657_vm2, %v8465_v18  ;;  %7965 = vmatmul.mubr.msk.f32.vlgmr.msra.gmra.mxu1 %vm657_vm2, %v8465_v18  ;;  %v7042_v18 = vld [vmem:[%s13018_s29 + $0x1e0] sm:$0xff] }
  0x4b   : > { %1100 = vmatprep.mubr.f32.mxu0 %v12993_v17  ;;  %7967 = vmatprep.mubr.msk.f32.mxu1 %vm8254_vm3, %v12993_v17 }
  0x4c   : > { %7028 = vmatprep.subr.msk.mxu0 %vm664_vm0, %v7024_v59  ;;  %7033 = vmatprep.subr.msk.mxu1 %vm664_vm0, %v7026_v60  ;;  %v7086_v59 = vld [vmem:[%s13018_s29 + $0x2d0] sm:$0xff]  ;;  %v7088_v60 = vld [vmem:[%s13018_s29 + $0x2e0] sm:$0xff] }
  0x4d   : > { %7029 = vmatpush1.msk.msra.mxu0 %vm664_vm0, %v7023_v61  ;;  %7034 = vmatpush1.msk.msra.mxu1 %vm664_vm0, %v7025_v62  ;;  %v7082_v61 = vld [vmem:[%s13018_s29 + $0x2b0] sm:$0xff]  ;;  %v7084_v62 = vld [vmem:[%s13018_s29 + $0x2c0] sm:$0xff] }
  0x4e   : > { %7002 = vmatmul.mubr.msk.f32.gmra.mxu0 %vm657_vm2, %v8467_v19  ;;  %7968 = vmatmul.mubr.msk.f32.gmra.mxu1 %vm657_vm2, %v8467_v19  ;;  %v1528_v19 = vsel %vm1525_vm5, %v1526_v32, %v1527_v33 }
  0x4f   : > { %1269 = vmatprep.subr.mxu0 %v7019_v63  ;;  %1352 = vmatprep.subr.mxu1 %v7021_v0  ;;  %v7081_v63 = vld [vmem:[%s13018_s29 + $0x2a8] sm:$0xff]  ;;  %v7083_v0 = vld [vmem:[%s13018_s29 + $0x2b8] sm:$0xff] }
  0x50   : > { %1106 = vmatprep.mubr.f32.mxu0 %v12993_v17  ;;  %7970 = vmatprep.mubr.msk.f32.mxu1 %vm8254_vm3, %v12993_v17 }
  0x51   : > { %1270 = vmatpush1.msra.mxu0 %v7018_v1  ;;  %1353 = vmatpush1.msra.mxu1 %v7020_v2  ;;  %v7077_v1 = vld [vmem:[%s13018_s29 + $0x288] sm:$0xff]  ;;  %v7079_v2 = vld [vmem:[%s13018_s29 + $0x298] sm:$0xff] }
  0x52   : > { %7003 = vmatmul.mubr.msk.f32.gmra.mxu0 %vm657_vm2, %v8469_v20  ;;  %7971 = vmatmul.mubr.msk.f32.gmra.mxu1 %vm657_vm2, %v8469_v20  ;;  %v7061_v20 = vld [vmem:[%s13018_s29 + $0x278] sm:$0xf] }
  0x53   : > { %1271 = vmatprep.subr.mxu0 %v7014_v3  ;;  %1354 = vmatprep.subr.mxu1 %v7016_v4  ;;  %v7076_v3 = vld [vmem:[%s13018_s29 + $0x280] sm:$0xff]  ;;  %v7078_v4 = vld [vmem:[%s13018_s29 + $0x290] sm:$0xff] }
  0x54   : > { %1272 = vmatpush1.msra.mxu0 %v7013_v5  ;;  %1355 = vmatpush1.msra.mxu1 %v7015_v6  ;;  %v7095_v5 = vld [vmem:[%s13018_s29 + $0x318] sm:$0xf]  ;;  %v7090_v6 = vld [vmem:[%s13018_s29 + $0x2f0] sm:$0xff] }
  0x55   : > { %1273 = vmatprep.subr.mxu0 %v7009_v9  ;;  %1356 = vmatprep.subr.mxu1 %v7011_v10 }
  0x56   : > { %1274 = vmatpush1.msra.mxu0 %v7008_v11  ;;  %1307 = vmatprep.mubr.f32.mxu0 %v12993_v17 }
  0x57   : > { %1357 = vmatpush1.msra.mxu1 %v7010_v12  ;;  %1390 = vmatprep.mubr.f32.mxu1 %v12993_v17 }
  0x58   : > { %7030 = vmatmul.mubr.msk.f32.vlgmr.msra.gmra.mxu0 %vm657_vm2, %v1217_v13  ;;  %7035 = vmatmul.mubr.msk.f32.vlgmr.msra.gmra.mxu1 %vm657_vm2, %v1217_v13 }
  0x59   : > { %1313 = vmatprep.mubr.f32.mxu0 %v12993_v17  ;;  %1396 = vmatprep.mubr.f32.mxu1 %v12993_v17 }
  0x5a   : > { %7973 = vmatprep.subr.mxu0 %v12993_v17  ;;  %7062 = vmatprep.subr.msk.mxu1 %vm664_vm0, %v7058_v15 }
  0x5b   : > { %7974 = vmatpush3.msk.msra.mxu0 %vm664_vm0, %v7027_v16  ;;  %7063 = vmatpush1.msk.msra.mxu1 %vm664_vm0, %v7057_v21 }
  0x5c   : > { %7031 = vmatmul.mubr.msk.f32.gmra.mxu0 %vm657_vm2, %v1219_v22  ;;  %7036 = vmatmul.mubr.msk.f32.gmra.mxu1 %vm657_vm2, %v1219_v22 }
  0x5d   : > { %7975 = vmatprep.subr.mxu0 %v12993_v17  ;;  %1580 = vmatprep.subr.mxu1 %v7053_v25 }
  0x5e   : > { %1319 = vmatprep.mubr.f32.mxu0 %v12993_v17  ;;  %1402 = vmatprep.mubr.f32.mxu1 %v12993_v17 }
  0x5f   : > { %7976 = vmatpush3.msra.mxu0 %v7022_v26  ;;  %1581 = vmatpush1.msra.mxu1 %v7052_v27 }
  0x60   : > { %7032 = vmatmul.mubr.msk.f32.gmra.mxu0 %vm657_vm2, %v1221_v28  ;;  %7037 = vmatmul.mubr.msk.f32.gmra.mxu1 %vm657_vm2, %v1221_v28 }
  0x61   : > { %7977 = vmatprep.subr.mxu0 %v12993_v17  ;;  %1582 = vmatprep.subr.mxu1 %v7048_v29 }
  0x62   : > { %7978 = vmatpush3.msra.mxu0 %v7017_v30  ;;  %1583 = vmatpush1.msra.mxu1 %v7047_v31 }
  0x63   : > { %7979 = vmatprep.subr.mxu0 %v12993_v17  ;;  %1584 = vmatprep.subr.mxu1 %v7043_v34 }
  0x64   : > { %7980 = vmatpush3.msra.mxu0 %v7012_v35  ;;  %7981 = vmatprep.mubr.msk.f32.mxu0 %vm8254_vm3, %v12993_v17 }
  0x65   : > { %1585 = vmatpush1.msra.mxu1 %v7042_v18  ;;  %1618 = vmatprep.mubr.f32.mxu1 %v12993_v17 }
  0x66   : > { %7982 = vmatmul.mubr.msk.f32.vlgmr.msra.gmra.mxu0 %vm657_vm2, %v1217_v13  ;;  %7064 = vmatmul.mubr.msk.f32.vlgmr.msra.gmra.mxu1 %vm657_vm2, %v1528_v19 }
  0x67   : > { %7984 = vmatprep.mubr.msk.f32.mxu0 %vm8254_vm3, %v12993_v17  ;;  %1624 = vmatprep.mubr.f32.mxu1 %v12993_v17 }
  0x68   : > { %7067 = vmatprep.subr.msk.mxu0 %vm664_vm0, %v7060_v37  ;;  %7990 = vmatprep.subr.mxu1 %v12993_v17 }
  0x69   : > { %7068 = vmatpush1.msk.msra.mxu0 %vm664_vm0, %v7059_v38  ;;  %7991 = vmatpush3.msk.msra.mxu1 %vm664_vm0, %v7061_v20 }
  0x6a   : > { %7985 = vmatmul.mubr.msk.f32.gmra.mxu0 %vm657_vm2, %v1219_v22  ;;  %7065 = vmatmul.mubr.msk.f32.gmra.mxu1 %vm657_vm2, %v1530_v39 }
  0x6b   : > { %1663 = vmatprep.subr.mxu0 %v7055_v43  ;;  %7992 = vmatprep.subr.mxu1 %v12993_v17 }
  0x6c   : > { %7987 = vmatprep.mubr.msk.f32.mxu0 %vm8254_vm3, %v12993_v17  ;;  %1630 = vmatprep.mubr.f32.mxu1 %v12993_v17 }
  0x6d   : > { %1664 = vmatpush1.msra.mxu0 %v7054_v24  ;;  %7993 = vmatpush3.msra.mxu1 %v7056_v45 }
  0x6e   : > { %7988 = vmatmul.mubr.msk.f32.gmra.mxu0 %vm657_vm2, %v1221_v28  ;;  %7066 = vmatmul.mubr.msk.f32.gmra.mxu1 %vm657_vm2, %v1532_v46 }
  0x6f   : > { %1665 = vmatprep.subr.mxu0 %v7050_v47  ;;  %7994 = vmatprep.subr.mxu1 %v12993_v17 }
  0x70   : > { %1666 = vmatpush1.msra.mxu0 %v7049_v48  ;;  %7995 = vmatpush3.msra.mxu1 %v7051_v49 }
  0x71   : > { %1667 = vmatprep.subr.mxu0 %v7045_v50  ;;  %7996 = vmatprep.subr.mxu1 %v12993_v17 }
  0x72   : > { %1668 = vmatpush1.msra.mxu0 %v7044_v51  ;;  %1701 = vmatprep.mubr.f32.mxu0 %v12993_v17 }
  0x73   : > { %7997 = vmatpush3.msra.mxu1 %v7046_v52  ;;  %7998 = vmatprep.mubr.msk.f32.mxu1 %vm8254_vm3, %v12993_v17 }
  0x74   : > { %7069 = vmatmul.mubr.msk.f32.vlgmr.msra.gmra.mxu0 %vm657_vm2, %v1528_v19  ;;  %7999 = vmatmul.mubr.msk.f32.vlgmr.msra.gmra.mxu1 %vm657_vm2, %v1528_v19 }
  0x75   : > { %1707 = vmatprep.mubr.f32.mxu0 %v12993_v17  ;;  %8001 = vmatprep.mubr.msk.f32.mxu1 %vm8254_vm3, %v12993_v17 }
  0x76   : > { %7096 = vmatprep.subr.msk.mxu0 %vm664_vm0, %v7092_v53  ;;  %7101 = vmatprep.subr.msk.mxu1 %vm664_vm0, %v7094_v54 }
  0x77   : > { %7097 = vmatpush1.msk.msra.mxu0 %vm664_vm0, %v7091_v55  ;;  %7102 = vmatpush1.msk.msra.mxu1 %vm664_vm0, %v7093_v56 }
  0x78   : > { %7070 = vmatmul.mubr.msk.f32.gmra.mxu0 %vm657_vm2, %v1530_v39  ;;  %8002 = vmatmul.mubr.msk.f32.gmra.mxu1 %vm657_vm2, %v1530_v39 }
  0x79   : > { %1890 = vmatprep.subr.mxu0 %v7087_v57  ;;  %1973 = vmatprep.subr.mxu1 %v7089_v58 }
  0x7a   : > { %1713 = vmatprep.mubr.f32.mxu0 %v12993_v17  ;;  %8004 = vmatprep.mubr.msk.f32.mxu1 %vm8254_vm3, %v12993_v17 }
  0x7b   : > { %1891 = vmatpush1.msra.mxu0 %v7086_v59  ;;  %1974 = vmatpush1.msra.mxu1 %v7088_v60 }
  0x7c   : > { %7071 = vmatmul.mubr.msk.f32.gmra.mxu0 %vm657_vm2, %v1532_v46  ;;  %8005 = vmatmul.mubr.msk.f32.gmra.mxu1 %vm657_vm2, %v1532_v46 }
  0x7d   : > { %1892 = vmatprep.subr.mxu0 %v7082_v61  ;;  %1975 = vmatprep.subr.mxu1 %v7084_v62 }
  0x7e   : > { %1893 = vmatpush1.msra.mxu0 %v7081_v63  ;;  %1976 = vmatpush1.msra.mxu1 %v7083_v0 }
  0x7f   : > { %1894 = vmatprep.subr.mxu0 %v7077_v1  ;;  %1977 = vmatprep.subr.mxu1 %v7079_v2 }
  0x80   : > { %1895 = vmatpush1.msra.mxu0 %v7076_v3  ;;  %1928 = vmatprep.mubr.f32.mxu0 %v12993_v17 }
  0x81   : > { %1978 = vmatpush1.msra.mxu1 %v7078_v4  ;;  %2011 = vmatprep.mubr.f32.mxu1 %v12993_v17 }
  0x82   : > { %7098 = vmatmul.mubr.msk.f32.vlgmr.msra.gmra.mxu0 %vm657_vm2, %v8523_v41  ;;  %7103 = vmatmul.mubr.msk.f32.vlgmr.msra.gmra.mxu1 %vm657_vm2, %v8523_v41 }
  0x83   : > { %1934 = vmatprep.mubr.f32.mxu0 %v12993_v17  ;;  %2017 = vmatprep.mubr.f32.mxu1 %v12993_v17 }
  0x84   : > { %8007 = vmatprep.subr.mxu0 %v12993_v17 }
  0x85   : > { %8008 = vmatpush3.msk.msra.mxu0 %vm664_vm0, %v7095_v5 }
  0x86   : > { %7099 = vmatmul.mubr.msk.f32.gmra.mxu0 %vm657_vm2, %v8526_v42  ;;  %7104 = vmatmul.mubr.msk.f32.gmra.mxu1 %vm657_vm2, %v8526_v42 }
  0x87   : > { %8009 = vmatprep.subr.mxu0 %v12993_v17  ;;  %1940 = vmatprep.mubr.f32.mxu0 %v12993_v17 }
  0x88   : > { %2023 = vmatprep.mubr.f32.mxu1 %v12993_v17  ;;  %8010 = vmatpush3.msra.mxu0 %v7090_v6 }
  0x89   : > { %8011 = vmatprep.subr.mxu0 %v12993_v17 }
  0x8a   : > { %7100 = vmatmul.mubr.msk.f32.gmra.mxu0 %vm657_vm2, %v8533_v44  ;;  %7105 = vmatmul.mubr.msk.f32.gmra.mxu1 %vm657_vm2, %v8533_v44 }
  0x8b   : > { %8012 = vmatpush3.msra.mxu0 %v7085_v7  ;;  %8015 = vmatprep.mubr.msk.f32.mxu0 %vm8254_vm3, %v12993_v17 }
  0x8c   : > { %8013 = vmatprep.subr.mxu0 %v12993_v17  ;;  %2317 = vmatprep.mubr.f32.mxu1 %v12993_v17 }
  0x8d   : > { %8014 = vmatpush3.msra.mxu0 %v7080_v8 }
  0x8e   : > { %8016 = vmatmul.mubr.msk.f32.vlgmr.msra.gmra.mxu0 %vm657_vm2, %v8523_v41 }
  0x8f   : > { %8018 = vmatprep.mubr.msk.f32.mxu0 %vm8254_vm3, %v12993_v17 }
  0x92   : > { %8019 = vmatmul.mubr.msk.f32.gmra.mxu0 %vm657_vm2, %v8526_v42 }
  0x93   : > { %8021 = vmatprep.mubr.msk.f32.mxu0 %vm8254_vm3, %v12993_v17 }
  0x96   : > { %8022 = vmatmul.mubr.msk.f32.gmra.mxu0 %vm657_vm2, %v8533_v44 }
  0x97   : > { %2240 = vmatprep.mubr.f32.mxu0 %v12993_v17 }
  0xef   : > { %v746_v9 = vpop.f32.mrf.mxu0  ;;  %v8921_v10 = vpop.f32.mrf.mxu1 }
  0xf1   : > { %v748_v11 = vpop.f32.mrf.mxu0  ;;  %v8923_v12 = vpop.f32.mrf.mxu1 }
  0xf3   : > { %v752_v41 = vpop.f32.mrf.mxu0  ;;  %v8925_v13 = vpop.f32.mrf.mxu1 }
  0xf5   : > { %v754_v14 = vpop.f32.mrf.mxu0  ;;  %v8927_v15 = vpop.f32.mrf.mxu1 }
  0xf7   : > { %v758_v42 = vpop.f32.mrf.mxu0  ;;  %v8929_v16 = vpop.f32.mrf.mxu1 }
  0xf9   : > { %v8931_v21 = vpop.f32.mrf.mxu0  ;;  %v8933_v44 = vpop.f32.mrf.mxu1 }
  0xfc   : > { %v912_v22 = vpop.f32.mrf.mxu0  ;;  %v1013_v23 = vpop.f32.mrf.mxu1 }
  0xfd   : > { %v8935_v25 = vadd.f32 %v1013_v23, %v746_v9 }
  0xfe   : > { %v7949_v26 = vpop.f32.mrf.mxu0  ;;  %v1015_v27 = vpop.f32.mrf.mxu1 }
  0xff   : > { %v8937_v28 = vadd.f32 %v1015_v27, %v748_v11 }
 0x100   : > { %v917_v29 = vpop.f32.mrf.mxu0  ;;  %v1019_v30 = vpop.f32.mrf.mxu1 }
 0x101   : > { %v8939_v31 = vadd.f32 %v1019_v30, %v752_v41  ;;  %v2127_v30 = vlaneseq }
 0x102   : > { %v7952_v32 = vpop.f32.mrf.mxu0  ;;  %v1021_v33 = vpop.f32.mrf.mxu1 }
 0x103   : > { %v8941_v34 = vadd.f32 %v1021_v33, %v754_v14 }
 0x104   : > { %v8943_v35 = vpop.f32.mrf.mxu0  ;;  %v1025_v18 = vpop.f32.mrf.mxu1 }
 0x105   : > { %v8945_v19 = vadd.f32 %v1025_v18, %v758_v42 }
 0x106   : > { %v7955_v36 = vpop.f32.mrf.mxu0  ;;  %v8947_v37 = vpop.f32.mrf.mxu1 }
 0x10a   : > { %v8949_v38 = vpop.f32.mrf.mxu0  ;;  %v1179_v20 = vpop.f32.mrf.mxu1 }
 0x10b   : > { %v8951_v39 = vadd.f32 %v1179_v20, %v912_v22  ;;  %v8981_v20 = vshrl.u32 %v2127_v30, 7 }
 0x10c   : > { %v8953_v40 = vpop.f32.mrf.mxu0  ;;  %v7966_v43 = vpop.f32.mrf.mxu1 }
 0x10d   : > { %13020 = vst [vmem:[#allocation11_spill] sm:$0xff] %v8951_v39  ;;  %13027 = vst [vmem:[#allocation18_spill] sm:$0xff] %v8981_v20  ;;  %v1028_v39 = vadd.f32 %v8947_v37, %v8931_v21 }
 0x10e   : > { %v8955_v24 = vpop.f32.mrf.mxu0  ;;  %v1184_v45 = vpop.f32.mrf.mxu1 }
 0x10f   : > { %v8957_v46 = vadd.f32 %v1184_v45, %v917_v29 }
 0x110   : > { %v1104_v47 = vpop.f32.mrf.mxu0  ;;  %v7969_v48 = vpop.f32.mrf.mxu1 }
 0x111   : > { %v8984_v48 = vsub.s32 0, %v8981_v20 }
 0x112   : > { %v1108_v49 = vpop.f32.mrf.mxu0  ;;  %v8959_v50 = vpop.f32.mrf.mxu1 }
 0x113   : > { %13028 = vst [vmem:[#allocation19_spill] sm:$0xff] %v8984_v48 }
 0x114   : > { %v1110_v51 = vpop.f32.mrf.mxu0  ;;  %v7972_v52 = vpop.f32.mrf.mxu1 }
 0x115   : > { %v12997_v52 = vsub.s32 2, %v8981_v20 }
 0x118   : > { %v1309_v53 = vpop.f32.mrf.mxu0  ;;  %v1392_v54 = vpop.f32.mrf.mxu1 }
 0x119   : > { %v1489_v37 = vadd.f32 %v1309_v53, %v8935_v25 }
 0x11a   : > { %v1311_v55 = vpop.f32.mrf.mxu0  ;;  %v1394_v56 = vpop.f32.mrf.mxu1 }
 0x11c   : > { %v1315_v57 = vpop.f32.mrf.mxu0  ;;  %v1398_v58 = vpop.f32.mrf.mxu1 }
 0x11e   : > { %v8961_v59 = vpop.f32.mrf.mxu0  ;;  %v8963_v60 = vpop.f32.mrf.mxu1 }
 0x120   : > { %v1321_v61 = vpop.f32.mrf.mxu0  ;;  %v1404_v62 = vpop.f32.mrf.mxu1 }
 0x122   : > { %v1323_v63 = vpop.f32.mrf.mxu0  ;;  %v1406_v0 = vpop.f32.mrf.mxu1 }
 0x126   : > { %v8965_v1 = vpop.f32.mrf.mxu0  ;;  %v8967_v2 = vpop.f32.mrf.mxu1 }
 0x127   : > { %13021 = vst [vmem:[#allocation12_spill] sm:$0xff] %v8965_v1 }
 0x128   : > { %v7983_v3 = vpop.f32.mrf.mxu0  ;;  %v1622_v4 = vpop.f32.mrf.mxu1 }
 0x129   : > { %v8988_v3 = vsub.s32 1, %v8981_v20 }
 0x12a   : > { %v8969_v5 = vpop.f32.mrf.mxu0  ;;  %v1626_v6 = vpop.f32.mrf.mxu1 }
 0x12b   : > { %13022 = vst [vmem:[#allocation13_spill] sm:$0xff] %v8969_v5  ;;  %13029 = vst [vmem:[#allocation20_spill] sm:$0xff] %v8988_v3 }
 0x12c   : > { %v7986_v7 = vpop.f32.mrf.mxu0  ;;  %v1628_v8 = vpop.f32.mrf.mxu1 }
 0x12d   : > { %v8993_v7 = vld [vmem:[%s13030_s19] sm:$0x1f]  ;;  %s8255_s19 = smov [#allocation2]  }
 0x12e   : > { %v8971_v9 = vpop.f32.mrf.mxu0  ;;  %v1632_v11 = vpop.f32.mrf.mxu1  ;;  %13031 = vst [vmem:[#allocation21_spill] sm:$0xff] %v8993_v7 }
 0x12f   : > { %13023 = vst [vmem:[#allocation14_spill] sm:$0xff] %v8971_v9  ;;  %v1111_v9 = vadd.f32 %v1110_v51, %v8933_v44 }
 0x130   : > { %v7989_v41 = vpop.f32.mrf.mxu0  ;;  %v1634_v14 = vpop.f32.mrf.mxu1 }
 0x131   : > { %v2141_v41 = vsub.s32 3, %v8981_v20  ;;  %v1105_v20 = vadd.f32 %v1104_v47, %v8927_v15  ;;  %v1500_v47 = vadd.f32 %v1323_v63, %v1028_v39 }
 0x133   : > { %v1497_v44 = vadd.f32 %v8963_v60, %v1105_v20 }
 0x134   : > { %v8973_v42 = vpop.f32.mrf.mxu0  ;;  %v8975_v22 = vpop.f32.mrf.mxu1 }
 0x135   : > { %13024 = vst [vmem:[#allocation15_spill] sm:$0xff] %v8975_v22  ;;  %v9007_v22 = vrot.slane %v8993_v7, %v8988_v3  ;;  %v1109_v3 = vadd.f32 %v1108_v49, %v8929_v16  ;;  %v1495_v16 = vadd.f32 %v8961_v59, %v8941_v34  ;;  %v1502_v49 = vadd.f32 %v1406_v0, %v1111_v9 }
 0x136   : > { %v1705_v23 = vpop.f32.mrf.mxu0  ;;  %v8000_v26 = vpop.f32.mrf.mxu1  ;;  %v1800_v0 = vadd.f32 %v8967_v2, %v1489_v37  ;;  %v13034_v37 = vld [vmem:[#allocation18_spill] sm:$0xff] }
 0x138   : > { %v1709_v27 = vpop.f32.mrf.mxu0  ;;  %v8977_v29 = vpop.f32.mrf.mxu1 }
 0x139   : > { %13025 = vst [vmem:[#allocation16_spill] sm:$0xff] %v8977_v29  ;;  %v9016_v29 = vrot.slane %v8993_v7, %v2141_v41 }
 0x13a   : > { %v1711_v32 = vpop.f32.mrf.mxu0  ;;  %v8003_v33 = vpop.f32.mrf.mxu1 }
 0x13b   : > { %v8998_v33 = vrot.slane %v8993_v7, %v8984_v48  ;;  %v1099_v48 = vadd.f32 %v8953_v40, %v8923_v12  ;;  %v1494_v40 = vadd.f32 %v1315_v57, %v8939_v31  ;;  %v1806_v31 = vadd.f32 %v1628_v8, %v1495_v16  ;;  %v13040_v16 = vld [vmem:[#allocation21_spill] sm:$0xff] }
 0x13c   : > { %v1715_v18 = vpop.f32.mrf.mxu0  ;;  %v8979_v36 = vpop.f32.mrf.mxu1  ;;  %v1808_v57 = vadd.f32 %v1711_v32, %v1497_v44 }
 0x13d   : > { %13026 = vst [vmem:[#allocation17_spill] sm:$0xff] %v8979_v36  ;;  %v1097_v36 = vadd.f32 %v8949_v38, %v8921_v10  ;;  %v1490_v38 = vadd.f32 %v1311_v55, %v8937_v28  ;;  %v1492_v12 = vadd.f32 %v1394_v56, %v1099_v48  ;;  %v1805_v51 = vadd.f32 %v1626_v6, %v1494_v40 }
 0x13e   : > { %v1717_v43 = vpop.f32.mrf.mxu0  ;;  %v8006_v45 = vpop.f32.mrf.mxu1  ;;  %v1811_v56 = vadd.f32 %v1634_v14, %v1500_v47 }
 0x13f   : > { %v9003_v45 = vrot.slane %v8993_v7, %v12997_v52  ;;  %v1103_v52 = vadd.f32 %v8955_v24, %v8925_v13  ;;  %v1491_v10 = vadd.f32 %v1392_v54, %v1097_v36  ;;  %v1499_v7 = vadd.f32 %v1321_v61, %v8945_v19 }
 0x140   : > { %v1501_v13 = vadd.f32 %v1404_v62, %v1109_v3  ;;  %v1801_v25 = vadd.f32 %v1622_v4, %v1490_v38  ;;  %v1813_v19 = vadd.f32 %v1717_v43, %v1502_v49 }
 0x141   : > { %v1496_v41 = vadd.f32 %v1398_v58, %v1103_v52  ;;  %v1810_v53 = vadd.f32 %v1632_v11, %v1499_v7  ;;  %v1803_v58 = vadd.f32 %v1705_v23, %v1492_v12  ;;  %v1802_v4 = vadd.f32 %v8973_v42, %v1491_v10 }
 0x142   : > { %v1930_v26 = vpop.f32.mrf.mxu0  ;;  %v2013_v30 = vpop.f32.mrf.mxu1  ;;  %v1812_v28 = vadd.f32 %v1715_v18, %v1501_v13  ;;  %v2145_v10 = vsub.s32 4, %v13034_v37 }
 0x143   : > { %v1807_v61 = vadd.f32 %v1709_v27, %v1496_v41  ;;  %v2110_v32 = vadd.f32 %v1930_v26, %v1800_v0  ;;  %v2112_v18 = vadd.f32 %v2013_v30, %v1802_v4  ;;  %v2788_v0 = vld [vmem:[%s13044_s5 + $0x440] sm:$0xff]  ;;  %v2691_v4 = vld [vmem:[%s13044_s5 + $0x138] sm:$0xff] }
 0x144   : > { %v1932_v17 = vpop.f32.mrf.mxu0  ;;  %v2015_v1 = vpop.f32.mrf.mxu1  ;;  %v13037_v41 = vld [vmem:[#allocation17_spill] sm:$0xff]  ;;  %v2146_v44 = vrot.slane %v13040_v16, %v2145_v10  ;;  %v2769_v10 = vld [vmem:[%s13044_s5 + $0x3a8] sm:$0xff] }
 0x145   : > { %v2111_v11 = vadd.f32 %v1932_v17, %v1801_v25  ;;  %v2113_v14 = vadd.f32 %v2015_v1, %v1803_v58  ;;  %v13032_v1 = vld [vmem:[#allocation13_spill] sm:$0xff]  ;;  %v2154_v38 = vadd.f32 %v9003_v45, %v2112_v18  ;;  %v13041_v25 = vld [vmem:[#allocation15_spill] sm:$0xff] }
 0x146   : > { %v1936_v5 = vpop.f32.mrf.mxu0  ;;  %v2019_v21 = vpop.f32.mrf.mxu1  ;;  %v1498_v52 = vadd.f32 %v13032_v1, %v8957_v46  ;;  %v2152_v46 = vadd.f32 %v8998_v33, %v2110_v32  ;;  %v2406_v58 = vld [vmem:[%s13043_s4 + $0x8] sm:$0xf]  ;;  %v2679_v1 = vld [vmem:[%s13044_s5 + $0xd8] sm:$0xff]  ;;  %v2662_v16 = vld [vmem:[%s13044_s5 + $0x50] sm:$0xff] }
 0x147   : > { %v2115_v6 = vadd.f32 %v1936_v5, %v1805_v51  ;;  %v2117_v9 = vadd.f32 %v2019_v21, %v1807_v61  ;;  %v1190_v5 = vadd.f32 %v8959_v50, %v8943_v35  ;;  %v13033_v35 = vld [vmem:[#allocation14_spill] sm:$0xff]  ;;  %v2153_v30 = vadd.f32 %v9007_v22, %v2111_v11  ;;  %v2698_v61 = vld [vmem:[%s13044_s5 + $0x170] sm:$0xff]  ;;  %v2685_v32 = vld [vmem:[%s13044_s5 + $0x108] sm:$0xff] }
 0x148   : > { %v1938_v24 = vpop.f32.mrf.mxu0  ;;  %v2021_v15 = vpop.f32.mrf.mxu1  ;;  %v9057_v21 = vadd.f32 %v9016_v29, %v2113_v14  ;;  %v2688_v11 = vld [vmem:[%s13044_s5 + $0x120] sm:$0xff]  ;;  %v2781_v18 = vld [vmem:[%s13044_s5 + $0x408] sm:$0xff] }
 0x149   : > { %v2116_v59 = vadd.f32 %v1938_v24, %v1806_v31  ;;  %v2118_v60 = vadd.f32 %v2021_v15, %v1808_v57  ;;  %v2157_v3 = vadd.f32 %v8998_v33, %v2115_v6  ;;  %v9051_v7 = vadd.f32 %v9003_v45, %v2117_v9  ;;  %v13038_v24 = vld [vmem:[#allocation11_spill] sm:$0xff]  ;;  %v2787_v6 = vld [vmem:[%s13044_s5 + $0x438] sm:$0xff] }
 0x14a   : > { %v1942_v54 = vpop.f32.mrf.mxu0  ;;  %v2025_v55 = vpop.f32.mrf.mxu1  ;;  %v1503_v50 = vadd.f32 %v13033_v35, %v1190_v5  ;;  %v2405_v57 = vld [vmem:[%s13043_s4] sm:$0xff]  ;;  %v2689_v9 = vld [vmem:[%s13044_s5 + $0x128] sm:$0xff]  ;;  %v2778_v5 = vld [vmem:[%s13044_s5 + $0x3f0] sm:$0xff]  ;;  %s8195_s4 = sshll.u32 %s8255_s19, 4  ;;  %s8196_s4 = int_to_ptr.vmem [resolvable:$false] %s8195_s4 }
 0x14b   : > { %v2120_v62 = vadd.f32 %v1942_v54, %v1810_v53  ;;  %v2122_v36 = vadd.f32 %v2025_v55, %v1812_v28  ;;  %v2158_v42 = vadd.f32 %v9007_v22, %v2116_v59  ;;  %v9044_v17 = vadd.f32 %v9016_v29, %v2118_v60  ;;  %v2168_v28 = vld [vmem:[%s13035_s26 + $0x8] sm:$0xf]  ;;  %v2791_v59 = vld [vmem:[%s13044_s5 + $0x458] sm:$0xff]  ;;  %v2694_v60 = vld [vmem:[%s13044_s5 + $0x150] sm:$0xff]  ;;  %s8197_s1 = scalar_lea.vmem %s8196_s4, 32  ;;  %p8198_p0 = scmp.lt.s32.totalorder %s6900_s28, %s8196_s4 }
 0x14c   : > { %v1944_v48 = vpop.f32.mrf.mxu0  ;;  %v2027_v34 = vpop.f32.mrf.mxu1  ;;  %v1814_v13 = vadd.f32 %v13037_v41, %v1503_v50  ;;  %v13042_v55 = vmov 0.0   ;;  %v2784_v14 = vld [vmem:[%s13044_s5 + $0x420] sm:$0xff]  ;;  %v2674_v50 = vld [vmem:[%s13044_s5 + $0xb0] sm:$0xff]  ;;  %v2667_v41 = vld [vmem:[%s13044_s5 + $0x78] sm:$0xff]  ;;  %p8199_p1 = scmp.lt.s32.totalorder %s8197_s1, %s8191_s24 }
 0x14d   : > { %v2121_v39 = vadd.f32 %v1944_v48, %v1811_v56  ;;  %v2123_v63 = vadd.f32 %v2027_v34, %v1813_v19  ;;  %v2162_v20 = vadd.f32 %v8998_v33, %v2120_v62  ;;  %v9038_v43 = vadd.f32 %v9003_v45, %v2122_v36  ;;  %v13039_v33 = vld [vmem:[#allocation12_spill] sm:$0xff]  ;;  %v2695_v48 = vld [vmem:[%s13044_s5 + $0x158] sm:$0xff]  ;;  %v2772_v35 = vld [vmem:[%s13044_s5 + $0x3c0] sm:$0xff] }
 0x14e   : > { %v2096_v8 = vpop.f32.mrf.mxu0  ;;  %v1493_v15 = vadd.f32 %v13039_v33, %v13038_v24  ;;  %v2697_v62 = vld [vmem:[%s13044_s5 + $0x168] sm:$0xff]  ;;  %v2794_v36 = vld [vmem:[%s13044_s5 + $0x470] sm:$0xff]  ;;  %p8200_p2 = por %p8199_p1, %p8198_p0 }
 0x14f   : > { %v2163_v23 = vadd.f32 %v9007_v22, %v2121_v39  ;;  %v9034_v27 = vadd.f32 %v9016_v29, %v2123_v63  ;;  %v2167_v22 = vld [vmem:[%s13035_s26] sm:$0xff]  ;;  %v13036_v29 = vld [vmem:[#allocation16_spill] sm:$0xff] }
 0x150   : > { %v8017_v2 = vpop.f32.mrf.mxu0  ;;  %v1809_v40 = vadd.f32 %v13036_v29, %v1498_v52  ;;  %v1804_v51 = vadd.f32 %v13041_v25, %v1493_v15  ;;  %v2793_v34 = vld [vmem:[%s13044_s5 + $0x468] sm:$0xff]  ;;  %v2790_v39 = vld [vmem:[%s13044_s5 + $0x450] sm:$0xff]  ;;  %v2692_v63 = vld [vmem:[%s13044_s5 + $0x140] sm:$0xff]  ;;  %p8201_p3 = pnand %p8200_p2, %p8194_p13 }
 0x151   : > { %2202 = vmatprep.subr.mxu0 %v2163_v23  ;;  %2279 = vmatprep.subr.mxu1 %v9034_v27  ;;  %v2682_v2 = vld [vmem:[%s13044_s5 + $0xf0] sm:$0xff]  ;;  %v2775_v52 = vld [vmem:[%s13044_s5 + $0x3d8] sm:$0xff]  ;;  %v2668_v29 = vld [vmem:[%s13044_s5 + $0x80] sm:$0xff] }
 0x152   : > { %v2101_v26 = vpop.f32.mrf.mxu0  ;;  %2203 = vmatpush1.msra.mxu0 %v2162_v20  ;;  %2280 = vmatpush1.msra.mxu1 %v9038_v43  ;;  %v2114_v31 = vadd.f32 %v2096_v8, %v1804_v51  ;;  %v2785_v8 = vld [vmem:[%s13044_s5 + $0x428] sm:$0xff]  ;;  %v2664_v15 = vld [vmem:[%s13044_s5 + $0x60] sm:$0xff]  ;;  %v2659_v25 = vld [vmem:[%s13044_s5 + $0x38] sm:$0xff] }
 0x153   : > { %2204 = vmatprep.subr.mxu0 %v2158_v42  ;;  %2281 = vmatprep.subr.mxu1 %v9044_v17  ;;  %v2119_v47 = vadd.f32 %v2101_v26, %v1809_v40  ;;  %v2676_v26 = vld [vmem:[%s13044_s5 + $0xc0] sm:$0xff]  ;;  %v2665_v24 = vld [vmem:[%s13044_s5 + $0x68] sm:$0xff]  ;;  %v2755_v51 = vld [vmem:[%s13044_s5 + $0x338] sm:$0xff] }
 0x154   : > { %v8020_v12 = vpop.f32.mrf.mxu0  ;;  %2205 = vmatpush1.msra.mxu0 %v2157_v3  ;;  %2282 = vmatpush1.msra.mxu1 %v9051_v7  ;;  %v2156_v19 = vadd.f32 %v2146_v44, %v2114_v31  ;;  %v2764_v40 = vld [vmem:[%s13044_s5 + $0x380] sm:$0xff]  ;;  %v2761_v33 = vld [vmem:[%s13044_s5 + $0x368] sm:$0xff] }
 0x155   : > { %2206 = vmatprep.subr.mxu0 %v2153_v30  ;;  %2283 = vmatprep.subr.mxu1 %v9057_v21  ;;  %v2161_v56 = vadd.f32 %v2146_v44, %v2119_v47  ;;  %v2670_v12 = vld [vmem:[%s13044_s5 + $0x90] sm:$0xff]  ;;  %v2661_v47 = vld [vmem:[%s13044_s5 + $0x48] sm:$0xff]  ;;  %v2752_v31 = vld [vmem:[%s13044_s5 + $0x320] sm:$0xff] }
 0x156   : > { %v2106_v45 = vpop.f32.mrf.mxu0  ;;  %2207 = vmatpush1.msra.mxu0 %v2152_v46  ;;  %2284 = vmatpush1.msra.mxu1 %v2154_v38 }
 0x157   : > { %v2124_v49 = vadd.f32 %v2106_v45, %v1814_v13  ;;  %7112 = vmatmul.mubr.msk.f32.vlgmr.msra.gmra.mxu1 %vm2169_vm6, %v2167_v22  ;;  %2439 = vmatprep.subr.mxu1 %v2163_v23  ;;  %v2686_v23 = vld [vmem:[%s13044_s5 + $0x110] sm:$0xff]  ;;  %v2763_v13 = vld [vmem:[%s13044_s5 + $0x378] sm:$0xff]  ;;  %v2760_v45 = vld [vmem:[%s13044_s5 + $0x360] sm:$0xff] }
 0x158   : > { %2440 = vmatpush1.msra.mxu1 %v2162_v20  ;;  %7110 = vmatmul.mubr.msk.f32.vlgmr.msra.gmra.mxu0 %vm2169_vm6, %v2167_v22  ;;  %v8023_v53 = vpop.f32.mrf.mxu0  ;;  %v2683_v20 = vld [vmem:[%s13044_s5 + $0xf8] sm:$0xff] }
 0x159   : > { %v2166_v54 = vadd.f32 %v2146_v44, %v2124_v49  ;;  %2441 = vmatprep.subr.mxu1 %v2158_v42  ;;  %2323 = vmatprep.mubr.f32.mxu1 %v13042_v55  ;;  %v2680_v42 = vld [vmem:[%s13044_s5 + $0xe0] sm:$0xff]  ;;  %v2758_v44 = vld [vmem:[%s13044_s5 + $0x350] sm:$0xff]  ;;  %v2757_v49 = vld [vmem:[%s13044_s5 + $0x348] sm:$0xff] }
 0x15a   : > { %2442 = vmatpush1.msra.mxu1 %v2157_v3  ;;  %2246 = vmatprep.mubr.f32.mxu0 %v13042_v55  ;;  %v2677_v3 = vld [vmem:[%s13044_s5 + $0xc8] sm:$0xff]  ;;  %v2658_v53 = vld [vmem:[%s13044_s5 + $0x30] sm:$0xff] }
 0x15b   : > { %7113 = vmatmul.mubr.msk.f32.gmra.mxu1 %vm2169_vm6, %v2168_v28  ;;  %8024 = vmatprep.subr.mxu0 %v2166_v54 }
 0x15c   : > { %2443 = vmatprep.subr.mxu1 %v2153_v30  ;;  %8025 = vmatpush3.msra.mxu0 %v2166_v54  ;;  %v2770_v30 = vld [vmem:[%s13044_s5 + $0x3b0] sm:$0xff] }
 0x15d   : > { %2444 = vmatpush1.msra.mxu1 %v2152_v46  ;;  %8026 = vmatprep.subr.mxu0 %v2161_v56  ;;  %v2671_v46 = vld [vmem:[%s13044_s5 + $0x98] sm:$0xff] }
 0x15e   : > { %8033 = vmatprep.subr.mxu1 %v2166_v54  ;;  %7111 = vmatmul.mubr.msk.f32.gmra.mxu0 %vm2169_vm6, %v2168_v28 }
 0x15f   : > { %8027 = vmatpush3.msra.mxu0 %v2161_v56  ;;  %2477 = vmatprep.mubr.f32.mxu1 %v13042_v55 }
 0x160   : > { %8028 = vmatprep.subr.mxu0 %v2156_v19  ;;  %7116 = vmatmul.mubr.msk.f32.vlgmr.msra.gmra.mxu1 %vm2169_vm6, %v2405_v57 }
 0x161   : > { %8034 = vmatpush3.msra.mxu1 %v2166_v54  ;;  %8029 = vmatpush3.msra.mxu0 %v2156_v19  ;;  %v2656_v54 = vld [vmem:[%s13044_s5 + $0x20] sm:$0xff] }
 0x162   : > { %8035 = vmatprep.subr.mxu1 %v2161_v56  ;;  %8030 = vmatprep.mubr.msk.f32.mxu0 %vm2169_vm6, %v2167_v22  ;;  %v2766_v22 = vld [vmem:[%s13044_s5 + $0x390] sm:$0xff] }
 0x163   : > { %2516 = vmatprep.subr.mxu0 %v9034_v27  ;;  %8036 = vmatpush3.msra.mxu1 %v2161_v56  ;;  %v2782_v27 = vld [vmem:[%s13044_s5 + $0x410] sm:$0xff]  ;;  %v2655_v56 = vld [vmem:[%s13044_s5 + $0x18] sm:$0xff] }
 0x164   : > { %8031 = vmatmul.mubr.msk.f32.vlgmr.msra.gmra.mxu0 %vm2169_vm6, %v2168_v28  ;;  %2483 = vmatprep.mubr.f32.mxu1 %v13042_v55  ;;  %v2754_v28 = vld [vmem:[%s13044_s5 + $0x330] sm:$0xff] }
 0x165   : > { %2517 = vmatpush1.msra.mxu0 %v9038_v43  ;;  %8037 = vmatprep.subr.mxu1 %v2156_v19  ;;  %v2779_v43 = vld [vmem:[%s13044_s5 + $0x3f8] sm:$0xff] }
 0x166   : > { %7117 = vmatmul.mubr.msk.f32.gmra.mxu1 %vm2169_vm6, %v2406_v58  ;;  %2518 = vmatprep.subr.mxu0 %v9044_v17  ;;  %v2776_v17 = vld [vmem:[%s13044_s5 + $0x3e0] sm:$0xff] }
 0x167   : > { %8038 = vmatpush3.msra.mxu1 %v2156_v19  ;;  %2519 = vmatpush1.msra.mxu0 %v9051_v7  ;;  %v2773_v7 = vld [vmem:[%s13044_s5 + $0x3c8] sm:$0xff] }
 0x168   : > { %2520 = vmatprep.subr.mxu0 %v9057_v21  ;;  %2554 = vmatprep.mubr.f32.mxu0 %v13042_v55  ;;  %v2673_v21 = vld [vmem:[%s13044_s5 + $0xa8] sm:$0xff] }
 0x169   : > { %2521 = vmatpush1.msra.mxu0 %v2154_v38  ;;  %8039 = vmatprep.mubr.msk.f32.mxu1 %vm2169_vm6, %v2405_v57  ;;  %v2767_v38 = vld [vmem:[%s13044_s5 + $0x398] sm:$0xff]  ;;  %v2653_v19 = vld [vmem:[%s13044_s5 + $0x8] sm:$0xff] }
 0x16a   : > { %7118 = vmatmul.mubr.msk.f32.vlgmr.msra.gmra.mxu0 %vm2169_vm6, %v2405_v57  ;;  %8040 = vmatmul.mubr.msk.f32.vlgmr.msra.gmra.mxu1 %vm2169_vm6, %v2406_v58  ;;  %v2751_v57 = vld [vmem:[%s13044_s5 + $0x318] sm:$0xff] }
 0x16b   : > { %2560 = vmatprep.mubr.f32.mxu0 %v13042_v55  ;;  %2875 = vmatprep.subr.mxu0 %v2698_v61  ;;  %v2652_v61 = vld [vmem:[%s13044_s5] sm:$0xff] }
 0x16c   : > { %2876 = vmatpush1.msra.mxu0 %v2697_v62  ;;  %2952 = vmatprep.subr.mxu1 %v2794_v36  ;;  %v2748_v62 = vld [vmem:[%s13044_s5 + $0x300] sm:$0xff]  ;;  %v2746_v36 = vld [vmem:[%s13044_s5 + $0x2f0] sm:$0xff] }
 0x16d   : > { %2877 = vmatprep.subr.mxu0 %v2695_v48  ;;  %2953 = vmatpush1.msra.mxu1 %v2793_v34  ;;  %v2842_v48 = vld [vmem:[%s13044_s5 + $0x5f0] sm:$0xff]  ;;  %v2745_v34 = vld [vmem:[%s13044_s5 + $0x2e8] sm:$0xff] }
 0x16e   : > { %7119 = vmatmul.mubr.msk.f32.gmra.mxu0 %vm2169_vm6, %v2406_v58  ;;  %2954 = vmatprep.subr.mxu1 %v2791_v59  ;;  %v2749_v58 = vld [vmem:[%s13044_s5 + $0x308] sm:$0xff] }
 0x16f   : > { %2878 = vmatpush1.msra.mxu0 %v2694_v60  ;;  %2955 = vmatpush1.msra.mxu1 %v2790_v39  ;;  %v2841_v59 = vld [vmem:[%s13044_s5 + $0x5e8] sm:$0xff]  ;;  %v2743_v60 = vld [vmem:[%s13044_s5 + $0x2d8] sm:$0xff] }
 0x170   : > { %2879 = vmatprep.subr.mxu0 %v2692_v63  ;;  %2956 = vmatprep.subr.mxu1 %v2788_v0  ;;  %v2839_v39 = vld [vmem:[%s13044_s5 + $0x5d8] sm:$0xff]  ;;  %v2742_v63 = vld [vmem:[%s13044_s5 + $0x2d0] sm:$0xff] }
 0x171   : > { %2880 = vmatpush1.msra.mxu0 %v2691_v4  ;;  %2957 = vmatpush1.msra.mxu1 %v2787_v6  ;;  %v2838_v0 = vld [vmem:[%s13044_s5 + $0x5d0] sm:$0xff]  ;;  %v2740_v4 = vld [vmem:[%s13044_s5 + $0x2c0] sm:$0xff] }
 0x172   : > { %2881 = vmatprep.subr.mxu0 %v2689_v9  ;;  %2958 = vmatprep.subr.mxu1 %v2785_v8  ;;  %v2836_v6 = vld [vmem:[%s13044_s5 + $0x5c0] sm:$0xff]  ;;  %v2739_v9 = vld [vmem:[%s13044_s5 + $0x2b8] sm:$0xff] }
 0x173   : > { %2882 = vmatpush1.msra.mxu0 %v2688_v11  ;;  %2959 = vmatpush1.msra.mxu1 %v2784_v14  ;;  %v2835_v8 = vld [vmem:[%s13044_s5 + $0x5b8] sm:$0xff]  ;;  %v2737_v11 = vld [vmem:[%s13044_s5 + $0x2a8] sm:$0xff] }
 0x174   : > { %2883 = vmatprep.subr.mxu0 %v2686_v23  ;;  %2960 = vmatprep.subr.mxu1 %v2782_v27  ;;  %v2833_v14 = vld [vmem:[%s13044_s5 + $0x5a8] sm:$0xff]  ;;  %v2736_v23 = vld [vmem:[%s13044_s5 + $0x2a0] sm:$0xff] }
 0x175   : > { %2884 = vmatpush1.msra.mxu0 %v2685_v32  ;;  %2961 = vmatpush1.msra.mxu1 %v2781_v18  ;;  %v2832_v27 = vld [vmem:[%s13044_s5 + $0x5a0] sm:$0xff]  ;;  %v2734_v32 = vld [vmem:[%s13044_s5 + $0x290] sm:$0xff] }
 0x176   : > { %2885 = vmatprep.subr.mxu0 %v2683_v20  ;;  %2962 = vmatprep.subr.mxu1 %v2779_v43  ;;  %v2830_v18 = vld [vmem:[%s13044_s5 + $0x590] sm:$0xff]  ;;  %v2733_v20 = vld [vmem:[%s13044_s5 + $0x288] sm:$0xff] }
 0x177   : > { %2886 = vmatpush1.msra.mxu0 %v2682_v2  ;;  %2963 = vmatpush1.msra.mxu1 %v2778_v5  ;;  %v2829_v43 = vld [vmem:[%s13044_s5 + $0x588] sm:$0xff]  ;;  %v2731_v2 = vld [vmem:[%s13044_s5 + $0x278] sm:$0xff] }
 0x178   : > { %2887 = vmatprep.subr.mxu0 %v2680_v42  ;;  %2964 = vmatprep.subr.mxu1 %v2776_v17  ;;  %v2827_v5 = vld [vmem:[%s13044_s5 + $0x578] sm:$0xff]  ;;  %v2730_v42 = vld [vmem:[%s13044_s5 + $0x270] sm:$0xff]  ;;  %v2728_v17 = vld [vmem:[%s13044_s5 + $0x260] sm:$0xff] }
 0x179   : > { %2888 = vmatpush1.msra.mxu0 %v2679_v1  ;;  %2965 = vmatpush1.msra.mxu1 %v2775_v52  ;;  %v2727_v1 = vld [vmem:[%s13044_s5 + $0x258] sm:$0xff]  ;;  %v2725_v52 = vld [vmem:[%s13044_s5 + $0x248] sm:$0xff] }
 0x17a   : > { %2889 = vmatprep.subr.mxu0 %v2677_v3  ;;  %2966 = vmatprep.subr.mxu1 %v2773_v7  ;;  %v2826_v3 = vld [vmem:[%s13044_s5 + $0x570] sm:$0xff]  ;;  %v2724_v7 = vld [vmem:[%s13044_s5 + $0x240] sm:$0xff] }
 0x17b   : > { %2890 = vmatpush1.msra.mxu0 %v2676_v26  ;;  %2967 = vmatpush1.msra.mxu1 %v2772_v35  ;;  %v2824_v26 = vld [vmem:[%s13044_s5 + $0x560] sm:$0xff]  ;;  %v2722_v35 = vld [vmem:[%s13044_s5 + $0x230] sm:$0xff] }
 0x17c   : > { %2891 = vmatprep.subr.mxu0 %v2674_v50  ;;  %2968 = vmatprep.subr.mxu1 %v2770_v30  ;;  %v2823_v50 = vld [vmem:[%s13044_s5 + $0x558] sm:$0xff]  ;;  %v2721_v30 = vld [vmem:[%s13044_s5 + $0x228] sm:$0xff] }
 0x17d   : > { %2892 = vmatpush1.msra.mxu0 %v2673_v21  ;;  %2969 = vmatpush1.msra.mxu1 %v2769_v10  ;;  %v2821_v21 = vld [vmem:[%s13044_s5 + $0x548] sm:$0xff]  ;;  %v2719_v10 = vld [vmem:[%s13044_s5 + $0x218] sm:$0xff] }
 0x17e   : > { %2893 = vmatprep.subr.mxu0 %v2671_v46  ;;  %2970 = vmatprep.subr.mxu1 %v2767_v38  ;;  %v2820_v46 = vld [vmem:[%s13044_s5 + $0x540] sm:$0xff]  ;;  %v2718_v38 = vld [vmem:[%s13044_s5 + $0x210] sm:$0xff] }
 0x17f   : > { %2894 = vmatpush1.msra.mxu0 %v2670_v12  ;;  %2971 = vmatpush1.msra.mxu1 %v2766_v22  ;;  %v2818_v12 = vld [vmem:[%s13044_s5 + $0x530] sm:$0xff]  ;;  %v2716_v22 = vld [vmem:[%s13044_s5 + $0x200] sm:$0xff] }
 0x180   : > { %2895 = vmatprep.subr.mxu0 %v2668_v29  ;;  %2972 = vmatprep.subr.mxu1 %v2764_v40  ;;  %v2817_v29 = vld [vmem:[%s13044_s5 + $0x528] sm:$0xff]  ;;  %v2715_v40 = vld [vmem:[%s13044_s5 + $0x1f8] sm:$0xff] }
 0x181   : > { %2896 = vmatpush1.msra.mxu0 %v2667_v41  ;;  %2973 = vmatpush1.msra.mxu1 %v2763_v13  ;;  %v2815_v41 = vld [vmem:[%s13044_s5 + $0x518] sm:$0xff]  ;;  %v2713_v13 = vld [vmem:[%s13044_s5 + $0x1e8] sm:$0xff] }
 0x182   : > { %2897 = vmatprep.subr.mxu0 %v2665_v24  ;;  %2974 = vmatprep.subr.mxu1 %v2761_v33  ;;  %v2712_v24 = vld [vmem:[%s13044_s5 + $0x1e0] sm:$0xff]  ;;  %v2710_v33 = vld [vmem:[%s13044_s5 + $0x1d0] sm:$0xff] }
 0x183   : > { %2898 = vmatpush1.msra.mxu0 %v2664_v15  ;;  %2975 = vmatpush1.msra.mxu1 %v2760_v45  ;;  %v2814_v15 = vld [vmem:[%s13044_s5 + $0x510] sm:$0xff]  ;;  %v2709_v45 = vld [vmem:[%s13044_s5 + $0x1c8] sm:$0xff] }
 0x184   : > { %2899 = vmatprep.subr.mxu0 %v2662_v16  ;;  %2976 = vmatprep.subr.mxu1 %v2758_v44  ;;  %v2812_v16 = vld [vmem:[%s13044_s5 + $0x500] sm:$0xff]  ;;  %v2707_v44 = vld [vmem:[%s13044_s5 + $0x1b8] sm:$0xff] }
 0x185   : > { %2900 = vmatpush1.msra.mxu0 %v2661_v47  ;;  %2977 = vmatpush1.msra.mxu1 %v2757_v49  ;;  %v2811_v47 = vld [vmem:[%s13044_s5 + $0x4f8] sm:$0xff]  ;;  %v2706_v49 = vld [vmem:[%s13044_s5 + $0x1b0] sm:$0xff] }
 0x186   : > { %2901 = vmatprep.subr.mxu0 %v2659_v25  ;;  %2978 = vmatprep.subr.mxu1 %v2755_v51  ;;  %v2809_v25 = vld [vmem:[%s13044_s5 + $0x4e8] sm:$0xff]  ;;  %v2704_v51 = vld [vmem:[%s13044_s5 + $0x1a0] sm:$0xff] }
 0x187   : > { %2902 = vmatpush1.msra.mxu0 %v2658_v53  ;;  %2979 = vmatpush1.msra.mxu1 %v2754_v28  ;;  %v2703_v53 = vld [vmem:[%s13044_s5 + $0x198] sm:$0xff]  ;;  %v2808_v28 = vld [vmem:[%s13044_s5 + $0x4e0] sm:$0xff] }
 0x188   : > { %2903 = vmatprep.subr.mxu0 %v2656_v54  ;;  %2980 = vmatprep.subr.mxu1 %v2752_v31  ;;  %v2701_v54 = vld [vmem:[%s13044_s5 + $0x188] sm:$0xff]  ;;  %v2806_v31 = vld [vmem:[%s13044_s5 + $0x4d0] sm:$0xff] }
 0x189   : > { %2904 = vmatpush1.msra.mxu0 %v2655_v56  ;;  %2981 = vmatpush1.msra.mxu1 %v2751_v57  ;;  %v2700_v56 = vld [vmem:[%s13044_s5 + $0x180] sm:$0xff]  ;;  %v2805_v57 = vld [vmem:[%s13044_s5 + $0x4c8] sm:$0xff] }
 0x18a   : > { %2905 = vmatprep.subr.mxu0 %v2653_v19  ;;  %2982 = vmatprep.subr.mxu1 %v2749_v58  ;;  %v2866_v19 = vld [vmem:[%s13044_s5 + $0x6b0] sm:$0xff]  ;;  %v2803_v58 = vld [vmem:[%s13044_s5 + $0x4b8] sm:$0xff] }
 0x18b   : > { %2906 = vmatpush1.msra.mxu0 %v2652_v61  ;;  %2983 = vmatpush1.msra.mxu1 %v2748_v62  ;;  %v2802_v61 = vld [vmem:[%s13044_s5 + $0x4b0] sm:$0xff]  ;;  %v2800_v62 = vld [vmem:[%s13044_s5 + $0x4a0] sm:$0xff] }
 0x18c   : > { %2907 = vmatprep.subr.mxu0 %v2746_v36  ;;  %2984 = vmatprep.subr.mxu1 %v2842_v48  ;;  %v2799_v36 = vld [vmem:[%s13044_s5 + $0x498] sm:$0xff]  ;;  %v2797_v48 = vld [vmem:[%s13044_s5 + $0x488] sm:$0xff] }
 0x18d   : > { %2908 = vmatpush2.msra.mxu0 %v2745_v34  ;;  %2985 = vmatpush2.msra.mxu1 %v2841_v59  ;;  %v2796_v34 = vld [vmem:[%s13044_s5 + $0x480] sm:$0xff]  ;;  %v2747_v59 = vld [vmem:[%s13044_s5 + $0x2f8] sm:$0xff] }
 0x18e   : > { %2909 = vmatprep.subr.mxu0 %v2743_v60  ;;  %2986 = vmatprep.subr.mxu1 %v2839_v39 }
 0x18f   : > { %2910 = vmatpush2.msra.mxu0 %v2742_v63  ;;  %2987 = vmatpush2.msra.mxu1 %v2838_v0 }
 0x190   : > { %2911 = vmatprep.subr.mxu0 %v2740_v4  ;;  %2988 = vmatprep.subr.mxu1 %v2836_v6 }
 0x191   : > { %2912 = vmatpush2.msra.mxu0 %v2739_v9  ;;  %2989 = vmatpush2.msra.mxu1 %v2835_v8 }
 0x192   : > { %2913 = vmatprep.subr.mxu0 %v2737_v11  ;;  %2990 = vmatprep.subr.mxu1 %v2833_v14 }
 0x193   : > { %2914 = vmatpush2.msra.mxu0 %v2736_v23  ;;  %2991 = vmatpush2.msra.mxu1 %v2832_v27 }
 0x194   : > { %2915 = vmatprep.subr.mxu0 %v2734_v32  ;;  %2992 = vmatprep.subr.mxu1 %v2830_v18  ;;  %v2865_v18 = vld [vmem:[%s13044_s5 + $0x6a8] sm:$0xff] }
 0x195   : > { %2916 = vmatpush2.msra.mxu0 %v2733_v20  ;;  %2993 = vmatpush2.msra.mxu1 %v2829_v43  ;;  %v2863_v20 = vld [vmem:[%s13044_s5 + $0x698] sm:$0xff] }
 0x196   : > { %2917 = vmatprep.subr.mxu0 %v2731_v2  ;;  %2994 = vmatprep.subr.mxu1 %v2827_v5  ;;  %v2862_v2 = vld [vmem:[%s13044_s5 + $0x690] sm:$0xff]  ;;  %v2860_v5 = vld [vmem:[%s13044_s5 + $0x680] sm:$0xff] }
 0x197   : > { %2918 = vmatpush2.msra.mxu0 %v2730_v42  ;;  %2995 = vmatpush2.msra.mxu1 %v2826_v3  ;;  %v2857_v3 = vld [vmem:[%s13044_s5 + $0x668] sm:$0xff] }
 0x198   : > { %2919 = vmatprep.subr.mxu0 %v2728_v17  ;;  %2996 = vmatprep.subr.mxu1 %v2824_v26 }
 0x199   : > { %2920 = vmatpush2.msra.mxu0 %v2727_v1  ;;  %2997 = vmatpush2.msra.mxu1 %v2823_v50  ;;  %v2859_v1 = vld [vmem:[%s13044_s5 + $0x678] sm:$0xff]  ;;  %v2854_v50 = vld [vmem:[%s13044_s5 + $0x650] sm:$0xff] }
 0x19a   : > { %2921 = vmatprep.subr.mxu0 %v2725_v52  ;;  %2998 = vmatprep.subr.mxu1 %v2821_v21  ;;  %v2853_v21 = vld [vmem:[%s13044_s5 + $0x648] sm:$0xff] }
 0x19b   : > { %2922 = vmatpush2.msra.mxu0 %v2724_v7  ;;  %2999 = vmatpush2.msra.mxu1 %v2820_v46  ;;  %v2851_v46 = vld [vmem:[%s13044_s5 + $0x638] sm:$0xff] }
 0x19c   : > { %2923 = vmatprep.subr.mxu0 %v2722_v35  ;;  %3000 = vmatprep.subr.mxu1 %v2818_v12  ;;  %v2856_v35 = vld [vmem:[%s13044_s5 + $0x660] sm:$0xff] }
 0x19d   : > { %2924 = vmatpush2.msra.mxu0 %v2721_v30  ;;  %3001 = vmatpush2.msra.mxu1 %v2817_v29  ;;  %v2850_v29 = vld [vmem:[%s13044_s5 + $0x630] sm:$0xff] }
 0x19e   : > { %2925 = vmatprep.subr.mxu0 %v2719_v10  ;;  %3002 = vmatprep.subr.mxu1 %v2815_v41  ;;  %v2744_v41 = vld [vmem:[%s13044_s5 + $0x2e0] sm:$0xff] }
 0x19f   : > { %2926 = vmatpush2.msra.mxu0 %v2718_v38  ;;  %3003 = vmatpush2.msra.mxu1 %v2814_v15 }
 0x1a0   : > { %2927 = vmatprep.subr.mxu0 %v2716_v22  ;;  %3004 = vmatprep.subr.mxu1 %v2812_v16  ;;  %v2699_v22 = vld [vmem:[%s13044_s5 + $0x178] sm:$0xff] }
 0x1a1   : > { %2928 = vmatpush2.msra.mxu0 %v2715_v40  ;;  %3005 = vmatpush2.msra.mxu1 %v2811_v47  ;;  %v2693_v47 = vld [vmem:[%s13044_s5 + $0x148] sm:$0xff] }
 0x1a2   : > { %2929 = vmatprep.subr.mxu0 %v2713_v13  ;;  %3006 = vmatprep.subr.mxu1 %v2809_v25  ;;  %v2848_v13 = vld [vmem:[%s13044_s5 + $0x620] sm:$0xff]  ;;  %v2845_v25 = vld [vmem:[%s13044_s5 + $0x608] sm:$0xff] }
 0x1a3   : > { %2930 = vmatpush2.msra.mxu0 %v2712_v24  ;;  %3007 = vmatpush2.msra.mxu1 %v2808_v28  ;;  %v2690_v28 = vld [vmem:[%s13044_s5 + $0x130] sm:$0xff] }
 0x1a4   : > { %2931 = vmatprep.subr.mxu0 %v2710_v33  ;;  %3008 = vmatprep.subr.mxu1 %v2806_v31  ;;  %v2696_v33 = vld [vmem:[%s13044_s5 + $0x160] sm:$0xff]  ;;  %v2735_v31 = vld [vmem:[%s13044_s5 + $0x298] sm:$0xff] }
 0x1a5   : > { %2932 = vmatpush2.msra.mxu0 %v2709_v45  ;;  %3009 = vmatpush2.msra.mxu1 %v2805_v57  ;;  %v2741_v45 = vld [vmem:[%s13044_s5 + $0x2c8] sm:$0xff]  ;;  %v2687_v57 = vld [vmem:[%s13044_s5 + $0x118] sm:$0xff] }
 0x1a6   : > { %2933 = vmatprep.subr.mxu0 %v2707_v44  ;;  %3010 = vmatprep.subr.mxu1 %v2803_v58  ;;  %v2847_v44 = vld [vmem:[%s13044_s5 + $0x618] sm:$0xff]  ;;  %v2732_v58 = vld [vmem:[%s13044_s5 + $0x280] sm:$0xff] }
 0x1a7   : > { %2934 = vmatpush2.msra.mxu0 %v2706_v49  ;;  %3011 = vmatpush2.msra.mxu1 %v2802_v61  ;;  %v2840_v61 = vld [vmem:[%s13044_s5 + $0x5e0] sm:$0xff] }
 0x1a8   : > { %2935 = vmatprep.subr.mxu0 %v2704_v51  ;;  %3012 = vmatprep.subr.mxu1 %v2800_v62  ;;  %v2738_v51 = vld [vmem:[%s13044_s5 + $0x2b0] sm:$0xff]  ;;  %v2684_v62 = vld [vmem:[%s13044_s5 + $0x100] sm:$0xff] }
 0x1a9   : > { %2936 = vmatpush2.msra.mxu0 %v2703_v53  ;;  %3013 = vmatpush2.msra.mxu1 %v2799_v36  ;;  %v2844_v53 = vld [vmem:[%s13044_s5 + $0x600] sm:$0xff] }
 0x1aa   : > { %2937 = vmatprep.subr.mxu0 %v2701_v54  ;;  %3014 = vmatprep.subr.mxu1 %v2797_v48  ;;  %v2792_v36 = vld [vmem:[%s13044_s5 + $0x460] sm:$0xff]  ;;  %v2729_v48 = vld [vmem:[%s13044_s5 + $0x268] sm:$0xff] }
 0x1ab   : > { %2938 = vmatpush2.msra.mxu0 %v2700_v56  ;;  %3015 = vmatpush2.msra.mxu1 %v2796_v34  ;;  %v2843_v56 = vld [vmem:[%s13044_s5 + $0x5f8] sm:$0xff]  ;;  %v2837_v34 = vld [vmem:[%s13044_s5 + $0x5c8] sm:$0xff] }
 0x1ac   : > { %3045 = vmatprep.subr.mxu0 %v2866_v19  ;;  %7585 = vmatprep.subr.mxu1 %v2747_v59  ;;  %v2795_v19 = vld [vmem:[%s13044_s5 + $0x478] sm:$0xff] }
 0x217   : > { %v2319_v60 = vpop.f32.mrf.mxu1 }
 0x218   : > { %v2242_v39 = vpop.f32.mrf.mxu0 }
 0x219   : > { %v2321_v63 = vpop.f32.mrf.mxu1 }
 0x21a   : > { %v2244_v0 = vpop.f32.mrf.mxu0 }
 0x21b   : > { %v2325_v4 = vpop.f32.mrf.mxu1 }
 0x21d   : > { %v2327_v6 = vpop.f32.mrf.mxu1 }
 0x21e   : > { %v2248_v9 = vpop.f32.mrf.mxu0 }
 0x220   : > { %v2479_v8 = vpop.f32.mrf.mxu1  ;;  %v2250_v11 = vpop.f32.mrf.mxu0 }
 0x221   : > { %v9498_v27 = vmax.f32 %v2242_v39, %v2479_v8  ;;  %v2789_v39 = vld [vmem:[%s13044_s5 + $0x448] sm:$0xff]  ;;  %v2831_v8 = vld [vmem:[%s13044_s5 + $0x598] sm:$0xff] }
 0x222   : > { %v2481_v14 = vpop.f32.mrf.mxu1 }
 0x223   : > { %v9496_v23 = vmax.f32 %v2244_v0, %v2481_v14  ;;  %v2834_v0 = vld [vmem:[%s13044_s5 + $0x5b0] sm:$0xff]  ;;  %v2783_v14 = vld [vmem:[%s13044_s5 + $0x418] sm:$0xff] }
 0x224   : > { %v9500_v32 = vpop.f32.mrf.mxu0 }
 0x225   : > { %2939 = vmatprep.mubr.f32.mxu0 %v9496_v23 }
 0x226   : > { %v2485_v43 = vpop.f32.mrf.mxu1  ;;  %2940 = vmatmul.mubr.f32.vlgmr.msra.gmra.mxu0 %v9498_v27  ;;  %v2396_v42 = vpop.f32.mrf.mxu0 }
 0x227   : > { %3046 = vmatpush1.msra.mxu0 %v2865_v18  ;;  %v9524_v7 = vmax.f32 %v2248_v9, %v2485_v43  ;;  %v2723_v9 = vld [vmem:[%s13044_s5 + $0x238] sm:$0xff]  ;;  %v2828_v18 = vld [vmem:[%s13044_s5 + $0x580] sm:$0xff] }
 0x228   : > { %v2487_v17 = vpop.f32.mrf.mxu1  ;;  %3047 = vmatprep.subr.mxu0 %v2863_v20  ;;  %v2672_v20 = vld [vmem:[%s13044_s5 + $0xa0] sm:$0xff] }
 0x229   : > { %v9519_v52 = vmax.f32 %v2250_v11, %v2487_v17  ;;  %3048 = vmatpush1.msra.mxu0 %v2862_v2  ;;  %v2675_v11 = vld [vmem:[%s13044_s5 + $0xb8] sm:$0xff]  ;;  %v2780_v43 = vld [vmem:[%s13044_s5 + $0x400] sm:$0xff]  ;;  %v2717_v2 = vld [vmem:[%s13044_s5 + $0x208] sm:$0xff] }
 0x22a   : > { %v2556_v26 = vpop.f32.mrf.mxu0  ;;  %3049 = vmatprep.subr.mxu0 %v2860_v5  ;;  %v8041_v40 = vpop.f32.mrf.mxu1  ;;  %v2825_v5 = vld [vmem:[%s13044_s5 + $0x568] sm:$0xff] }
 0x22b   : > { %2945 = vmatprep.mubr.f32.mxu0 %v9519_v52  ;;  %3050 = vmatpush1.msra.mxu0 %v2859_v1  ;;  %v9543_v38 = vmax.f32 %v2319_v60, %v2556_v26  ;;  %v9625_v59 = vmax.f32 %v9500_v32, %v8041_v40  ;;  %v2681_v60 = vld [vmem:[%s13044_s5 + $0xe8] sm:$0xff]  ;;  %v2720_v32 = vld [vmem:[%s13044_s5 + $0x220] sm:$0xff]  ;;  %v2714_v1 = vld [vmem:[%s13044_s5 + $0x1f0] sm:$0xff] }
 0x22c   : > { %v2558_v30 = vpop.f32.mrf.mxu0  ;;  %2946 = vmatmul.mubr.f32.gmra.mxu0 %v9524_v7  ;;  %3051 = vmatprep.subr.mxu0 %v2857_v3  ;;  %v2633_v49 = vpop.f32.mrf.mxu1  ;;  %v2777_v17 = vld [vmem:[%s13044_s5 + $0x3e8] sm:$0xff]  ;;  %v2822_v3 = vld [vmem:[%s13044_s5 + $0x550] sm:$0xff]  ;;  %v2768_v40 = vld [vmem:[%s13044_s5 + $0x3a0] sm:$0xff] }
 0x22d   : > { %v9537_v10 = vmax.f32 %v2321_v63, %v2558_v30  ;;  %3052 = vmatpush1.msra.mxu0 %v2856_v35  ;;  %3093 = vmatprep.mubr.f32.mxu0 %v13042_v55  ;;  %v9589_v54 = vmax.f32 %v2396_v42, %v2633_v49  ;;  %v2726_v63 = vld [vmem:[%s13044_s5 + $0x250] sm:$0xff]  ;;  %v2669_v42 = vld [vmem:[%s13044_s5 + $0x88] sm:$0xff]  ;;  %v2819_v30 = vld [vmem:[%s13044_s5 + $0x538] sm:$0xff] }
 0x22e   : > { %v2562_v12 = vpop.f32.mrf.mxu0  ;;  %3053 = vmatprep.subr.mxu0 %v2854_v50  ;;  %v2666_v26 = vld [vmem:[%s13044_s5 + $0x70] sm:$0xff]  ;;  %v2711_v50 = vld [vmem:[%s13044_s5 + $0x1d8] sm:$0xff] }
 0x22f   : > { %3016 = vmatprep.mubr.f32.mxu1 %v9537_v10  ;;  %3054 = vmatpush1.msra.mxu0 %v2853_v21  ;;  %v9567_v16 = vmax.f32 %v2325_v4, %v2562_v12  ;;  %v2678_v4 = vld [vmem:[%s13044_s5 + $0xd0] sm:$0xff]  ;;  %v2663_v21 = vld [vmem:[%s13044_s5 + $0x58] sm:$0xff]  ;;  %v2708_v12 = vld [vmem:[%s13044_s5 + $0x1c0] sm:$0xff] }
 0x230   : > { %v2564_v24 = vpop.f32.mrf.mxu0  ;;  %3017 = vmatmul.mubr.f32.vlgmr.msra.gmra.mxu1 %v9543_v38  ;;  %3055 = vmatprep.subr.mxu0 %v2851_v46  ;;  %v2774_v35 = vld [vmem:[%s13044_s5 + $0x3d0] sm:$0xff]  ;;  %v2771_v46 = vld [vmem:[%s13044_s5 + $0x3b8] sm:$0xff] }
 0x231   : > { %v9562_v15 = vmax.f32 %v2327_v6, %v2564_v24  ;;  %7586 = vmatpush3.msra.mxu1 %v2699_v22  ;;  %3056 = vmatpush1.msra.mxu0 %v2850_v29  ;;  %v2786_v6 = vld [vmem:[%s13044_s5 + $0x430] sm:$0xff]  ;;  %v2816_v22 = vld [vmem:[%s13044_s5 + $0x520] sm:$0xff]  ;;  %v2657_v24 = vld [vmem:[%s13044_s5 + $0x28] sm:$0xff] }
 0x232   : > { %7587 = vmatprep.subr.mxu1 %v2744_v41  ;;  %3057 = vmatprep.subr.mxu0 %v2848_v13  ;;  %v2660_v29 = vld [vmem:[%s13044_s5 + $0x40] sm:$0xff]  ;;  %v2705_v41 = vld [vmem:[%s13044_s5 + $0x1a8] sm:$0xff]  ;;  %v2762_v49 = vld [vmem:[%s13044_s5 + $0x370] sm:$0xff] }
 0x233   : > { %7588 = vmatpush3.msra.mxu1 %v2696_v33  ;;  %3022 = vmatprep.mubr.f32.mxu1 %v9562_v15  ;;  %v2813_v13 = vld [vmem:[%s13044_s5 + $0x508] sm:$0xff] }
 0x234   : > { %7589 = vmatprep.subr.mxu1 %v2741_v45  ;;  %3023 = vmatmul.mubr.f32.gmra.mxu1 %v9567_v16  ;;  %v2765_v33 = vld [vmem:[%s13044_s5 + $0x388] sm:$0xff]  ;;  %v2702_v45 = vld [vmem:[%s13044_s5 + $0x190] sm:$0xff] }
 0x235   : > { %3058 = vmatpush1.msra.mxu0 %v2847_v44  ;;  %7590 = vmatpush3.msra.mxu1 %v2693_v47  ;;  %v2810_v44 = vld [vmem:[%s13044_s5 + $0x4f0] sm:$0xff] }
 0x236   : > { %3059 = vmatprep.subr.mxu0 %v2845_v25  ;;  %7591 = vmatprep.subr.mxu1 %v2738_v51  ;;  %v2654_v47 = vld [vmem:[%s13044_s5 + $0x10] sm:$0xff]  ;;  %v2807_v25 = vld [vmem:[%s13044_s5 + $0x4d8] sm:$0xff] }
 0x237   : > { %3170 = vmatprep.mubr.f32.mxu1 %v9496_v23  ;;  %3060 = vmatpush1.msra.mxu0 %v2844_v53  ;;  %v2867_v51 = vld [vmem:[%s13044_s5 + $0x6b8] sm:$0xff] }
 0x238   : > { %7592 = vmatpush3.msra.mxu1 %v2690_v28  ;;  %7122 = vmatmul.mubr.msk.f32.vlgmr.msra.gmra.mxu0 %vm2868_vm7, %v9589_v54  ;;  %v2759_v53 = vld [vmem:[%s13044_s5 + $0x358] sm:$0xff]  ;;  %v2804_v28 = vld [vmem:[%s13044_s5 + $0x4c0] sm:$0xff] }
 0x239   : > { %7593 = vmatprep.subr.mxu1 %v2735_v31  ;;  %7623 = vmatprep.subr.mxu0 %v2843_v56  ;;  %v2864_v31 = vld [vmem:[%s13044_s5 + $0x6a0] sm:$0xff] }
 0x23a   : > { %7594 = vmatpush3.msra.mxu1 %v2687_v57  ;;  %7624 = vmatpush3.msra.mxu0 %v2795_v19  ;;  %v2756_v56 = vld [vmem:[%s13044_s5 + $0x340] sm:$0xff]  ;;  %v2801_v57 = vld [vmem:[%s13044_s5 + $0x4a8] sm:$0xff] }
 0x23b   : > { %7595 = vmatprep.subr.mxu1 %v2732_v58  ;;  %7625 = vmatprep.subr.mxu0 %v2840_v61  ;;  %v2861_v19 = vld [vmem:[%s13044_s5 + $0x688] sm:$0xff]  ;;  %v2798_v61 = vld [vmem:[%s13044_s5 + $0x490] sm:$0xff] }
 0x23c   : > { %3099 = vmatprep.mubr.f32.mxu0 %v13042_v55  ;;  %7596 = vmatpush3.msra.mxu1 %v2684_v62  ;;  %v2753_v58 = vld [vmem:[%s13044_s5 + $0x328] sm:$0xff]  ;;  %v2858_v62 = vld [vmem:[%s13044_s5 + $0x670] sm:$0xff] }
 0x23d   : > { %7626 = vmatpush3.msra.mxu0 %v2792_v36  ;;  %7597 = vmatprep.subr.mxu1 %v2729_v48  ;;  %v2750_v36 = vld [vmem:[%s13044_s5 + $0x310] sm:$0xff]  ;;  %v2855_v48 = vld [vmem:[%s13044_s5 + $0x658] sm:$0xff] }
 0x23e   : > { %7123 = vmatmul.mubr.msk.f32.gmra.mxu0 %vm2868_vm7, %v9625_v59  ;;  %7627 = vmatprep.subr.mxu0 %v2837_v34  ;;  %v3377_v34 = vld [vmem:[%s12970_s6 + $0x170] sm:$0xff] }
 0x23f   : > { %7598 = vmatpush3.msra.mxu1 %v2681_v60  ;;  %7628 = vmatpush3.msra.mxu0 %v2789_v39  ;;  %v3376_v60 = vld [vmem:[%s12970_s6 + $0x168] sm:$0xff]  ;;  %v2852_v39 = vld [vmem:[%s13044_s5 + $0x640] sm:$0xff] }
 0x240   : > { %3245 = vmatprep.mubr.f32.mxu0 %v9537_v10  ;;  %7599 = vmatprep.subr.mxu1 %v2726_v63  ;;  %v3374_v63 = vld [vmem:[%s12970_s6 + $0x158] sm:$0xff] }
 0x241   : > { %7629 = vmatprep.subr.mxu0 %v2834_v0  ;;  %7600 = vmatpush3.msra.mxu1 %v2678_v4  ;;  %v3373_v0 = vld [vmem:[%s12970_s6 + $0x150] sm:$0xff]  ;;  %v2849_v4 = vld [vmem:[%s13044_s5 + $0x628] sm:$0xff] }
 0x242   : > { %7630 = vmatpush3.msra.mxu0 %v2786_v6  ;;  %7601 = vmatprep.subr.mxu1 %v2723_v9  ;;  %v3371_v6 = vld [vmem:[%s12970_s6 + $0x140] sm:$0xff]  ;;  %v3370_v9 = vld [vmem:[%s12970_s6 + $0x138] sm:$0xff] }
 0x243   : > { %7631 = vmatprep.subr.mxu0 %v2831_v8  ;;  %7602 = vmatpush3.msra.mxu1 %v2675_v11  ;;  %v2846_v8 = vld [vmem:[%s13044_s5 + $0x610] sm:$0xff]  ;;  %v3368_v11 = vld [vmem:[%s12970_s6 + $0x128] sm:$0xff] }
 0x244   : > { %7632 = vmatpush3.msra.mxu0 %v2783_v14  ;;  %7603 = vmatprep.subr.mxu1 %v2720_v32  ;;  %v3367_v14 = vld [vmem:[%s12970_s6 + $0x120] sm:$0xff]  ;;  %v3365_v32 = vld [vmem:[%s12970_s6 + $0x110] sm:$0xff] }
 0x245   : > { %7633 = vmatprep.subr.mxu0 %v2828_v18  ;;  %7604 = vmatpush3.msra.mxu1 %v2672_v20  ;;  %v3473_v18 = vld [vmem:[%s12970_s6 + $0x470] sm:$0xff]  ;;  %v3364_v20 = vld [vmem:[%s12970_s6 + $0x108] sm:$0xff] }
 0x246   : > { %7634 = vmatpush3.msra.mxu0 %v2780_v43  ;;  %7605 = vmatprep.subr.mxu1 %v2717_v2  ;;  %v3472_v43 = vld [vmem:[%s12970_s6 + $0x468] sm:$0xff]  ;;  %v3362_v2 = vld [vmem:[%s12970_s6 + $0xf8] sm:$0xff] }
 0x247   : > { %7635 = vmatprep.subr.mxu0 %v2825_v5  ;;  %7606 = vmatpush3.msra.mxu1 %v2669_v42  ;;  %v3470_v5 = vld [vmem:[%s12970_s6 + $0x458] sm:$0xff]  ;;  %v3361_v42 = vld [vmem:[%s12970_s6 + $0xf0] sm:$0xff] }
 0x248   : > { %7636 = vmatpush3.msra.mxu0 %v2777_v17  ;;  %7607 = vmatprep.subr.mxu1 %v2714_v1  ;;  %v3469_v17 = vld [vmem:[%s12970_s6 + $0x450] sm:$0xff]  ;;  %v3359_v1 = vld [vmem:[%s12970_s6 + $0xe0] sm:$0xff] }
 0x249   : > { %7637 = vmatprep.subr.mxu0 %v2822_v3  ;;  %7608 = vmatpush3.msra.mxu1 %v2666_v26  ;;  %v3467_v3 = vld [vmem:[%s12970_s6 + $0x440] sm:$0xff]  ;;  %v3358_v26 = vld [vmem:[%s12970_s6 + $0xd8] sm:$0xff] }
 0x24a   : > { %7638 = vmatpush3.msra.mxu0 %v2774_v35  ;;  %7609 = vmatprep.subr.mxu1 %v2711_v50  ;;  %v3466_v35 = vld [vmem:[%s12970_s6 + $0x438] sm:$0xff]  ;;  %v3356_v50 = vld [vmem:[%s12970_s6 + $0xc8] sm:$0xff] }
 0x24b   : > { %7639 = vmatprep.subr.mxu0 %v2819_v30  ;;  %7610 = vmatpush3.msra.mxu1 %v2663_v21  ;;  %v3464_v30 = vld [vmem:[%s12970_s6 + $0x428] sm:$0xff]  ;;  %v3355_v21 = vld [vmem:[%s12970_s6 + $0xc0] sm:$0xff] }
 0x24c   : > { %7640 = vmatpush3.msra.mxu0 %v2771_v46  ;;  %7611 = vmatprep.subr.mxu1 %v2708_v12  ;;  %v3463_v46 = vld [vmem:[%s12970_s6 + $0x420] sm:$0xff]  ;;  %v3353_v12 = vld [vmem:[%s12970_s6 + $0xb0] sm:$0xff] }
 0x24d   : > { %7641 = vmatprep.subr.mxu0 %v2816_v22  ;;  %7612 = vmatpush3.msra.mxu1 %v2660_v29  ;;  %v3461_v22 = vld [vmem:[%s12970_s6 + $0x410] sm:$0xff]  ;;  %v3352_v29 = vld [vmem:[%s12970_s6 + $0xa8] sm:$0xff] }
 0x24e   : > { %7642 = vmatpush3.msra.mxu0 %v2768_v40  ;;  %7613 = vmatprep.subr.mxu1 %v2705_v41  ;;  %v3460_v40 = vld [vmem:[%s12970_s6 + $0x408] sm:$0xff]  ;;  %v3350_v41 = vld [vmem:[%s12970_s6 + $0x98] sm:$0xff] }
 0x24f   : > { %7643 = vmatprep.subr.mxu0 %v2813_v13  ;;  %7614 = vmatpush3.msra.mxu1 %v2657_v24  ;;  %v3458_v13 = vld [vmem:[%s12970_s6 + $0x3f8] sm:$0xff]  ;;  %v3349_v24 = vld [vmem:[%s12970_s6 + $0x90] sm:$0xff] }
 0x250   : > { %7644 = vmatpush3.msra.mxu0 %v2765_v33  ;;  %7615 = vmatprep.subr.mxu1 %v2702_v45  ;;  %v3457_v33 = vld [vmem:[%s12970_s6 + $0x3f0] sm:$0xff]  ;;  %v3347_v45 = vld [vmem:[%s12970_s6 + $0x80] sm:$0xff] }
 0x251   : > { %7645 = vmatprep.subr.mxu0 %v2810_v44  ;;  %7616 = vmatpush3.msra.mxu1 %v2654_v47  ;;  %v3455_v44 = vld [vmem:[%s12970_s6 + $0x3e0] sm:$0xff]  ;;  %v3346_v47 = vld [vmem:[%s12970_s6 + $0x78] sm:$0xff] }
 0x252   : > { %7646 = vmatpush3.msra.mxu0 %v2762_v49  ;;  %3171 = vmatmul.mubr.f32.vlgmr.msra.gmra.mxu1 %v9498_v27  ;;  %v3454_v49 = vld [vmem:[%s12970_s6 + $0x3d8] sm:$0xff] }
 0x253   : > { %7647 = vmatprep.subr.mxu0 %v2807_v25  ;;  %8042 = vmatprep.subr.mxu1 %v2867_v51  ;;  %v3344_v25 = vld [vmem:[%s12970_s6 + $0x68] sm:$0xff] }
 0x254   : > { %3175 = vmatprep.mubr.f32.mxu1 %v9519_v52  ;;  %7648 = vmatpush3.msra.mxu0 %v2759_v53  ;;  %v3343_v53 = vld [vmem:[%s12970_s6 + $0x60] sm:$0xff] }
 0x255   : > { %8043 = vmatpush3.msra.mxu1 %v2867_v51  ;;  %7649 = vmatprep.subr.mxu0 %v2804_v28  ;;  %v3452_v51 = vld [vmem:[%s12970_s6 + $0x3c8] sm:$0xff]  ;;  %v3451_v28 = vld [vmem:[%s12970_s6 + $0x3c0] sm:$0xff] }
 0x256   : > { %8044 = vmatprep.subr.mxu1 %v2864_v31  ;;  %7650 = vmatpush3.msra.mxu0 %v2756_v56  ;;  %v3449_v56 = vld [vmem:[%s12970_s6 + $0x3b0] sm:$0xff] }
 0x257   : > { %8045 = vmatpush3.msra.mxu1 %v2864_v31  ;;  %7651 = vmatprep.subr.mxu0 %v2801_v57  ;;  %v3341_v31 = vld [vmem:[%s12970_s6 + $0x50] sm:$0xff]  ;;  %v3340_v57 = vld [vmem:[%s12970_s6 + $0x48] sm:$0xff] }
 0x258   : > { %3176 = vmatmul.mubr.f32.gmra.mxu1 %v9524_v7  ;;  %8046 = vmatprep.subr.mxu1 %v2861_v19 }
 0x259   : > { %7652 = vmatpush3.msra.mxu0 %v2753_v58  ;;  %8047 = vmatpush3.msra.mxu1 %v2861_v19  ;;  %v3448_v19 = vld [vmem:[%s12970_s6 + $0x3a8] sm:$0xff]  ;;  %v3338_v58 = vld [vmem:[%s12970_s6 + $0x38] sm:$0xff] }
 0x25a   : > { %8058 = vmatprep.mubr.msk.f32.mxu1 %vm2868_vm7, %v9589_v54  ;;  %7653 = vmatprep.subr.mxu0 %v2798_v61  ;;  %v3446_v61 = vld [vmem:[%s12970_s6 + $0x398] sm:$0xff] }
 0x25b   : > { %8048 = vmatprep.subr.mxu1 %v2858_v62  ;;  %7654 = vmatpush3.msra.mxu0 %v2750_v36  ;;  %v3445_v36 = vld [vmem:[%s12970_s6 + $0x390] sm:$0xff] }
 0x25c   : > { %8049 = vmatpush3.msra.mxu1 %v2858_v62  ;;  %3246 = vmatmul.mubr.f32.vlgmr.msra.gmra.mxu0 %v9543_v38  ;;  %v3337_v62 = vld [vmem:[%s12970_s6 + $0x30] sm:$0xff] }
 0x25d   : > { %8050 = vmatprep.subr.mxu1 %v2855_v48  ;;  %3547 = vmatprep.subr.mxu0 %v3377_v34  ;;  %v3443_v34 = vld [vmem:[%s12970_s6 + $0x380] sm:$0xff] }
 0x25e   : > { %3250 = vmatprep.mubr.f32.mxu0 %v9562_v15  ;;  %8051 = vmatpush3.msra.mxu1 %v2855_v48  ;;  %v3335_v48 = vld [vmem:[%s12970_s6 + $0x20] sm:$0xff] }
 0x25f   : > { %3548 = vmatpush1.msra.mxu0 %v3376_v60  ;;  %8052 = vmatprep.subr.mxu1 %v2852_v39  ;;  %v3334_v60 = vld [vmem:[%s12970_s6 + $0x18] sm:$0xff] }
 0x260   : > { %3549 = vmatprep.subr.mxu0 %v3374_v63  ;;  %8053 = vmatpush3.msra.mxu1 %v2852_v39  ;;  %v3442_v39 = vld [vmem:[%s12970_s6 + $0x378] sm:$0xff]  ;;  %v3332_v63 = vld [vmem:[%s12970_s6 + $0x8] sm:$0xff] }
 0x261   : > { %3550 = vmatpush1.msra.mxu0 %v3373_v0  ;;  %8054 = vmatprep.subr.mxu1 %v2849_v4  ;;  %v3440_v0 = vld [vmem:[%s12970_s6 + $0x368] sm:$0xff] }
 0x262   : > { %3251 = vmatmul.mubr.f32.gmra.mxu0 %v9567_v16  ;;  %3551 = vmatprep.subr.mxu0 %v3371_v6  ;;  %v3439_v6 = vld [vmem:[%s12970_s6 + $0x360] sm:$0xff] }
 0x263   : > { %8055 = vmatpush3.msra.mxu1 %v2849_v4  ;;  %3552 = vmatpush1.msra.mxu0 %v3370_v9  ;;  %v3331_v4 = vld [vmem:[%s12970_s6] sm:$0xff]  ;;  %v3425_v9 = vld [vmem:[%s12970_s6 + $0x2f0] sm:$0xff] }
 0x264   : > { %3611 = vmatprep.mubr.f32.mxu0 %v9496_v23  ;;  %8056 = vmatprep.subr.mxu1 %v2846_v8 }
 0x265   : > { %3553 = vmatprep.subr.mxu0 %v3368_v11  ;;  %8057 = vmatpush3.msra.mxu1 %v2846_v8  ;;  %v3437_v8 = vld [vmem:[%s12970_s6 + $0x350] sm:$0xff]  ;;  %v3424_v11 = vld [vmem:[%s12970_s6 + $0x2e8] sm:$0xff] }
 0x266   : > { %3554 = vmatpush1.msra.mxu0 %v3367_v14  ;;  %8059 = vmatmul.mubr.msk.f32.vlgmr.msra.gmra.mxu1 %vm2868_vm7, %v9625_v59  ;;  %v3436_v14 = vld [vmem:[%s12970_s6 + $0x348] sm:$0xff] }
 0x267   : > { %3555 = vmatprep.subr.mxu0 %v3365_v32  ;;  %3624 = vmatprep.subr.mxu1 %v3473_v18  ;;  %v3422_v32 = vld [vmem:[%s12970_s6 + $0x2d8] sm:$0xff] }
 0x268   : > { %3556 = vmatpush1.msra.mxu0 %v3364_v20  ;;  %3625 = vmatpush1.msra.mxu1 %v3472_v43  ;;  %v3434_v18 = vld [vmem:[%s12970_s6 + $0x338] sm:$0xff]  ;;  %v3421_v20 = vld [vmem:[%s12970_s6 + $0x2d0] sm:$0xff] }
 0x269   : > { %3688 = vmatprep.mubr.f32.mxu1 %v9537_v10  ;;  %3557 = vmatprep.subr.mxu0 %v3362_v2  ;;  %v3433_v43 = vld [vmem:[%s12970_s6 + $0x330] sm:$0xff]  ;;  %v3419_v2 = vld [vmem:[%s12970_s6 + $0x2c0] sm:$0xff] }
 0x26a   : > { %3626 = vmatprep.subr.mxu1 %v3470_v5  ;;  %3558 = vmatpush1.msra.mxu0 %v3361_v42  ;;  %v3431_v5 = vld [vmem:[%s12970_s6 + $0x320] sm:$0xff]  ;;  %v3418_v42 = vld [vmem:[%s12970_s6 + $0x2b8] sm:$0xff] }
 0x26b   : > { %3627 = vmatpush1.msra.mxu1 %v3469_v17  ;;  %3559 = vmatprep.subr.mxu0 %v3359_v1  ;;  %v3430_v17 = vld [vmem:[%s12970_s6 + $0x318] sm:$0xff]  ;;  %v3416_v1 = vld [vmem:[%s12970_s6 + $0x2a8] sm:$0xff] }
 0x26c   : > { %3628 = vmatprep.subr.mxu1 %v3467_v3  ;;  %3560 = vmatpush1.msra.mxu0 %v3358_v26  ;;  %v3428_v3 = vld [vmem:[%s12970_s6 + $0x308] sm:$0xff]  ;;  %v3415_v26 = vld [vmem:[%s12970_s6 + $0x2a0] sm:$0xff] }
 0x26d   : > { %3629 = vmatpush1.msra.mxu1 %v3466_v35  ;;  %3561 = vmatprep.subr.mxu0 %v3356_v50  ;;  %v3427_v35 = vld [vmem:[%s12970_s6 + $0x300] sm:$0xff]  ;;  %v3413_v50 = vld [vmem:[%s12970_s6 + $0x290] sm:$0xff] }
 0x26e   : > { %3630 = vmatprep.subr.mxu1 %v3464_v30  ;;  %3562 = vmatpush1.msra.mxu0 %v3355_v21  ;;  %v3521_v30 = vld [vmem:[%s12970_s6 + $0x5f0] sm:$0xff]  ;;  %v3412_v21 = vld [vmem:[%s12970_s6 + $0x288] sm:$0xff] }
 0x26f   : > { %3631 = vmatpush1.msra.mxu1 %v3463_v46  ;;  %3563 = vmatprep.subr.mxu0 %v3353_v12  ;;  %v3520_v46 = vld [vmem:[%s12970_s6 + $0x5e8] sm:$0xff]  ;;  %v3410_v12 = vld [vmem:[%s12970_s6 + $0x278] sm:$0xff] }
 0x270   : > { %3632 = vmatprep.subr.mxu1 %v3461_v22  ;;  %3564 = vmatpush1.msra.mxu0 %v3352_v29  ;;  %v3518_v22 = vld [vmem:[%s12970_s6 + $0x5d8] sm:$0xff]  ;;  %v3409_v29 = vld [vmem:[%s12970_s6 + $0x270] sm:$0xff] }
 0x271   : > { %3633 = vmatpush1.msra.mxu1 %v3460_v40  ;;  %3565 = vmatprep.subr.mxu0 %v3350_v41  ;;  %v3517_v40 = vld [vmem:[%s12970_s6 + $0x5d0] sm:$0xff]  ;;  %v3407_v41 = vld [vmem:[%s12970_s6 + $0x260] sm:$0xff] }
 0x272   : > { %3634 = vmatprep.subr.mxu1 %v3458_v13  ;;  %3566 = vmatpush1.msra.mxu0 %v3349_v24  ;;  %v3515_v13 = vld [vmem:[%s12970_s6 + $0x5c0] sm:$0xff]  ;;  %v3406_v24 = vld [vmem:[%s12970_s6 + $0x258] sm:$0xff] }
 0x273   : > { %3635 = vmatpush1.msra.mxu1 %v3457_v33  ;;  %3567 = vmatprep.subr.mxu0 %v3347_v45  ;;  %v3514_v33 = vld [vmem:[%s12970_s6 + $0x5b8] sm:$0xff]  ;;  %v3404_v45 = vld [vmem:[%s12970_s6 + $0x248] sm:$0xff] }
 0x274   : > { %3636 = vmatprep.subr.mxu1 %v3455_v44  ;;  %3568 = vmatpush1.msra.mxu0 %v3346_v47  ;;  %v3512_v44 = vld [vmem:[%s12970_s6 + $0x5a8] sm:$0xff]  ;;  %v3403_v47 = vld [vmem:[%s12970_s6 + $0x240] sm:$0xff] }
 0x275   : > { %3637 = vmatpush1.msra.mxu1 %v3454_v49  ;;  %3569 = vmatprep.subr.mxu0 %v3344_v25  ;;  %v3511_v49 = vld [vmem:[%s12970_s6 + $0x5a0] sm:$0xff]  ;;  %v3401_v25 = vld [vmem:[%s12970_s6 + $0x230] sm:$0xff] }
 0x276   : > { %3638 = vmatprep.subr.mxu1 %v3452_v51  ;;  %3570 = vmatpush1.msra.mxu0 %v3343_v53  ;;  %v3509_v51 = vld [vmem:[%s12970_s6 + $0x590] sm:$0xff]  ;;  %v3400_v53 = vld [vmem:[%s12970_s6 + $0x228] sm:$0xff] }
 0x277   : > { %3639 = vmatpush1.msra.mxu1 %v3451_v28  ;;  %3571 = vmatprep.subr.mxu0 %v3341_v31  ;;  %v3508_v28 = vld [vmem:[%s12970_s6 + $0x588] sm:$0xff]  ;;  %v3398_v31 = vld [vmem:[%s12970_s6 + $0x218] sm:$0xff] }
 0x278   : > { %3640 = vmatprep.subr.mxu1 %v3449_v56  ;;  %3572 = vmatpush1.msra.mxu0 %v3340_v57  ;;  %v3506_v56 = vld [vmem:[%s12970_s6 + $0x578] sm:$0xff]  ;;  %v3397_v57 = vld [vmem:[%s12970_s6 + $0x210] sm:$0xff] }
 0x279   : > { %3641 = vmatpush1.msra.mxu1 %v3448_v19  ;;  %3573 = vmatprep.subr.mxu0 %v3338_v58  ;;  %v3505_v19 = vld [vmem:[%s12970_s6 + $0x570] sm:$0xff]  ;;  %v3395_v58 = vld [vmem:[%s12970_s6 + $0x200] sm:$0xff] }
 0x27a   : > { %3642 = vmatprep.subr.mxu1 %v3446_v61  ;;  %3574 = vmatpush1.msra.mxu0 %v3337_v62  ;;  %v3503_v61 = vld [vmem:[%s12970_s6 + $0x560] sm:$0xff]  ;;  %v3394_v62 = vld [vmem:[%s12970_s6 + $0x1f8] sm:$0xff] }
 0x27b   : > { %3643 = vmatpush1.msra.mxu1 %v3445_v36  ;;  %3575 = vmatprep.subr.mxu0 %v3335_v48  ;;  %v3502_v36 = vld [vmem:[%s12970_s6 + $0x558] sm:$0xff]  ;;  %v3392_v48 = vld [vmem:[%s12970_s6 + $0x1e8] sm:$0xff] }
 0x27c   : > { %3644 = vmatprep.subr.mxu1 %v3443_v34  ;;  %3576 = vmatpush1.msra.mxu0 %v3334_v60  ;;  %v3500_v34 = vld [vmem:[%s12970_s6 + $0x548] sm:$0xff]  ;;  %v3391_v60 = vld [vmem:[%s12970_s6 + $0x1e0] sm:$0xff] }
 0x27d   : > { %3645 = vmatpush1.msra.mxu1 %v3442_v39  ;;  %3577 = vmatprep.subr.mxu0 %v3332_v63  ;;  %v3499_v39 = vld [vmem:[%s12970_s6 + $0x540] sm:$0xff]  ;;  %v3389_v63 = vld [vmem:[%s12970_s6 + $0x1d0] sm:$0xff] }
 0x27e   : > { %3646 = vmatprep.subr.mxu1 %v3440_v0  ;;  %3578 = vmatpush1.msra.mxu0 %v3331_v4  ;;  %v3497_v0 = vld [vmem:[%s12970_s6 + $0x530] sm:$0xff]  ;;  %v3388_v4 = vld [vmem:[%s12970_s6 + $0x1c8] sm:$0xff] }
 0x27f   : > { %3647 = vmatpush1.msra.mxu1 %v3439_v6  ;;  %3579 = vmatprep.subr.mxu0 %v3425_v9  ;;  %v3496_v6 = vld [vmem:[%s12970_s6 + $0x528] sm:$0xff]  ;;  %v3386_v9 = vld [vmem:[%s12970_s6 + $0x1b8] sm:$0xff] }
 0x280   : > { %3648 = vmatprep.subr.mxu1 %v3437_v8  ;;  %3580 = vmatpush2.msra.mxu0 %v3424_v11  ;;  %v3494_v8 = vld [vmem:[%s12970_s6 + $0x518] sm:$0xff]  ;;  %v3385_v11 = vld [vmem:[%s12970_s6 + $0x1b0] sm:$0xff] }
 0x281   : > { %3649 = vmatpush1.msra.mxu1 %v3436_v14  ;;  %3581 = vmatprep.subr.mxu0 %v3422_v32  ;;  %v3493_v14 = vld [vmem:[%s12970_s6 + $0x510] sm:$0xff]  ;;  %v3383_v32 = vld [vmem:[%s12970_s6 + $0x1a0] sm:$0xff] }
 0x282   : > { %3650 = vmatprep.subr.mxu1 %v3434_v18  ;;  %3582 = vmatpush2.msra.mxu0 %v3421_v20  ;;  %v3491_v18 = vld [vmem:[%s12970_s6 + $0x500] sm:$0xff]  ;;  %v3382_v20 = vld [vmem:[%s12970_s6 + $0x198] sm:$0xff] }
 0x283   : > { %3651 = vmatpush1.msra.mxu1 %v3433_v43  ;;  %3583 = vmatprep.subr.mxu0 %v3419_v2  ;;  %v3490_v43 = vld [vmem:[%s12970_s6 + $0x4f8] sm:$0xff]  ;;  %v3380_v2 = vld [vmem:[%s12970_s6 + $0x188] sm:$0xff] }
 0x284   : > { %3652 = vmatprep.subr.mxu1 %v3431_v5  ;;  %3584 = vmatpush2.msra.mxu0 %v3418_v42  ;;  %v3488_v5 = vld [vmem:[%s12970_s6 + $0x4e8] sm:$0xff]  ;;  %v3379_v42 = vld [vmem:[%s12970_s6 + $0x180] sm:$0xff] }
 0x285   : > { %3653 = vmatpush1.msra.mxu1 %v3430_v17  ;;  %3585 = vmatprep.subr.mxu0 %v3416_v1  ;;  %v3487_v17 = vld [vmem:[%s12970_s6 + $0x4e0] sm:$0xff]  ;;  %v3485_v1 = vld [vmem:[%s12970_s6 + $0x4d0] sm:$0xff] }
 0x286   : > { %3654 = vmatprep.subr.mxu1 %v3428_v3  ;;  %3586 = vmatpush2.msra.mxu0 %v3415_v26  ;;  %v3545_v3 = vld [vmem:[%s12970_s6 + $0x6b0] sm:$0xff]  ;;  %v3484_v26 = vld [vmem:[%s12970_s6 + $0x4c8] sm:$0xff] }
 0x287   : > { %3655 = vmatpush1.msra.mxu1 %v3427_v35  ;;  %3587 = vmatprep.subr.mxu0 %v3413_v50  ;;  %v3544_v35 = vld [vmem:[%s12970_s6 + $0x6a8] sm:$0xff]  ;;  %v3482_v50 = vld [vmem:[%s12970_s6 + $0x4b8] sm:$0xff] }
 0x288   : > { %3656 = vmatprep.subr.mxu1 %v3521_v30  ;;  %3588 = vmatpush2.msra.mxu0 %v3412_v21  ;;  %v3542_v30 = vld [vmem:[%s12970_s6 + $0x698] sm:$0xff]  ;;  %v3481_v21 = vld [vmem:[%s12970_s6 + $0x4b0] sm:$0xff] }
 0x289   : > { %3657 = vmatpush2.msra.mxu1 %v3520_v46  ;;  %3589 = vmatprep.subr.mxu0 %v3410_v12  ;;  %v3541_v46 = vld [vmem:[%s12970_s6 + $0x690] sm:$0xff]  ;;  %v3479_v12 = vld [vmem:[%s12970_s6 + $0x4a0] sm:$0xff] }
 0x28a   : > { %3658 = vmatprep.subr.mxu1 %v3518_v22  ;;  %3590 = vmatpush2.msra.mxu0 %v3409_v29  ;;  %v3539_v22 = vld [vmem:[%s12970_s6 + $0x680] sm:$0xff]  ;;  %v3478_v29 = vld [vmem:[%s12970_s6 + $0x498] sm:$0xff] }
 0x28b   : > { %3659 = vmatpush2.msra.mxu1 %v3517_v40  ;;  %3591 = vmatprep.subr.mxu0 %v3407_v41  ;;  %v3538_v40 = vld [vmem:[%s12970_s6 + $0x678] sm:$0xff]  ;;  %v3476_v41 = vld [vmem:[%s12970_s6 + $0x488] sm:$0xff] }
 0x28c   : > { %3660 = vmatprep.subr.mxu1 %v3515_v13  ;;  %3592 = vmatpush2.msra.mxu0 %v3406_v24  ;;  %v3536_v13 = vld [vmem:[%s12970_s6 + $0x668] sm:$0xff]  ;;  %v3475_v24 = vld [vmem:[%s12970_s6 + $0x480] sm:$0xff] }
 0x28d   : > { %3661 = vmatpush2.msra.mxu1 %v3514_v33  ;;  %3593 = vmatprep.subr.mxu0 %v3404_v45  ;;  %v3535_v33 = vld [vmem:[%s12970_s6 + $0x660] sm:$0xff]  ;;  %v3533_v45 = vld [vmem:[%s12970_s6 + $0x650] sm:$0xff] }
 0x28e   : > { %3662 = vmatprep.subr.mxu1 %v3512_v44  ;;  %3594 = vmatpush2.msra.mxu0 %v3403_v47  ;;  %v3426_v44 = vld [vmem:[%s12970_s6 + $0x2f8] sm:$0xff]  ;;  %v3532_v47 = vld [vmem:[%s12970_s6 + $0x648] sm:$0xff] }
 0x28f   : > { %3663 = vmatpush2.msra.mxu1 %v3511_v49  ;;  %3595 = vmatprep.subr.mxu0 %v3401_v25  ;;  %v3378_v49 = vld [vmem:[%s12970_s6 + $0x178] sm:$0xff] }
 0x290   : > { %3664 = vmatprep.subr.mxu1 %v3509_v51  ;;  %3596 = vmatpush2.msra.mxu0 %v3400_v53  ;;  %v3530_v25 = vld [vmem:[%s12970_s6 + $0x638] sm:$0xff]  ;;  %v3423_v51 = vld [vmem:[%s12970_s6 + $0x2e0] sm:$0xff]  ;;  %v3529_v53 = vld [vmem:[%s12970_s6 + $0x630] sm:$0xff] }
 0x291   : > { %3665 = vmatpush2.msra.mxu1 %v3508_v28  ;;  %3597 = vmatprep.subr.mxu0 %v3398_v31  ;;  %v3375_v28 = vld [vmem:[%s12970_s6 + $0x160] sm:$0xff] }
 0x292   : > { %3666 = vmatprep.subr.mxu1 %v3506_v56  ;;  %3598 = vmatpush2.msra.mxu0 %v3397_v57  ;;  %v3527_v31 = vld [vmem:[%s12970_s6 + $0x620] sm:$0xff]  ;;  %v3420_v56 = vld [vmem:[%s12970_s6 + $0x2c8] sm:$0xff]  ;;  %v3526_v57 = vld [vmem:[%s12970_s6 + $0x618] sm:$0xff] }
 0x293   : > { %3667 = vmatpush2.msra.mxu1 %v3505_v19  ;;  %3599 = vmatprep.subr.mxu0 %v3395_v58  ;;  %v3372_v19 = vld [vmem:[%s12970_s6 + $0x148] sm:$0xff] }
 0x294   : > { %3668 = vmatprep.subr.mxu1 %v3503_v61  ;;  %3600 = vmatpush2.msra.mxu0 %v3394_v62  ;;  %v3524_v58 = vld [vmem:[%s12970_s6 + $0x608] sm:$0xff]  ;;  %v3417_v61 = vld [vmem:[%s12970_s6 + $0x2b0] sm:$0xff]  ;;  %v3523_v62 = vld [vmem:[%s12970_s6 + $0x600] sm:$0xff] }
 0x295   : > { %3669 = vmatpush2.msra.mxu1 %v3502_v36  ;;  %3601 = vmatprep.subr.mxu0 %v3392_v48  ;;  %v3369_v36 = vld [vmem:[%s12970_s6 + $0x130] sm:$0xff]  ;;  %v3414_v48 = vld [vmem:[%s12970_s6 + $0x298] sm:$0xff] }
 0x296   : > { %3670 = vmatprep.subr.mxu1 %v3500_v34  ;;  %3602 = vmatpush2.msra.mxu0 %v3391_v60  ;;  %v3522_v34 = vld [vmem:[%s12970_s6 + $0x5f8] sm:$0xff] }
 0x297   : > { %3671 = vmatpush2.msra.mxu1 %v3499_v39  ;;  %3603 = vmatprep.subr.mxu0 %v3389_v63  ;;  %v3474_v60 = vld [vmem:[%s12970_s6 + $0x478] sm:$0xff]  ;;  %v3411_v39 = vld [vmem:[%s12970_s6 + $0x280] sm:$0xff] }
 0x298   : > { %3672 = vmatprep.subr.mxu1 %v3497_v0  ;;  %3604 = vmatpush2.msra.mxu0 %v3388_v4  ;;  %v3519_v63 = vld [vmem:[%s12970_s6 + $0x5e0] sm:$0xff] }
 0x299   : > { %3673 = vmatpush2.msra.mxu1 %v3496_v6  ;;  %3605 = vmatprep.subr.mxu0 %v3386_v9  ;;  %v3363_v0 = vld [vmem:[%s12970_s6 + $0x100] sm:$0xff]  ;;  %v3408_v6 = vld [vmem:[%s12970_s6 + $0x268] sm:$0xff] }
 0x29a   : > { %3674 = vmatprep.subr.mxu1 %v3494_v8  ;;  %3606 = vmatpush2.msra.mxu0 %v3385_v11  ;;  %v3471_v4 = vld [vmem:[%s12970_s6 + $0x460] sm:$0xff]  ;;  %v3516_v9 = vld [vmem:[%s12970_s6 + $0x5c8] sm:$0xff] }
 0x29b   : > { %3675 = vmatpush2.msra.mxu1 %v3493_v14  ;;  %3607 = vmatprep.subr.mxu0 %v3383_v32  ;;  %v3360_v8 = vld [vmem:[%s12970_s6 + $0xe8] sm:$0xff]  ;;  %v3405_v14 = vld [vmem:[%s12970_s6 + $0x250] sm:$0xff] }
 0x29c   : > { %3676 = vmatprep.subr.mxu1 %v3491_v18  ;;  %3608 = vmatpush2.msra.mxu0 %v3382_v20  ;;  %v3468_v11 = vld [vmem:[%s12970_s6 + $0x448] sm:$0xff]  ;;  %v3513_v32 = vld [vmem:[%s12970_s6 + $0x5b0] sm:$0xff] }
 0x29d   : > { %3677 = vmatpush2.msra.mxu1 %v3490_v43  ;;  %3609 = vmatprep.subr.mxu0 %v3380_v2  ;;  %v3357_v18 = vld [vmem:[%s12970_s6 + $0xd0] sm:$0xff]  ;;  %v3402_v43 = vld [vmem:[%s12970_s6 + $0x238] sm:$0xff] }
 0x29e   : > { %3678 = vmatprep.subr.mxu1 %v3488_v5  ;;  %3610 = vmatpush2.msra.mxu0 %v3379_v42  ;;  %v3465_v20 = vld [vmem:[%s12970_s6 + $0x430] sm:$0xff]  ;;  %v3510_v2 = vld [vmem:[%s12970_s6 + $0x598] sm:$0xff] }
 0x29f   : > { %3679 = vmatpush2.msra.mxu1 %v3487_v17  ;;  %3612 = vmatmul.mubr.f32.vlgmr.msra.gmra.mxu0 %v9498_v27  ;;  %v3354_v5 = vld [vmem:[%s12970_s6 + $0xb8] sm:$0xff]  ;;  %v3399_v17 = vld [vmem:[%s12970_s6 + $0x220] sm:$0xff] }
 0x2a0   : > { %3680 = vmatprep.subr.mxu1 %v3485_v1  ;;  %3717 = vmatprep.subr.mxu0 %v3545_v3  ;;  %v3462_v42 = vld [vmem:[%s12970_s6 + $0x418] sm:$0xff]  ;;  %v3351_v1 = vld [vmem:[%s12970_s6 + $0xa0] sm:$0xff] }
 0x2a1   : > { %3617 = vmatprep.mubr.f32.mxu0 %v9519_v52  ;;  %3681 = vmatpush2.msra.mxu1 %v3484_v26  ;;  %v3459_v3 = vld [vmem:[%s12970_s6 + $0x400] sm:$0xff]  ;;  %v3396_v26 = vld [vmem:[%s12970_s6 + $0x208] sm:$0xff] }
 0x2a2   : > { %3718 = vmatpush1.msra.mxu0 %v3544_v35  ;;  %3682 = vmatprep.subr.mxu1 %v3482_v50  ;;  %v3504_v35 = vld [vmem:[%s12970_s6 + $0x568] sm:$0xff] }
 0x2a3   : > { %3719 = vmatprep.subr.mxu0 %v3542_v30  ;;  %3683 = vmatpush2.msra.mxu1 %v3481_v21  ;;  %v3348_v50 = vld [vmem:[%s12970_s6 + $0x88] sm:$0xff]  ;;  %v3393_v21 = vld [vmem:[%s12970_s6 + $0x1f0] sm:$0xff] }
 0x2a4   : > { %3720 = vmatpush1.msra.mxu0 %v3541_v46  ;;  %3684 = vmatprep.subr.mxu1 %v3479_v12  ;;  %v3456_v30 = vld [vmem:[%s12970_s6 + $0x3e8] sm:$0xff]  ;;  %v3501_v46 = vld [vmem:[%s12970_s6 + $0x550] sm:$0xff] }
 0x2a5   : > { %3618 = vmatmul.mubr.f32.gmra.mxu0 %v9524_v7  ;;  %3721 = vmatprep.subr.mxu0 %v3539_v22  ;;  %v3345_v12 = vld [vmem:[%s12970_s6 + $0x70] sm:$0xff] }
 0x2a6   : > { %3685 = vmatpush2.msra.mxu1 %v3478_v29  ;;  %3722 = vmatpush1.msra.mxu0 %v3538_v40  ;;  %v3453_v22 = vld [vmem:[%s12970_s6 + $0x3d0] sm:$0xff]  ;;  %v3390_v29 = vld [vmem:[%s12970_s6 + $0x1d8] sm:$0xff] }
 0x2a7   : > { %3686 = vmatprep.subr.mxu1 %v3476_v41  ;;  %3723 = vmatprep.subr.mxu0 %v3536_v13  ;;  %v3498_v40 = vld [vmem:[%s12970_s6 + $0x538] sm:$0xff] }
 0x2a8   : > { %3687 = vmatpush2.msra.mxu1 %v3475_v24  ;;  %3724 = vmatpush1.msra.mxu0 %v3535_v33  ;;  %v3342_v41 = vld [vmem:[%s12970_s6 + $0x58] sm:$0xff]  ;;  %v3387_v24 = vld [vmem:[%s12970_s6 + $0x1c0] sm:$0xff] }
 0x2a9   : > { %3689 = vmatmul.mubr.f32.vlgmr.msra.gmra.mxu1 %v9543_v38  ;;  %3725 = vmatprep.subr.mxu0 %v3533_v45  ;;  %v3450_v13 = vld [vmem:[%s12970_s6 + $0x3b8] sm:$0xff]  ;;  %v3495_v33 = vld [vmem:[%s12970_s6 + $0x520] sm:$0xff] }
 0x2aa   : > { %7671 = vmatprep.subr.mxu1 %v3426_v44  ;;  %3694 = vmatprep.mubr.f32.mxu1 %v9562_v15  ;;  %v3339_v45 = vld [vmem:[%s12970_s6 + $0x40] sm:$0xff] }
 0x2ab   : > { %3726 = vmatpush1.msra.mxu0 %v3532_v47  ;;  %7672 = vmatpush3.msra.mxu1 %v3378_v49  ;;  %v3447_v44 = vld [vmem:[%s12970_s6 + $0x3a0] sm:$0xff]  ;;  %v3384_v47 = vld [vmem:[%s12970_s6 + $0x1a8] sm:$0xff] }
 0x2ac   : > { %3727 = vmatprep.subr.mxu0 %v3530_v25  ;;  %7673 = vmatprep.subr.mxu1 %v3423_v51  ;;  %v3492_v49 = vld [vmem:[%s12970_s6 + $0x508] sm:$0xff] }
 0x2ad   : > { %3728 = vmatpush1.msra.mxu0 %v3529_v53  ;;  %7674 = vmatpush3.msra.mxu1 %v3375_v28  ;;  %v3336_v25 = vld [vmem:[%s12970_s6 + $0x28] sm:$0xff]  ;;  %v3381_v53 = vld [vmem:[%s12970_s6 + $0x190] sm:$0xff] }
 0x2ae   : > { %3695 = vmatmul.mubr.f32.gmra.mxu1 %v9567_v16  ;;  %3729 = vmatprep.subr.mxu0 %v3527_v31  ;;  %v3444_v51 = vld [vmem:[%s12970_s6 + $0x388] sm:$0xff]  ;;  %v3489_v28 = vld [vmem:[%s12970_s6 + $0x4f0] sm:$0xff] }
 0x2af   : > { %7675 = vmatprep.subr.mxu1 %v3420_v56  ;;  %3730 = vmatpush1.msra.mxu0 %v3526_v57  ;;  %v3333_v31 = vld [vmem:[%s12970_s6 + $0x10] sm:$0xff]  ;;  %v3486_v57 = vld [vmem:[%s12970_s6 + $0x4d8] sm:$0xff] }
 0x2b0   : > { %7676 = vmatpush3.msra.mxu1 %v3372_v19  ;;  %3842 = vmatprep.mubr.f32.mxu1 %v9496_v23  ;;  %v3366_v23 = vld [vmem:[%s12970_s6 + $0x118] sm:$0xff]  ;;  %v3441_v56 = vld [vmem:[%s12970_s6 + $0x370] sm:$0xff] }
 0x2b1   : > { %3731 = vmatprep.subr.mxu0 %v3524_v58  ;;  %7677 = vmatprep.subr.mxu1 %v3417_v61  ;;  %v3546_v19 = vld [vmem:[%s12970_s6 + $0x6b8] sm:$0xff]  ;;  %v3483_v61 = vld [vmem:[%s12970_s6 + $0x4c0] sm:$0xff] }
 0x2b2   : > { %3732 = vmatpush1.msra.mxu0 %v3523_v62  ;;  %3765 = vmatprep.mubr.f32.mxu0 %v13042_v55  ;;  %v3438_v58 = vld [vmem:[%s12970_s6 + $0x358] sm:$0xff]  ;;  %v3543_v62 = vld [vmem:[%s12970_s6 + $0x6a0] sm:$0xff] }
 0x2b3   : > { %7678 = vmatpush3.msra.mxu1 %v3369_v36  ;;  %7126 = vmatmul.mubr.msk.f32.vlgmr.msra.gmra.mxu0 %vm2868_vm7, %v9589_v54  ;;  %v3435_v36 = vld [vmem:[%s12970_s6 + $0x340] sm:$0xff] }
 0x2b4   : > { %7679 = vmatprep.subr.mxu1 %v3414_v48  ;;  %7709 = vmatprep.subr.mxu0 %v3522_v34  ;;  %v3540_v48 = vld [vmem:[%s12970_s6 + $0x688] sm:$0xff] }
 0x2b5   : > { %7680 = vmatpush3.msra.mxu1 %v3366_v23  ;;  %7710 = vmatpush3.msra.mxu0 %v3474_v60  ;;  %v3432_v34 = vld [vmem:[%s12970_s6 + $0x328] sm:$0xff]  ;;  %v3537_v23 = vld [vmem:[%s12970_s6 + $0x670] sm:$0xff] }
 0x2b6   : > { %7681 = vmatprep.subr.mxu1 %v3411_v39  ;;  %7711 = vmatprep.subr.mxu0 %v3519_v63  ;;  %v3429_v60 = vld [vmem:[%s12970_s6 + $0x310] sm:$0xff]  ;;  %v3534_v39 = vld [vmem:[%s12970_s6 + $0x658] sm:$0xff]  ;;  %v3531_v63 = vld [vmem:[%s12970_s6 + $0x640] sm:$0xff] }
 0x2b7   : > { %3771 = vmatprep.mubr.f32.mxu0 %v13042_v55  ;;  %7682 = vmatpush3.msra.mxu1 %v3363_v0  ;;  %v3528_v0 = vld [vmem:[%s12970_s6 + $0x628] sm:$0xff] }
 0x2b8   : > { %7712 = vmatpush3.msra.mxu0 %v3471_v4  ;;  %7683 = vmatprep.subr.mxu1 %v3408_v6  ;;  %v7172_v4 = vld [vmem:[%s12971_s7 + $0x4b0] sm:$0xff]  ;;  %v7170_v6 = vld [vmem:[%s12971_s7 + $0x4a0] sm:$0xff] }
 0x2b9   : > { %7127 = vmatmul.mubr.msk.f32.gmra.mxu0 %vm2868_vm7, %v9625_v59  ;;  %7713 = vmatprep.subr.mxu0 %v3516_v9  ;;  %v7169_v9 = vld [vmem:[%s12971_s7 + $0x498] sm:$0xff] }
 0x2ba   : > { %7684 = vmatpush3.msra.mxu1 %v3360_v8  ;;  %7714 = vmatpush3.msra.mxu0 %v3468_v11  ;;  %v7166_v8 = vld [vmem:[%s12971_s7 + $0x480] sm:$0xff]  ;;  %v7164_v11 = vld [vmem:[%s12971_s7 + $0x470] sm:$0xff] }
 0x2bb   : > { %3917 = vmatprep.mubr.f32.mxu0 %v9537_v10  ;;  %7685 = vmatprep.subr.mxu1 %v3405_v14  ;;  %v3507_v10 = vld [vmem:[%s12970_s6 + $0x580] sm:$0xff]  ;;  %v7163_v14 = vld [vmem:[%s12971_s7 + $0x468] sm:$0xff] }
 0x2bc   : > { %7715 = vmatprep.subr.mxu0 %v3513_v32  ;;  %7686 = vmatpush3.msra.mxu1 %v3357_v18  ;;  %v7161_v32 = vld [vmem:[%s12971_s7 + $0x458] sm:$0xff]  ;;  %v7160_v18 = vld [vmem:[%s12971_s7 + $0x450] sm:$0xff] }
 0x2bd   : > { %7716 = vmatpush3.msra.mxu0 %v3465_v20  ;;  %7687 = vmatprep.subr.mxu1 %v3402_v43  ;;  %v7157_v20 = vld [vmem:[%s12971_s7 + $0x438] sm:$0xff]  ;;  %v7155_v43 = vld [vmem:[%s12971_s7 + $0x428] sm:$0xff] }
 0x2be   : > { %7717 = vmatprep.subr.mxu0 %v3510_v2  ;;  %7688 = vmatpush3.msra.mxu1 %v3354_v5  ;;  %v7154_v2 = vld [vmem:[%s12971_s7 + $0x420] sm:$0xff]  ;;  %v7152_v5 = vld [vmem:[%s12971_s7 + $0x410] sm:$0xff] }
 0x2bf   : > { %7718 = vmatpush3.msra.mxu0 %v3462_v42  ;;  %7689 = vmatprep.subr.mxu1 %v3399_v17  ;;  %v7151_v42 = vld [vmem:[%s12971_s7 + $0x408] sm:$0xff]  ;;  %v7149_v17 = vld [vmem:[%s12971_s7 + $0x3f8] sm:$0xff] }
 0x2c0   : > { %7719 = vmatprep.subr.mxu0 %v3507_v10  ;;  %7690 = vmatpush3.msra.mxu1 %v3351_v1  ;;  %v7148_v10 = vld [vmem:[%s12971_s7 + $0x3f0] sm:$0xff]  ;;  %v7146_v1 = vld [vmem:[%s12971_s7 + $0x3e0] sm:$0xff] }
 0x2c1   : > { %7720 = vmatpush3.msra.mxu0 %v3459_v3  ;;  %7691 = vmatprep.subr.mxu1 %v3396_v26  ;;  %v7145_v3 = vld [vmem:[%s12971_s7 + $0x3d8] sm:$0xff]  ;;  %v7143_v26 = vld [vmem:[%s12971_s7 + $0x3c8] sm:$0xff] }
 0x2c2   : > { %7721 = vmatprep.subr.mxu0 %v3504_v35  ;;  %7692 = vmatpush3.msra.mxu1 %v3348_v50  ;;  %v7142_v35 = vld [vmem:[%s12971_s7 + $0x3c0] sm:$0xff]  ;;  %v7140_v50 = vld [vmem:[%s12971_s7 + $0x3b0] sm:$0xff] }
 0x2c3   : > { %7722 = vmatpush3.msra.mxu0 %v3456_v30  ;;  %7693 = vmatprep.subr.mxu1 %v3393_v21  ;;  %v7139_v30 = vld [vmem:[%s12971_s7 + $0x3a8] sm:$0xff]  ;;  %v7137_v21 = vld [vmem:[%s12971_s7 + $0x398] sm:$0xff] }
 0x2c4   : > { %7723 = vmatprep.subr.mxu0 %v3501_v46  ;;  %7694 = vmatpush3.msra.mxu1 %v3345_v12  ;;  %v7136_v46 = vld [vmem:[%s12971_s7 + $0x390] sm:$0xff]  ;;  %v7134_v12 = vld [vmem:[%s12971_s7 + $0x380] sm:$0xff] }
 0x2c5   : > { %7724 = vmatpush3.msra.mxu0 %v3453_v22  ;;  %7695 = vmatprep.subr.mxu1 %v3390_v29  ;;  %v7133_v22 = vld [vmem:[%s12971_s7 + $0x378] sm:$0xff]  ;;  %v7131_v29 = vld [vmem:[%s12971_s7 + $0x368] sm:$0xff] }
 0x2c6   : > { %7725 = vmatprep.subr.mxu0 %v3498_v40  ;;  %7696 = vmatpush3.msra.mxu1 %v3342_v41  ;;  %v7130_v40 = vld [vmem:[%s12971_s7 + $0x360] sm:$0xff]  ;;  %v7224_v41 = vld [vmem:[%s12971_s7 + $0x650] sm:$0xff] }
 0x2c7   : > { %7726 = vmatpush3.msra.mxu0 %v3450_v13  ;;  %7697 = vmatprep.subr.mxu1 %v3387_v24  ;;  %v7223_v13 = vld [vmem:[%s12971_s7 + $0x648] sm:$0xff]  ;;  %v7221_v24 = vld [vmem:[%s12971_s7 + $0x638] sm:$0xff] }
 0x2c8   : > { %7727 = vmatprep.subr.mxu0 %v3495_v33  ;;  %7698 = vmatpush3.msra.mxu1 %v3339_v45  ;;  %v7220_v33 = vld [vmem:[%s12971_s7 + $0x630] sm:$0xff]  ;;  %v7218_v45 = vld [vmem:[%s12971_s7 + $0x620] sm:$0xff] }
 0x2c9   : > { %7728 = vmatpush3.msra.mxu0 %v3447_v44  ;;  %7699 = vmatprep.subr.mxu1 %v3384_v47  ;;  %v7217_v44 = vld [vmem:[%s12971_s7 + $0x618] sm:$0xff]  ;;  %v7215_v47 = vld [vmem:[%s12971_s7 + $0x608] sm:$0xff] }
 0x2ca   : > { %7729 = vmatprep.subr.mxu0 %v3492_v49  ;;  %7700 = vmatpush3.msra.mxu1 %v3336_v25  ;;  %v7214_v49 = vld [vmem:[%s12971_s7 + $0x600] sm:$0xff]  ;;  %v7212_v25 = vld [vmem:[%s12971_s7 + $0x5f0] sm:$0xff] }
 0x2cb   : > { %7730 = vmatpush3.msra.mxu0 %v3444_v51  ;;  %7701 = vmatprep.subr.mxu1 %v3381_v53  ;;  %v7211_v51 = vld [vmem:[%s12971_s7 + $0x5e8] sm:$0xff]  ;;  %v7209_v53 = vld [vmem:[%s12971_s7 + $0x5d8] sm:$0xff] }
 0x2cc   : > { %7731 = vmatprep.subr.mxu0 %v3489_v28  ;;  %7702 = vmatpush3.msra.mxu1 %v3333_v31  ;;  %v7208_v28 = vld [vmem:[%s12971_s7 + $0x5d0] sm:$0xff]  ;;  %v7206_v31 = vld [vmem:[%s12971_s7 + $0x5c0] sm:$0xff] }
 0x2cd   : > { %7732 = vmatpush3.msra.mxu0 %v3441_v56  ;;  %3843 = vmatmul.mubr.f32.vlgmr.msra.gmra.mxu1 %v9498_v27  ;;  %v3480_v27 = vld [vmem:[%s12970_s6 + $0x4a8] sm:$0xff]  ;;  %v7205_v56 = vld [vmem:[%s12971_s7 + $0x5b8] sm:$0xff] }
 0x2ce   : > { %7733 = vmatprep.subr.mxu0 %v3486_v57  ;;  %8061 = vmatprep.subr.mxu1 %v3546_v19  ;;  %v7203_v57 = vld [vmem:[%s12971_s7 + $0x5a8] sm:$0xff] }
 0x2cf   : > { %3847 = vmatprep.mubr.f32.mxu1 %v9519_v52  ;;  %7734 = vmatpush3.msra.mxu0 %v3438_v58  ;;  %v3477_v52 = vld [vmem:[%s12970_s6 + $0x490] sm:$0xff] }
 0x2d0   : > { %8062 = vmatpush3.msra.mxu1 %v3546_v19  ;;  %7735 = vmatprep.subr.mxu0 %v3483_v61  ;;  %v7202_v19 = vld [vmem:[%s12971_s7 + $0x5a0] sm:$0xff]  ;;  %v7200_v58 = vld [vmem:[%s12971_s7 + $0x590] sm:$0xff]  ;;  %v7199_v61 = vld [vmem:[%s12971_s7 + $0x588] sm:$0xff] }
 0x2d1   : > { %8063 = vmatprep.subr.mxu1 %v3543_v62  ;;  %7736 = vmatpush3.msra.mxu0 %v3435_v36  ;;  %v7196_v36 = vld [vmem:[%s12971_s7 + $0x570] sm:$0xff] }
 0x2d2   : > { %8064 = vmatpush3.msra.mxu1 %v3543_v62  ;;  %7737 = vmatprep.subr.mxu0 %v3480_v27  ;;  %v7197_v62 = vld [vmem:[%s12971_s7 + $0x578] sm:$0xff]  ;;  %v7194_v27 = vld [vmem:[%s12971_s7 + $0x560] sm:$0xff] }
 0x2d3   : > { %3848 = vmatmul.mubr.f32.gmra.mxu1 %v9524_v7  ;;  %8065 = vmatprep.subr.mxu1 %v3540_v48  ;;  %v7176_v7 = vld [vmem:[%s12971_s7 + $0x4d0] sm:$0xff] }
 0x2d4   : > { %7738 = vmatpush3.msra.mxu0 %v3432_v34  ;;  %8066 = vmatpush3.msra.mxu1 %v3540_v48  ;;  %v7193_v48 = vld [vmem:[%s12971_s7 + $0x558] sm:$0xff]  ;;  %v7191_v34 = vld [vmem:[%s12971_s7 + $0x548] sm:$0xff] }
 0x2d5   : > { %8077 = vmatprep.mubr.msk.f32.mxu1 %vm2868_vm7, %v9589_v54  ;;  %7739 = vmatprep.subr.mxu0 %v3477_v52  ;;  %v7175_v54 = vld [vmem:[%s12971_s7 + $0x4c8] sm:$0xff]  ;;  %v7190_v52 = vld [vmem:[%s12971_s7 + $0x540] sm:$0xff] }
 0x2d6   : > { %8067 = vmatprep.subr.mxu1 %v3537_v23  ;;  %7740 = vmatpush3.msra.mxu0 %v3429_v60  ;;  %v7187_v60 = vld [vmem:[%s12971_s7 + $0x528] sm:$0xff] }
 0x2d7   : > { %8068 = vmatpush3.msra.mxu1 %v3537_v23  ;;  %3918 = vmatmul.mubr.f32.vlgmr.msra.gmra.mxu0 %v9543_v38  ;;  %v7173_v38 = vld [vmem:[%s12971_s7 + $0x4b8] sm:$0xff]  ;;  %v7188_v23 = vld [vmem:[%s12971_s7 + $0x530] sm:$0xff] }
 0x2d8   : > { %8069 = vmatprep.subr.mxu1 %v3534_v39  ;;  %3922 = vmatprep.mubr.f32.mxu0 %v9562_v15  ;;  %v3525_v15 = vld [vmem:[%s12970_s6 + $0x610] sm:$0xff] }
 0x2d9   : > { %8070 = vmatpush3.msra.mxu1 %v3534_v39  ;;  %4256 = vmatprep.subr.mxu0 %v7176_v7  ;;  %v7185_v39 = vld [vmem:[%s12971_s7 + $0x518] sm:$0xff]  ;;  %v7184_v7 = vld [vmem:[%s12971_s7 + $0x510] sm:$0xff] }
 0x2da   : > { %8071 = vmatprep.subr.mxu1 %v3531_v63  ;;  %4257 = vmatpush1.msra.mxu0 %v7175_v54  ;;  %v7181_v54 = vld [vmem:[%s12971_s7 + $0x4f8] sm:$0xff] }
 0x2db   : > { %8072 = vmatpush3.msra.mxu1 %v3531_v63  ;;  %3923 = vmatmul.mubr.f32.gmra.mxu0 %v9567_v16  ;;  %v7167_v16 = vld [vmem:[%s12971_s7 + $0x488] sm:$0xff]  ;;  %v7182_v63 = vld [vmem:[%s12971_s7 + $0x500] sm:$0xff] }
 0x2dc   : > { %8073 = vmatprep.subr.mxu1 %v3528_v0  ;;  %4258 = vmatprep.subr.mxu0 %v7173_v38  ;;  %v7178_v38 = vld [vmem:[%s12971_s7 + $0x4e0] sm:$0xff] }
 0x2dd   : > { %8074 = vmatpush3.msra.mxu1 %v3528_v0  ;;  %4259 = vmatpush1.msra.mxu0 %v7172_v4  ;;  %v7179_v0 = vld [vmem:[%s12971_s7 + $0x4e8] sm:$0xff]  ;;  %v4121_v4 = vld [vmem:[%s12971_s7 + $0x350] sm:$0xff] }
 0x2de   : > { %8075 = vmatprep.subr.mxu1 %v3525_v15  ;;  %4260 = vmatprep.subr.mxu0 %v7170_v6  ;;  %v7235_v6 = vld [vmem:[%s12971_s7 + $0x6a8] sm:$0xff] }
 0x2df   : > { %8076 = vmatpush3.msra.mxu1 %v3525_v15  ;;  %4261 = vmatpush1.msra.mxu0 %v7169_v9  ;;  %v7236_v15 = vld [vmem:[%s12971_s7 + $0x6b0] sm:$0xff]  ;;  %v7233_v9 = vld [vmem:[%s12971_s7 + $0x698] sm:$0xff] }
 0x2e0   : > { %8078 = vmatmul.mubr.msk.f32.vlgmr.msra.gmra.mxu1 %vm2868_vm7, %v9625_v59  ;;  %4262 = vmatprep.subr.mxu0 %v7167_v16  ;;  %v7158_v59 = vld [vmem:[%s12971_s7 + $0x440] sm:$0xff]  ;;  %v7232_v16 = vld [vmem:[%s12971_s7 + $0x690] sm:$0xff] }
 0x2e1   : > { %4263 = vmatpush1.msra.mxu0 %v7166_v8  ;;  %4397 = vmatprep.mubr.f32.mxu1 %v13042_v55  ;;  %v7230_v8 = vld [vmem:[%s12971_s7 + $0x680] sm:$0xff] }
 0x2e2   : > { %4264 = vmatprep.subr.mxu0 %v7164_v11  ;;  %4357 = vmatprep.subr.mxu1 %v7236_v15  ;;  %v7229_v11 = vld [vmem:[%s12971_s7 + $0x678] sm:$0xff] }
 0x2e3   : > { %4265 = vmatpush1.msra.mxu0 %v7163_v14  ;;  %4358 = vmatpush1.msra.mxu1 %v7235_v6  ;;  %v7227_v14 = vld [vmem:[%s12971_s7 + $0x668] sm:$0xff] }
 0x2e4   : > { %4266 = vmatprep.subr.mxu0 %v7161_v32  ;;  %4359 = vmatprep.subr.mxu1 %v7233_v9  ;;  %v7226_v32 = vld [vmem:[%s12971_s7 + $0x660] sm:$0xff] }
 0x2e5   : > { %4267 = vmatpush1.msra.mxu0 %v7160_v18  ;;  %4360 = vmatpush1.msra.mxu1 %v7232_v16  ;;  %v7225_v18 = vld [vmem:[%s12971_s7 + $0x658] sm:$0xff] }
 0x2e6   : > { %4268 = vmatprep.subr.mxu0 %v7158_v59  ;;  %4361 = vmatprep.subr.mxu1 %v7230_v8  ;;  %v2941_v59 = vpop.f32.mrf.mxu0 }
 0x2e7   : > { %4269 = vmatpush1.msra.mxu0 %v7157_v20  ;;  %4362 = vmatpush1.msra.mxu1 %v7229_v11 }
 0x2e8   : > { %4270 = vmatprep.subr.mxu0 %v7155_v43  ;;  %4363 = vmatprep.subr.mxu1 %v7227_v14  ;;  %v2943_v20 = vpop.f32.mrf.mxu0 }
 0x2e9   : > { %4271 = vmatpush1.msra.mxu0 %v7154_v2  ;;  %4364 = vmatpush1.msra.mxu1 %v7226_v32 }
 0x2ea   : > { %4272 = vmatprep.subr.mxu0 %v7152_v5  ;;  %7757 = vmatprep.subr.mxu1 %v7225_v18 }
 0x2eb   : > { %4273 = vmatpush1.msra.mxu0 %v7151_v42 }
 0x2ec   : > { %4274 = vmatprep.subr.mxu0 %v7149_v17  ;;  %v2947_v43 = vpop.f32.mrf.mxu0 }
 0x2ed   : > { %4275 = vmatpush1.msra.mxu0 %v7148_v10 }
 0x2ee   : > { %4276 = vmatprep.subr.mxu0 %v7146_v1  ;;  %v2949_v2 = vpop.f32.mrf.mxu0 }
 0x2ef   : > { %4277 = vmatpush1.msra.mxu0 %v7145_v3 }
 0x2f0   : > { %4278 = vmatprep.subr.mxu0 %v7143_v26  ;;  %v3018_v5 = vpop.f32.mrf.mxu1 }
 0x2f1   : > { %4279 = vmatpush1.msra.mxu0 %v7142_v35 }
 0x2f2   : > { %4280 = vmatprep.subr.mxu0 %v7140_v50  ;;  %v3020_v17 = vpop.f32.mrf.mxu1 }
 0x2f3   : > { %4281 = vmatpush1.msra.mxu0 %v7139_v30 }
 0x2f4   : > { %4282 = vmatprep.subr.mxu0 %v7137_v21  ;;  %v3024_v1 = vpop.f32.mrf.mxu1 }
 0x2f5   : > { %4283 = vmatpush1.msra.mxu0 %v7136_v46 }
 0x2f6   : > { %4284 = vmatprep.subr.mxu0 %v7134_v12  ;;  %v3026_v26 = vpop.f32.mrf.mxu1 }
 0x2f7   : > { %4285 = vmatpush1.msra.mxu0 %v7133_v22 }
 0x2f8   : > { %4286 = vmatprep.subr.mxu0 %v7131_v29  ;;  %v3095_v42 = vpop.f32.mrf.mxu0 }
 0x2f9   : > { %4287 = vmatpush1.msra.mxu0 %v7130_v40 }
 0x2fa   : > { %4288 = vmatprep.subr.mxu0 %v7224_v41  ;;  %v3097_v10 = vpop.f32.mrf.mxu0 }
 0x2fb   : > { %4289 = vmatpush2.msra.mxu0 %v7223_v13 }
 0x2fc   : > { %4290 = vmatprep.subr.mxu0 %v7221_v24 }
 0x2fd   : > { %4291 = vmatpush2.msra.mxu0 %v7220_v33 }
 0x2fe   : > { %4292 = vmatprep.subr.mxu0 %v7218_v45  ;;  %v3101_v3 = vpop.f32.mrf.mxu0 }
 0x2ff   : > { %4293 = vmatpush2.msra.mxu0 %v7217_v44 }
 0x300   : > { %4294 = vmatprep.subr.mxu0 %v7215_v47  ;;  %v3103_v35 = vpop.f32.mrf.mxu0 }
 0x301   : > { %4295 = vmatpush2.msra.mxu0 %v7214_v49 }
 0x302   : > { %4296 = vmatprep.subr.mxu0 %v7212_v25 }
 0x303   : > { %4297 = vmatpush2.msra.mxu0 %v7211_v51 }
 0x304   : > { %4298 = vmatprep.subr.mxu0 %v7209_v53 }
 0x305   : > { %4299 = vmatpush2.msra.mxu0 %v7208_v28 }
 0x306   : > { %4300 = vmatprep.subr.mxu0 %v7206_v31 }
 0x307   : > { %4301 = vmatpush2.msra.mxu0 %v7205_v56  ;;  %v3021_v56 = vadd.f32 %v3020_v17, %v2943_v20  ;;  %v4120_v20 = vld [vmem:[%s12971_s7 + $0x348] sm:$0xff]  ;;  %v4114_v17 = vld [vmem:[%s12971_s7 + $0x318] sm:$0xff] }
 0x308   : > { %4302 = vmatprep.subr.mxu0 %v7203_v57 }
 0x309   : > { %4303 = vmatpush2.msra.mxu0 %v7202_v19  ;;  %v3019_v19 = vadd.f32 %v3018_v5, %v2941_v59  ;;  %v4117_v5 = vld [vmem:[%s12971_s7 + $0x330] sm:$0xff] }
 0x30a   : > { %4304 = vmatprep.subr.mxu0 %v7200_v58 }
 0x30b   : > { %4305 = vmatpush2.msra.mxu0 %v7199_v61 }
 0x30c   : > { %4306 = vmatprep.subr.mxu0 %v7197_v62  ;;  %v3025_v62 = vadd.f32 %v3024_v1, %v2947_v43  ;;  %v4111_v1 = vld [vmem:[%s12971_s7 + $0x300] sm:$0xff] }
 0x30d   : > { %4307 = vmatpush2.msra.mxu0 %v7196_v36  ;;  %v3098_v36 = vadd.f32 %v3097_v10, %v3021_v56  ;;  %v4112_v10 = vld [vmem:[%s12971_s7 + $0x308] sm:$0xff] }
 0x30e   : > { %4308 = vmatprep.subr.mxu0 %v7194_v27 }
 0x30f   : > { %4309 = vmatpush2.msra.mxu0 %v7193_v48  ;;  %v3027_v48 = vadd.f32 %v3026_v26, %v2949_v2  ;;  %v4118_v2 = vld [vmem:[%s12971_s7 + $0x338] sm:$0xff] }
 0x310   : > { %4310 = vmatprep.subr.mxu0 %v7191_v34  ;;  %v3096_v34 = vadd.f32 %v3095_v42, %v3019_v19  ;;  %v4115_v42 = vld [vmem:[%s12971_s7 + $0x320] sm:$0xff] }
 0x311   : > { %4311 = vmatpush2.msra.mxu0 %v7190_v52 }
 0x312   : > { %4312 = vmatprep.subr.mxu0 %v7188_v23  ;;  %v10700_v50 = vpop.f32.mrf.mxu1  ;;  %v3102_v23 = vadd.f32 %v3101_v3, %v3025_v62  ;;  %v4110_v3 = vld [vmem:[%s12971_s7 + $0x2f8] sm:$0xff] }
 0x313   : > { %4313 = vmatpush2.msra.mxu0 %v7187_v60 }
 0x314   : > { %4314 = vmatprep.subr.mxu0 %v7185_v39  ;;  %v10704_v21 = vpop.f32.mrf.mxu1 }
 0x315   : > { %4315 = vmatpush2.msra.mxu0 %v7184_v7  ;;  %v7619_v19 = vadd.f32 %v10704_v21, %v10700_v50  ;;  %v4062_v50 = vld [vmem:[%s12971_s7 + $0x178] sm:$0xff] }
 0x316   : > { %4316 = vmatprep.subr.mxu0 %v7182_v63 }
 0x317   : > { %4317 = vmatpush2.msra.mxu0 %v7181_v54 }
 0x318   : > { %4318 = vmatprep.subr.mxu0 %v7179_v0  ;;  %v10708_v12 = vpop.f32.mrf.mxu1  ;;  %v3104_v0 = vadd.f32 %v3103_v35, %v3027_v48 }
 0x319   : > { %4319 = vmatpush2.msra.mxu0 %v7178_v38 }
 0x31a   : > { %4665 = vmatprep.subr.mxu0 %v4121_v4  ;;  %v10712_v29 = vpop.f32.mrf.mxu1 }
 0x31c   : > { %v10702_v30 = vpop.f32.mrf.mxu0 }
 0x31e   : > { %v10706_v46 = vpop.f32.mrf.mxu0 }
 0x322   : > { %v10710_v22 = vpop.f32.mrf.mxu0 }
 0x324   : > { %v10714_v40 = vpop.f32.mrf.mxu0 }
 0x326   : > { %v10716_v41 = vpop.f32.mrf.mxu1 }
 0x328   : > { %v10718_v24 = vpop.f32.mrf.mxu1 }
 0x35f   : > { %v3613_v13 = vpop.f32.mrf.mxu0 }
 0x361   : > { %v3615_v33 = vpop.f32.mrf.mxu0 }
 0x365   : > { %v3619_v44 = vpop.f32.mrf.mxu0 }
 0x367   : > { %v3621_v49 = vpop.f32.mrf.mxu0 }
 0x369   : > { %v3690_v45 = vpop.f32.mrf.mxu1 }
 0x36a   : > { %v3691_v28 = vadd.f32 %v3690_v45, %v3613_v13 }
 0x36b   : > { %v3692_v47 = vpop.f32.mrf.mxu1 }
 0x36c   : > { %v3693_v53 = vadd.f32 %v3692_v47, %v3615_v33 }
 0x36e   : > { %v3696_v25 = vpop.f32.mrf.mxu1 }
 0x36f   : > { %v3697_v27 = vadd.f32 %v3696_v25, %v3619_v44  ;;  %v7660_v44 = vadd.f32 %v10714_v40, %v10710_v22  ;;  %v7622_v25 = vadd.f32 %v10712_v29, %v10708_v12 }
 0x370   : > { %v3698_v58 = vpop.f32.mrf.mxu1 }
 0x371   : > { %v3699_v60 = vadd.f32 %v3698_v58, %v3621_v49 }
 0x373   : > { %v3767_v51 = vpop.f32.mrf.mxu0 }
 0x374   : > { %v3768_v61 = vadd.f32 %v3767_v51, %v3691_v28  ;;  %v7657_v51 = vadd.f32 %v10706_v46, %v10702_v30 }
 0x375   : > { %v3769_v31 = vpop.f32.mrf.mxu0 }
 0x376   : > { %v3770_v57 = vadd.f32 %v3769_v31, %v3693_v53  ;;  %v4003_v63 = vmax.f32 %v3096_v34, %v3768_v61  ;;  %v3253_v31 = vadd.f32 %v7660_v44, %v7622_v25  ;;  %v3248_v22 = vadd.f32 %v7657_v51, %v7619_v19  ;;  %v4089_v44 = vld [vmem:[%s12971_s7 + $0x250] sm:$0xff]  ;;  %v7159_v25 = vld [vmem:[%s12971_s7 + $0x448] sm:$0xff]  ;;  %v4086_v51 = vld [vmem:[%s12971_s7 + $0x238] sm:$0xff] }
 0x377   : > { %v4035_v19 = vld [vmem:[%s12971_s7 + $0xa0] sm:$0xff] }
 0x378   : > { %v4004_v39 = vmax.f32 %v3098_v36, %v3770_v57  ;;  %v10724_v16 = vmax.f32 %v4003_v63, 0.0  ;;  %v3328_v36 = vadd.f32 %v10716_v41, %v3253_v31  ;;  %v3323_v29 = vadd.f32 %v10718_v24, %v3248_v22  ;;  %v4107_v41 = vld [vmem:[%s12971_s7 + $0x2e0] sm:$0xff]  ;;  %v4104_v63 = vld [vmem:[%s12971_s7 + $0x2c8] sm:$0xff]  ;;  %v7156_v31 = vld [vmem:[%s12971_s7 + $0x430] sm:$0xff] }
 0x379   : > { %v3773_v52 = vpop.f32.mrf.mxu0  ;;  %v4032_v22 = vld [vmem:[%s12971_s7 + $0x88] sm:$0xff] }
 0x37a   : > { %v3774_v7 = vadd.f32 %v3773_v52, %v3697_v27  ;;  %v10720_v15 = vmax.f32 %v4004_v39, 0.0  ;;  %v4238_v18 = vrot.slane %v10724_v16, 1 }
 0x37b   : > { %v3775_v54 = vpop.f32.mrf.mxu0 }
 0x37c   : > { %v4006_v38 = vmax.f32 %v3102_v23, %v3774_v7  ;;  %v3776_v4 = vadd.f32 %v3775_v54, %v3699_v60  ;;  %v4241_v14 = vrot.slane %v10720_v15, 1  ;;  %v4059_v60 = vld [vmem:[%s12971_s7 + $0x160] sm:$0xff]  ;;  %v7177_v7 = vld [vmem:[%s12971_s7 + $0x4d8] sm:$0xff] }
 0x37e   : > { %v10722_v6 = vmax.f32 %v4006_v38, 0.0  ;;  %v4007_v9 = vmax.f32 %v3104_v0, %v3776_v4  ;;  %v7222_v0 = vld [vmem:[%s12971_s7 + $0x640] sm:$0xff]  ;;  %v4056_v4 = vld [vmem:[%s12971_s7 + $0x148] sm:$0xff] }
 0x380   : > { %v10726_v8 = vmax.f32 %v4007_v9, 0.0  ;;  %v10729_v11 = vrot.slane %v10722_v6, 1  ;;  %v7174_v9 = vld [vmem:[%s12971_s7 + $0x4c0] sm:$0xff] }
 0x382   : > { %v10733_v32 = vrot.slane %v10726_v8, 1  ;;  %v10746_v43 = vsel %vm649_vm1, %v4238_v18, %v10729_v11  ;;  %v7219_v18 = vld [vmem:[%s12971_s7 + $0x628] sm:$0xff] }
 0x384   : > { %v10738_v59 = vsel %vm649_vm1, %v4241_v14, %v10733_v32  ;;  %v4101_v14 = vld [vmem:[%s12971_s7 + $0x2b0] sm:$0xff] }
 0x385   : > { %4320 = vmatprep.mubr.f32.mxu0 %v10738_v59 }
 0x386   : > { %4321 = vmatmul.mubr.f32.vlgmr.msra.gmra.mxu0 %v10746_v43 }
 0x387   : > { %4326 = vmatprep.mubr.f32.mxu0 %v10733_v32  ;;  %4666 = vmatpush1.msra.mxu0 %v4120_v20  ;;  %v4053_v20 = vld [vmem:[%s12971_s7 + $0x130] sm:$0xff] }
 0x388   : > { %4667 = vmatprep.subr.mxu0 %v4118_v2  ;;  %v7171_v2 = vld [vmem:[%s12971_s7 + $0x4a8] sm:$0xff] }
 0x389   : > { %4668 = vmatpush1.msra.mxu0 %v4117_v5  ;;  %v4098_v5 = vld [vmem:[%s12971_s7 + $0x298] sm:$0xff] }
 0x38a   : > { %4327 = vmatmul.mubr.f32.gmra.mxu0 %v10729_v11  ;;  %4669 = vmatprep.subr.mxu0 %v4115_v42  ;;  %v7216_v42 = vld [vmem:[%s12971_s7 + $0x610] sm:$0xff] }
 0x38b   : > { %4670 = vmatpush1.msra.mxu0 %v4114_v17  ;;  %4705 = vmatprep.mubr.f32.mxu0 %v13042_v55  ;;  %v4050_v17 = vld [vmem:[%s12971_s7 + $0x118] sm:$0xff] }
 0x38c   : > { %4671 = vmatprep.subr.mxu0 %v4112_v10  ;;  %v7168_v10 = vld [vmem:[%s12971_s7 + $0x490] sm:$0xff] }
 0x38d   : > { %4672 = vmatpush1.msra.mxu0 %v4111_v1  ;;  %v7703_v26 = vpop.f32.mrf.mxu1  ;;  %v4095_v1 = vld [vmem:[%s12971_s7 + $0x280] sm:$0xff] }
 0x38e   : > { %7801 = vmatprep.subr.mxu0 %v4110_v3  ;;  %v7213_v3 = vld [vmem:[%s12971_s7 + $0x5f8] sm:$0xff] }
 0x38f   : > { %v7704_v35 = vpop.f32.mrf.mxu1 }
 0x390   : > { %v7705_v58 = vadd.f32 %v7704_v35, %v7703_v26  ;;  %v4047_v26 = vld [vmem:[%s12971_s7 + $0x100] sm:$0xff]  ;;  %v7165_v35 = vld [vmem:[%s12971_s7 + $0x478] sm:$0xff] }
 0x393   : > { %v7706_v13 = vpop.f32.mrf.mxu1 }
 0x395   : > { %v7707_v47 = vpop.f32.mrf.mxu1 }
 0x396   : > { %v7708_v56 = vadd.f32 %v7707_v47, %v7706_v13  ;;  %v4092_v13 = vld [vmem:[%s12971_s7 + $0x268] sm:$0xff] }
 0x397   : > { %v7741_v33 = vpop.f32.mrf.mxu0  ;;  %v7207_v47 = vld [vmem:[%s12971_s7 + $0x5c8] sm:$0xff] }
 0x399   : > { %v7742_v45 = vpop.f32.mrf.mxu0 }
 0x39a   : > { %v7743_v53 = vadd.f32 %v7742_v45, %v7741_v33  ;;  %v7210_v33 = vld [vmem:[%s12971_s7 + $0x5e0] sm:$0xff] }
 0x39b   : > { %v7744_v49 = vpop.f32.mrf.mxu0  ;;  %v7162_v45 = vld [vmem:[%s12971_s7 + $0x460] sm:$0xff] }
 0x39c   : > { %v3920_v40 = vadd.f32 %v7743_v53, %v7705_v58  ;;  %v7204_v53 = vld [vmem:[%s12971_s7 + $0x5b0] sm:$0xff]  ;;  %v7153_v58 = vld [vmem:[%s12971_s7 + $0x418] sm:$0xff] }
 0x39d   : > { %v7745_v28 = vpop.f32.mrf.mxu0 }
 0x39e   : > { %v7746_v57 = vadd.f32 %v7745_v28, %v7744_v49  ;;  %v4041_v49 = vld [vmem:[%s12971_s7 + $0xd0] sm:$0xff]  ;;  %v4038_v28 = vld [vmem:[%s12971_s7 + $0xb8] sm:$0xff] }
 0x3a0   : > { %v3925_v61 = vadd.f32 %v7746_v57, %v7708_v56  ;;  %v8079_v62 = vpop.f32.mrf.mxu1  ;;  %v4083_v56 = vld [vmem:[%s12971_s7 + $0x220] sm:$0xff]  ;;  %v7201_v57 = vld [vmem:[%s12971_s7 + $0x598] sm:$0xff] }
 0x3a2   : > { %v4000_v27 = vadd.f32 %v8079_v62, %v3925_v61  ;;  %v3994_v12 = vpop.f32.mrf.mxu1  ;;  %v4080_v61 = vld [vmem:[%s12971_s7 + $0x208] sm:$0xff]  ;;  %v7198_v62 = vld [vmem:[%s12971_s7 + $0x580] sm:$0xff] }
 0x3a3   : > { %v3995_v30 = vadd.f32 %v3994_v12, %v3920_v40  ;;  %v7150_v40 = vld [vmem:[%s12971_s7 + $0x400] sm:$0xff]  ;;  %v4029_v12 = vld [vmem:[%s12971_s7 + $0x70] sm:$0xff] }
 0x3a4   : > { %v4008_v46 = vmax.f32 %v3328_v36, %v4000_v27  ;;  %v4077_v36 = vld [vmem:[%s12971_s7 + $0x1f0] sm:$0xff]  ;;  %v7195_v27 = vld [vmem:[%s12971_s7 + $0x568] sm:$0xff] }
 0x3a5   : > { %v4005_v48 = vmax.f32 %v3323_v29, %v3995_v30  ;;  %v7147_v29 = vld [vmem:[%s12971_s7 + $0x3e8] sm:$0xff]  ;;  %v4074_v30 = vld [vmem:[%s12971_s7 + $0x1d8] sm:$0xff] }
 0x3a6   : > { %v10783_v34 = vmax.f32 %v4008_v46, 0.0  ;;  %v7192_v46 = vld [vmem:[%s12971_s7 + $0x550] sm:$0xff] }
 0x3a7   : > { %v10785_v52 = vmax.f32 %v4005_v48, 0.0  ;;  %v4026_v48 = vld [vmem:[%s12971_s7 + $0x58] sm:$0xff] }
 0x3a8   : > { %v10791_v21 = vrot.slane %v10783_v34, 2  ;;  %v10797_v24 = vrot.slane %v10783_v34, 1 }
 0x3a9   : > { %v4983_v23 = vrot.slane %v10785_v52, 2  ;;  %7242 = vmatmul.mubr.msk.f32.vlgmr.msra.gmra.mxu0 %vm4251_vm8, %v10785_v52  ;;  %v4244_v39 = vrot.slane %v10785_v52, 1 }
 0x3aa   : > { %7802 = vmatpush3.msra.mxu0 %v4062_v50  ;;  %4711 = vmatprep.mubr.f32.mxu0 %v13042_v55  ;;  %v7144_v50 = vld [vmem:[%s12971_s7 + $0x3d0] sm:$0xff] }
 0x3ab   : > { %7803 = vmatprep.subr.mxu0 %v4107_v41  ;;  %v10815_v54 = vsel %vm649_vm1, %v4244_v39, %v10797_v24  ;;  %v10822_v38 = vsel %vm1214_vm4, %v4983_v23, %v10791_v21  ;;  %v4071_v41 = vld [vmem:[%s12971_s7 + $0x1c0] sm:$0xff]  ;;  %v7189_v23 = vld [vmem:[%s12971_s7 + $0x538] sm:$0xff] }
 0x3ac   : > { %7804 = vmatpush3.msra.mxu0 %v4059_v60  ;;  %7238 = vmatmul.mubr.msk.f32.vlgmr.msra.gmra.mxu1 %vm4251_vm8, %v10815_v54  ;;  %v4023_v60 = vld [vmem:[%s12971_s7 + $0x40] sm:$0xff]  ;;  %v7141_v39 = vld [vmem:[%s12971_s7 + $0x3b8] sm:$0xff] }
 0x3ad   : > { %7758 = vmatpush3.msra.mxu1 %v7177_v7  ;;  %7805 = vmatprep.subr.mxu0 %v4104_v63  ;;  %v4068_v7 = vld [vmem:[%s12971_s7 + $0x1a8] sm:$0xff]  ;;  %v7186_v63 = vld [vmem:[%s12971_s7 + $0x520] sm:$0xff] }
 0x3ae   : > { %7759 = vmatprep.subr.mxu1 %v7222_v0  ;;  %7243 = vmatmul.mubr.msk.f32.gmra.mxu0 %vm4251_vm8, %v10783_v34  ;;  %v4020_v0 = vld [vmem:[%s12971_s7 + $0x28] sm:$0xff] }
 0x3af   : > { %7806 = vmatpush3.msra.mxu0 %v4056_v4  ;;  %7760 = vmatpush3.msra.mxu1 %v7174_v9  ;;  %v7138_v4 = vld [vmem:[%s12971_s7 + $0x3a0] sm:$0xff]  ;;  %v4065_v9 = vld [vmem:[%s12971_s7 + $0x190] sm:$0xff] }
 0x3b0   : > { %7807 = vmatprep.subr.mxu0 %v4101_v14  ;;  %4782 = vmatprep.mubr.f32.mxu0 %v10720_v15  ;;  %v7183_v14 = vld [vmem:[%s12971_s7 + $0x508] sm:$0xff] }
 0x3b1   : > { %4403 = vmatprep.mubr.f32.mxu1 %v13042_v55  ;;  %7761 = vmatprep.subr.mxu1 %v7219_v18  ;;  %v4017_v18 = vld [vmem:[%s12971_s7 + $0x10] sm:$0xff] }
 0x3b2   : > { %7808 = vmatpush3.msra.mxu0 %v4053_v20  ;;  %7239 = vmatmul.mubr.msk.f32.gmra.mxu1 %vm4251_vm8, %v10797_v24  ;;  %v7135_v20 = vld [vmem:[%s12971_s7 + $0x388] sm:$0xff] }
 0x3b3   : > { %7762 = vmatpush3.msra.mxu1 %v7171_v2  ;;  %7809 = vmatprep.subr.mxu0 %v4098_v5  ;;  %v4122_v2 = vld [vmem:[%s12971_s7 + $0x358] sm:$0xff]  ;;  %v7180_v5 = vld [vmem:[%s12971_s7 + $0x4f0] sm:$0xff] }
 0x3b4   : > { %7763 = vmatprep.subr.mxu1 %v7216_v42  ;;  %4474 = vmatprep.mubr.f32.mxu1 %v10738_v59  ;;  %v4044_v59 = vld [vmem:[%s12971_s7 + $0xe8] sm:$0xff]  ;;  %v7132_v42 = vld [vmem:[%s12971_s7 + $0x370] sm:$0xff] }
 0x3b5   : > { %7810 = vmatpush3.msra.mxu0 %v4050_v17  ;;  %7764 = vmatpush3.msra.mxu1 %v7168_v10  ;;  %v4119_v17 = vld [vmem:[%s12971_s7 + $0x340] sm:$0xff]  ;;  %v7237_v10 = vld [vmem:[%s12971_s7 + $0x6b8] sm:$0xff] }
 0x3b6   : > { %7811 = vmatprep.subr.mxu0 %v4095_v1  ;;  %7765 = vmatprep.subr.mxu1 %v7213_v3  ;;  %v4116_v1 = vld [vmem:[%s12971_s7 + $0x328] sm:$0xff]  ;;  %v7234_v3 = vld [vmem:[%s12971_s7 + $0x6a0] sm:$0xff] }
 0x3b7   : > { %7812 = vmatpush3.msra.mxu0 %v4047_v26  ;;  %7766 = vmatpush3.msra.mxu1 %v7165_v35  ;;  %v7231_v26 = vld [vmem:[%s12971_s7 + $0x688] sm:$0xff]  ;;  %v11034_v35 = vrot.slane %v10726_v8, 2 }
 0x3b8   : > { %7813 = vmatprep.subr.mxu0 %v4092_v13  ;;  %7767 = vmatprep.subr.mxu1 %v7210_v33  ;;  %v7228_v13 = vld [vmem:[%s12971_s7 + $0x670] sm:$0xff]  ;;  %v7289_v33 = vld [vmem:[%s12971_s7 + $0x818] sm:$0xff] }
 0x3b9   : > { %7814 = vmatpush3.msra.mxu0 %v4044_v59  ;;  %7768 = vmatpush3.msra.mxu1 %v7162_v45  ;;  %v7288_v45 = vld [vmem:[%s12971_s7 + $0x810] sm:$0xff] }
 0x3ba   : > { %7815 = vmatprep.subr.mxu0 %v4089_v44  ;;  %7769 = vmatprep.subr.mxu1 %v7207_v47  ;;  %v7286_v44 = vld [vmem:[%s12971_s7 + $0x800] sm:$0xff]  ;;  %v4058_v47 = vld [vmem:[%s12971_s7 + $0x158] sm:$0xff] }
 0x3bb   : > { %7816 = vmatpush3.msra.mxu0 %v4041_v49  ;;  %7770 = vmatpush3.msra.mxu1 %v7159_v25  ;;  %v7285_v49 = vld [vmem:[%s12971_s7 + $0x7f8] sm:$0xff]  ;;  %v4057_v25 = vld [vmem:[%s12971_s7 + $0x150] sm:$0xff] }
 0x3bc   : > { %7817 = vmatprep.subr.mxu0 %v4086_v51  ;;  %7771 = vmatprep.subr.mxu1 %v7204_v53  ;;  %v4055_v51 = vld [vmem:[%s12971_s7 + $0x140] sm:$0xff] }
 0x3bd   : > { %7818 = vmatpush3.msra.mxu0 %v4038_v28  ;;  %7772 = vmatpush3.msra.mxu1 %v7156_v31  ;;  %v7282_v53 = vld [vmem:[%s12971_s7 + $0x7e0] sm:$0xff]  ;;  %v4054_v28 = vld [vmem:[%s12971_s7 + $0x138] sm:$0xff]  ;;  %v4052_v31 = vld [vmem:[%s12971_s7 + $0x128] sm:$0xff] }
 0x3be   : > { %7819 = vmatprep.subr.mxu0 %v4083_v56  ;;  %7773 = vmatprep.subr.mxu1 %v7201_v57  ;;  %v7279_v56 = vld [vmem:[%s12971_s7 + $0x7c8] sm:$0xff]  ;;  %v4051_v57 = vld [vmem:[%s12971_s7 + $0x120] sm:$0xff] }
 0x3bf   : > { %7820 = vmatpush3.msra.mxu0 %v4035_v19  ;;  %7774 = vmatpush3.msra.mxu1 %v7153_v58  ;;  %v7277_v19 = vld [vmem:[%s12971_s7 + $0x7b8] sm:$0xff]  ;;  %v4049_v58 = vld [vmem:[%s12971_s7 + $0x110] sm:$0xff] }
 0x3c0   : > { %7821 = vmatprep.subr.mxu0 %v4080_v61  ;;  %7775 = vmatprep.subr.mxu1 %v7198_v62  ;;  %v7276_v61 = vld [vmem:[%s12971_s7 + $0x7b0] sm:$0xff]  ;;  %v4048_v62 = vld [vmem:[%s12971_s7 + $0x108] sm:$0xff] }
 0x3c1   : > { %7822 = vmatpush3.msra.mxu0 %v4032_v22  ;;  %7776 = vmatpush3.msra.mxu1 %v7150_v40  ;;  %v7274_v22 = vld [vmem:[%s12971_s7 + $0x7a0] sm:$0xff]  ;;  %v4046_v40 = vld [vmem:[%s12971_s7 + $0xf8] sm:$0xff] }
 0x3c2   : > { %7823 = vmatprep.subr.mxu0 %v4077_v36  ;;  %7777 = vmatprep.subr.mxu1 %v7195_v27  ;;  %v7273_v36 = vld [vmem:[%s12971_s7 + $0x798] sm:$0xff]  ;;  %v4045_v27 = vld [vmem:[%s12971_s7 + $0xf0] sm:$0xff] }
 0x3c3   : > { %7824 = vmatpush3.msra.mxu0 %v4029_v12  ;;  %7778 = vmatpush3.msra.mxu1 %v7147_v29  ;;  %v7271_v12 = vld [vmem:[%s12971_s7 + $0x788] sm:$0xff]  ;;  %v4043_v29 = vld [vmem:[%s12971_s7 + $0xe0] sm:$0xff] }
 0x3c4   : > { %7825 = vmatprep.subr.mxu0 %v4074_v30  ;;  %7779 = vmatprep.subr.mxu1 %v7192_v46  ;;  %v7270_v30 = vld [vmem:[%s12971_s7 + $0x780] sm:$0xff]  ;;  %v4042_v46 = vld [vmem:[%s12971_s7 + $0xd8] sm:$0xff] }
 0x3c5   : > { %7826 = vmatpush3.msra.mxu0 %v4026_v48  ;;  %7780 = vmatpush3.msra.mxu1 %v7144_v50  ;;  %v7268_v48 = vld [vmem:[%s12971_s7 + $0x770] sm:$0xff]  ;;  %v4040_v50 = vld [vmem:[%s12971_s7 + $0xc8] sm:$0xff] }
 0x3c6   : > { %7827 = vmatprep.subr.mxu0 %v4071_v41  ;;  %7781 = vmatprep.subr.mxu1 %v7189_v23  ;;  %v7267_v41 = vld [vmem:[%s12971_s7 + $0x768] sm:$0xff]  ;;  %v4039_v23 = vld [vmem:[%s12971_s7 + $0xc0] sm:$0xff] }
 0x3c7   : > { %7828 = vmatpush3.msra.mxu0 %v4023_v60  ;;  %7782 = vmatpush3.msra.mxu1 %v7141_v39  ;;  %v7265_v60 = vld [vmem:[%s12971_s7 + $0x758] sm:$0xff]  ;;  %v4037_v39 = vld [vmem:[%s12971_s7 + $0xb0] sm:$0xff] }
 0x3c8   : > { %7829 = vmatprep.subr.mxu0 %v4068_v7  ;;  %7783 = vmatprep.subr.mxu1 %v7186_v63  ;;  %v7264_v7 = vld [vmem:[%s12971_s7 + $0x750] sm:$0xff]  ;;  %v4036_v63 = vld [vmem:[%s12971_s7 + $0xa8] sm:$0xff] }
 0x3c9   : > { %7830 = vmatpush3.msra.mxu0 %v4020_v0  ;;  %7784 = vmatpush3.msra.mxu1 %v7138_v4  ;;  %v7262_v0 = vld [vmem:[%s12971_s7 + $0x740] sm:$0xff]  ;;  %v4034_v4 = vld [vmem:[%s12971_s7 + $0x98] sm:$0xff] }
 0x3ca   : > { %7831 = vmatprep.subr.mxu0 %v4065_v9  ;;  %7785 = vmatprep.subr.mxu1 %v7183_v14  ;;  %v7261_v9 = vld [vmem:[%s12971_s7 + $0x738] sm:$0xff]  ;;  %v4033_v14 = vld [vmem:[%s12971_s7 + $0x90] sm:$0xff] }
 0x3cb   : > { %7832 = vmatpush3.msra.mxu0 %v4017_v18  ;;  %7786 = vmatpush3.msra.mxu1 %v7135_v20  ;;  %v7259_v18 = vld [vmem:[%s12971_s7 + $0x728] sm:$0xff]  ;;  %v4031_v20 = vld [vmem:[%s12971_s7 + $0x80] sm:$0xff] }
 0x3cc   : > { %4783 = vmatmul.mubr.f32.vlgmr.msra.gmra.mxu0 %v10724_v16  ;;  %8091 = vmatprep.subr.mxu0 %v4122_v2 }
 0x3cd   : > { %7787 = vmatprep.subr.mxu1 %v7180_v5  ;;  %4787 = vmatprep.mubr.f32.mxu0 %v10726_v8  ;;  %v4030_v5 = vld [vmem:[%s12971_s7 + $0x78] sm:$0xff] }
 0x3ce   : > { %8092 = vmatpush3.msra.mxu0 %v4122_v2  ;;  %7788 = vmatpush3.msra.mxu1 %v7132_v42  ;;  %v7258_v2 = vld [vmem:[%s12971_s7 + $0x720] sm:$0xff]  ;;  %v7256_v42 = vld [vmem:[%s12971_s7 + $0x710] sm:$0xff] }
 0x3cf   : > { %8093 = vmatprep.subr.mxu0 %v4119_v17  ;;  %4475 = vmatmul.mubr.f32.vlgmr.msra.gmra.mxu1 %v10746_v43  ;;  %v4113_v43 = vld [vmem:[%s12971_s7 + $0x310] sm:$0xff] }
 0x3d0   : > { %8080 = vmatprep.subr.mxu1 %v7237_v10  ;;  %8094 = vmatpush3.msra.mxu0 %v4119_v17  ;;  %v4028_v17 = vld [vmem:[%s12971_s7 + $0x68] sm:$0xff] }
 0x3d1   : > { %4479 = vmatprep.mubr.f32.mxu1 %v10733_v32  ;;  %8081 = vmatpush3.msra.mxu1 %v7237_v10  ;;  %v7292_v32 = vld [vmem:[%s12971_s7 + $0x830] sm:$0xff]  ;;  %v7255_v10 = vld [vmem:[%s12971_s7 + $0x708] sm:$0xff] }
 0x3d2   : > { %4788 = vmatmul.mubr.f32.gmra.mxu0 %v10722_v6  ;;  %8095 = vmatprep.subr.mxu0 %v4116_v1 }
 0x3d3   : > { %8082 = vmatprep.subr.mxu1 %v7234_v3  ;;  %8096 = vmatpush3.msra.mxu0 %v4116_v1  ;;  %v4027_v1 = vld [vmem:[%s12971_s7 + $0x60] sm:$0xff] }
 0x3d4   : > { %8099 = vmatprep.mubr.msk.f32.mxu0 %vm4251_vm8, %v10785_v52  ;;  %8083 = vmatpush3.msra.mxu1 %v7234_v3  ;;  %v7291_v52 = vld [vmem:[%s12971_s7 + $0x828] sm:$0xff]  ;;  %v7253_v3 = vld [vmem:[%s12971_s7 + $0x6f8] sm:$0xff] }
 0x3d5   : > { %8097 = vmatprep.subr.mxu0 %v4113_v43  ;;  %4480 = vmatmul.mubr.f32.gmra.mxu1 %v10729_v11  ;;  %v4980_v11 = vrot.slane %v10720_v15, 2 }
 0x3d6   : > { %8084 = vmatprep.subr.mxu1 %v7231_v26  ;;  %8098 = vmatpush3.msra.mxu0 %v4113_v43  ;;  %v4025_v43 = vld [vmem:[%s12971_s7 + $0x50] sm:$0xff] }
 0x3d7   : > { %8085 = vmatpush3.msra.mxu1 %v7231_v26  ;;  %8088 = vmatprep.mubr.msk.f32.mxu1 %vm4251_vm8, %v10815_v54  ;;  %v11052_v59 = vsel %vm1214_vm4, %v4980_v11, %v11034_v35  ;;  %v4061_v54 = vld [vmem:[%s12971_s7 + $0x170] sm:$0xff]  ;;  %v7249_v11 = vld [vmem:[%s12971_s7 + $0x6d8] sm:$0xff] }
 0x3d8   : > { %8100 = vmatmul.mubr.msk.f32.vlgmr.msra.gmra.mxu0 %vm4251_vm8, %v10783_v34  ;;  %4994 = vmatprep.subr.mxu0 %v7292_v32  ;;  %v4060_v34 = vld [vmem:[%s12971_s7 + $0x168] sm:$0xff]  ;;  %v7252_v26 = vld [vmem:[%s12971_s7 + $0x6f0] sm:$0xff] }
 0x3d9   : > { %8086 = vmatprep.subr.mxu1 %v7228_v13  ;;  %4995 = vmatpush1.msra.mxu0 %v7291_v52  ;;  %v4024_v32 = vld [vmem:[%s12971_s7 + $0x48] sm:$0xff]  ;;  %v4022_v52 = vld [vmem:[%s12971_s7 + $0x38] sm:$0xff] }
 0x3da   : > { %5058 = vmatprep.mubr.f32.mxu0 %v11052_v59  ;;  %8087 = vmatpush3.msra.mxu1 %v7228_v13  ;;  %v7250_v13 = vld [vmem:[%s12971_s7 + $0x6e0] sm:$0xff] }
 0x3db   : > { %4996 = vmatprep.subr.mxu0 %v7289_v33  ;;  %8089 = vmatmul.mubr.msk.f32.vlgmr.msra.gmra.mxu1 %vm4251_vm8, %v10797_v24  ;;  %v7283_v24 = vld [vmem:[%s12971_s7 + $0x7e8] sm:$0xff]  ;;  %v4021_v33 = vld [vmem:[%s12971_s7 + $0x30] sm:$0xff] }
 0x3dc   : > { %4564 = vmatprep.subr.mxu1 %v4061_v54  ;;  %4997 = vmatpush1.msra.mxu0 %v7288_v45  ;;  %v7247_v54 = vld [vmem:[%s12971_s7 + $0x6c8] sm:$0xff]  ;;  %v4019_v45 = vld [vmem:[%s12971_s7 + $0x20] sm:$0xff] }
 0x3dd   : > { %4565 = vmatpush1.msra.mxu1 %v4060_v34  ;;  %4628 = vmatprep.mubr.f32.mxu1 %v10720_v15  ;;  %v7280_v15 = vld [vmem:[%s12971_s7 + $0x7d0] sm:$0xff]  ;;  %v7246_v34 = vld [vmem:[%s12971_s7 + $0x6c0] sm:$0xff] }
 0x3de   : > { %4998 = vmatprep.subr.mxu0 %v7286_v44  ;;  %4566 = vmatprep.subr.mxu1 %v4058_v47  ;;  %v4018_v44 = vld [vmem:[%s12971_s7 + $0x18] sm:$0xff]  ;;  %v7340_v47 = vld [vmem:[%s12971_s7 + $0x9b0] sm:$0xff] }
 0x3df   : > { %4999 = vmatpush1.msra.mxu0 %v7285_v49  ;;  %4567 = vmatpush1.msra.mxu1 %v4057_v25  ;;  %v4016_v49 = vld [vmem:[%s12971_s7 + $0x8] sm:$0xff] }
 0x3e0   : > { %5000 = vmatprep.subr.mxu0 %v7283_v24  ;;  %4568 = vmatprep.subr.mxu1 %v4055_v51  ;;  %v7339_v25 = vld [vmem:[%s12971_s7 + $0x9a8] sm:$0xff]  ;;  %v4015_v24 = vld [vmem:[%s12971_s7] sm:$0xff]  ;;  %v7337_v51 = vld [vmem:[%s12971_s7 + $0x998] sm:$0xff] }
 0x3e1   : > { %5001 = vmatpush1.msra.mxu0 %v7282_v53  ;;  %4569 = vmatpush1.msra.mxu1 %v4054_v28  ;;  %v4109_v53 = vld [vmem:[%s12971_s7 + $0x2f0] sm:$0xff] }
 0x3e2   : > { %5002 = vmatprep.subr.mxu0 %v7280_v15  ;;  %4570 = vmatprep.subr.mxu1 %v4052_v31  ;;  %v7336_v28 = vld [vmem:[%s12971_s7 + $0x990] sm:$0xff]  ;;  %v4108_v15 = vld [vmem:[%s12971_s7 + $0x2e8] sm:$0xff]  ;;  %v7334_v31 = vld [vmem:[%s12971_s7 + $0x980] sm:$0xff] }
 0x3e3   : > { %5003 = vmatpush1.msra.mxu0 %v7279_v56  ;;  %4571 = vmatpush1.msra.mxu1 %v4051_v57  ;;  %v4106_v56 = vld [vmem:[%s12971_s7 + $0x2d8] sm:$0xff] }
 0x3e4   : > { %5004 = vmatprep.subr.mxu0 %v7277_v19  ;;  %4572 = vmatprep.subr.mxu1 %v4049_v58  ;;  %v7333_v57 = vld [vmem:[%s12971_s7 + $0x978] sm:$0xff]  ;;  %v4105_v19 = vld [vmem:[%s12971_s7 + $0x2d0] sm:$0xff]  ;;  %v7331_v58 = vld [vmem:[%s12971_s7 + $0x968] sm:$0xff] }
 0x3e5   : > { %5005 = vmatpush1.msra.mxu0 %v7276_v61  ;;  %4573 = vmatpush1.msra.mxu1 %v4048_v62  ;;  %v4103_v61 = vld [vmem:[%s12971_s7 + $0x2c0] sm:$0xff] }
 0x3e6   : > { %5006 = vmatprep.subr.mxu0 %v7274_v22  ;;  %4574 = vmatprep.subr.mxu1 %v4046_v40  ;;  %v7330_v62 = vld [vmem:[%s12971_s7 + $0x960] sm:$0xff]  ;;  %v4102_v22 = vld [vmem:[%s12971_s7 + $0x2b8] sm:$0xff]  ;;  %v7328_v40 = vld [vmem:[%s12971_s7 + $0x950] sm:$0xff] }
 0x3e7   : > { %5007 = vmatpush1.msra.mxu0 %v7273_v36  ;;  %4575 = vmatpush1.msra.mxu1 %v4045_v27  ;;  %v4100_v36 = vld [vmem:[%s12971_s7 + $0x2a8] sm:$0xff] }
 0x3e8   : > { %5008 = vmatprep.subr.mxu0 %v7271_v12  ;;  %4576 = vmatprep.subr.mxu1 %v4043_v29  ;;  %v7327_v27 = vld [vmem:[%s12971_s7 + $0x948] sm:$0xff]  ;;  %v4099_v12 = vld [vmem:[%s12971_s7 + $0x2a0] sm:$0xff]  ;;  %v7325_v29 = vld [vmem:[%s12971_s7 + $0x938] sm:$0xff] }
 0x3e9   : > { %5009 = vmatpush1.msra.mxu0 %v7270_v30  ;;  %4577 = vmatpush1.msra.mxu1 %v4042_v46  ;;  %v4097_v30 = vld [vmem:[%s12971_s7 + $0x290] sm:$0xff] }
 0x3ea   : > { %5010 = vmatprep.subr.mxu0 %v7268_v48  ;;  %4578 = vmatprep.subr.mxu1 %v4040_v50  ;;  %v7324_v46 = vld [vmem:[%s12971_s7 + $0x930] sm:$0xff]  ;;  %v4096_v48 = vld [vmem:[%s12971_s7 + $0x288] sm:$0xff]  ;;  %v7322_v50 = vld [vmem:[%s12971_s7 + $0x920] sm:$0xff] }
 0x3eb   : > { %5011 = vmatpush1.msra.mxu0 %v7267_v41  ;;  %4579 = vmatpush1.msra.mxu1 %v4039_v23  ;;  %v4094_v41 = vld [vmem:[%s12971_s7 + $0x278] sm:$0xff] }
 0x3ec   : > { %5012 = vmatprep.subr.mxu0 %v7265_v60  ;;  %4580 = vmatprep.subr.mxu1 %v4037_v39  ;;  %v7321_v23 = vld [vmem:[%s12971_s7 + $0x918] sm:$0xff]  ;;  %v4093_v60 = vld [vmem:[%s12971_s7 + $0x270] sm:$0xff]  ;;  %v7319_v39 = vld [vmem:[%s12971_s7 + $0x908] sm:$0xff] }
 0x3ed   : > { %5013 = vmatpush1.msra.mxu0 %v7264_v7  ;;  %4581 = vmatpush1.msra.mxu1 %v4036_v63  ;;  %v4091_v7 = vld [vmem:[%s12971_s7 + $0x260] sm:$0xff] }
 0x3ee   : > { %5014 = vmatprep.subr.mxu0 %v7262_v0  ;;  %4582 = vmatprep.subr.mxu1 %v4034_v4  ;;  %v7318_v63 = vld [vmem:[%s12971_s7 + $0x900] sm:$0xff]  ;;  %v4090_v0 = vld [vmem:[%s12971_s7 + $0x258] sm:$0xff]  ;;  %v7316_v4 = vld [vmem:[%s12971_s7 + $0x8f0] sm:$0xff] }
 0x3ef   : > { %5015 = vmatpush1.msra.mxu0 %v7261_v9  ;;  %4583 = vmatpush1.msra.mxu1 %v4033_v14  ;;  %v4088_v9 = vld [vmem:[%s12971_s7 + $0x248] sm:$0xff] }
 0x3f0   : > { %5016 = vmatprep.subr.mxu0 %v7259_v18  ;;  %4584 = vmatprep.subr.mxu1 %v4031_v20  ;;  %v7315_v14 = vld [vmem:[%s12971_s7 + $0x8e8] sm:$0xff]  ;;  %v4087_v18 = vld [vmem:[%s12971_s7 + $0x240] sm:$0xff]  ;;  %v7313_v20 = vld [vmem:[%s12971_s7 + $0x8d8] sm:$0xff] }
 0x3f1   : > { %5017 = vmatpush1.msra.mxu0 %v7258_v2  ;;  %4585 = vmatpush1.msra.mxu1 %v4030_v5  ;;  %v4085_v2 = vld [vmem:[%s12971_s7 + $0x230] sm:$0xff] }
 0x3f2   : > { %5018 = vmatprep.subr.mxu0 %v7256_v42  ;;  %4586 = vmatprep.subr.mxu1 %v4028_v17  ;;  %v7312_v5 = vld [vmem:[%s12971_s7 + $0x8d0] sm:$0xff]  ;;  %v4084_v42 = vld [vmem:[%s12971_s7 + $0x228] sm:$0xff]  ;;  %v7310_v17 = vld [vmem:[%s12971_s7 + $0x8c0] sm:$0xff] }
 0x3f3   : > { %5019 = vmatpush1.msra.mxu0 %v7255_v10  ;;  %4587 = vmatpush1.msra.mxu1 %v4027_v1  ;;  %v4082_v10 = vld [vmem:[%s12971_s7 + $0x218] sm:$0xff] }
 0x3f4   : > { %5020 = vmatprep.subr.mxu0 %v7253_v3  ;;  %4588 = vmatprep.subr.mxu1 %v4025_v43  ;;  %v7309_v1 = vld [vmem:[%s12971_s7 + $0x8b8] sm:$0xff]  ;;  %v4081_v3 = vld [vmem:[%s12971_s7 + $0x210] sm:$0xff]  ;;  %v7307_v43 = vld [vmem:[%s12971_s7 + $0x8a8] sm:$0xff] }
 0x3f5   : > { %5021 = vmatpush1.msra.mxu0 %v7252_v26  ;;  %4589 = vmatpush1.msra.mxu1 %v4024_v32  ;;  %v4079_v26 = vld [vmem:[%s12971_s7 + $0x200] sm:$0xff] }
 0x3f6   : > { %5022 = vmatprep.subr.mxu0 %v7250_v13  ;;  %4590 = vmatprep.subr.mxu1 %v4022_v52  ;;  %v7306_v32 = vld [vmem:[%s12971_s7 + $0x8a0] sm:$0xff]  ;;  %v4078_v13 = vld [vmem:[%s12971_s7 + $0x1f8] sm:$0xff]  ;;  %v7304_v52 = vld [vmem:[%s12971_s7 + $0x890] sm:$0xff] }
 0x3f7   : > { %5023 = vmatpush1.msra.mxu0 %v7249_v11  ;;  %4591 = vmatpush1.msra.mxu1 %v4021_v33  ;;  %v4076_v11 = vld [vmem:[%s12971_s7 + $0x1e8] sm:$0xff] }
 0x3f8   : > { %5024 = vmatprep.subr.mxu0 %v7247_v54  ;;  %4592 = vmatprep.subr.mxu1 %v4019_v45  ;;  %v7303_v33 = vld [vmem:[%s12971_s7 + $0x888] sm:$0xff]  ;;  %v4075_v54 = vld [vmem:[%s12971_s7 + $0x1e0] sm:$0xff]  ;;  %v7301_v45 = vld [vmem:[%s12971_s7 + $0x878] sm:$0xff] }
 0x3f9   : > { %5025 = vmatpush1.msra.mxu0 %v7246_v34  ;;  %4593 = vmatpush1.msra.mxu1 %v4018_v44  ;;  %v4073_v34 = vld [vmem:[%s12971_s7 + $0x1d0] sm:$0xff] }
 0x3fa   : > { %5026 = vmatprep.subr.mxu0 %v7340_v47  ;;  %4594 = vmatprep.subr.mxu1 %v4016_v49  ;;  %v7300_v44 = vld [vmem:[%s12971_s7 + $0x870] sm:$0xff]  ;;  %v4072_v47 = vld [vmem:[%s12971_s7 + $0x1c8] sm:$0xff]  ;;  %v7298_v49 = vld [vmem:[%s12971_s7 + $0x860] sm:$0xff] }
 0x3fb   : > { %5027 = vmatpush2.msra.mxu0 %v7339_v25  ;;  %4595 = vmatpush1.msra.mxu1 %v4015_v24  ;;  %v4070_v25 = vld [vmem:[%s12971_s7 + $0x1b8] sm:$0xff] }
 0x3fc   : > { %5028 = vmatprep.subr.mxu0 %v7337_v51  ;;  %4596 = vmatprep.subr.mxu1 %v4109_v53  ;;  %v7297_v24 = vld [vmem:[%s12971_s7 + $0x858] sm:$0xff]  ;;  %v4069_v51 = vld [vmem:[%s12971_s7 + $0x1b0] sm:$0xff]  ;;  %v7295_v53 = vld [vmem:[%s12971_s7 + $0x848] sm:$0xff] }
 0x3fd   : > { %5029 = vmatpush2.msra.mxu0 %v7336_v28  ;;  %4597 = vmatpush2.msra.mxu1 %v4108_v15  ;;  %v4067_v28 = vld [vmem:[%s12971_s7 + $0x1a0] sm:$0xff]  ;;  %v11422_v15 = vrot.slane %v10722_v6, 2 }
 0x3fe   : > { %5030 = vmatprep.subr.mxu0 %v7334_v31  ;;  %4598 = vmatprep.subr.mxu1 %v4106_v56  ;;  %v7294_v31 = vld [vmem:[%s12971_s7 + $0x840] sm:$0xff]  ;;  %v4066_v56 = vld [vmem:[%s12971_s7 + $0x198] sm:$0xff] }
 0x3ff   : > { %5031 = vmatpush2.msra.mxu0 %v7333_v57  ;;  %4599 = vmatpush2.msra.mxu1 %v4105_v19  ;;  %v4977_v57 = vrot.slane %v10724_v16, 2  ;;  %v4064_v19 = vld [vmem:[%s12971_s7 + $0x188] sm:$0xff] }
 0x400   : > { %5032 = vmatprep.subr.mxu0 %v7331_v58  ;;  %4600 = vmatprep.subr.mxu1 %v4103_v61  ;;  %v4063_v58 = vld [vmem:[%s12971_s7 + $0x180] sm:$0xff] }
 0x401   : > { %5033 = vmatpush2.msra.mxu0 %v7330_v62  ;;  %4601 = vmatpush2.msra.mxu1 %v4102_v22  ;;  %v11439_v61 = vsel %vm1214_vm4, %v4977_v57, %v11422_v15  ;;  %v7352_v62 = vld [vmem:[%s12971_s7 + $0xa10] sm:$0xff]  ;;  %v7351_v22 = vld [vmem:[%s12971_s7 + $0xa08] sm:$0xff] }
 0x402   : > { %5034 = vmatprep.subr.mxu0 %v7328_v40  ;;  %4602 = vmatprep.subr.mxu1 %v4100_v36  ;;  %v7349_v40 = vld [vmem:[%s12971_s7 + $0x9f8] sm:$0xff]  ;;  %v7348_v36 = vld [vmem:[%s12971_s7 + $0x9f0] sm:$0xff]  ;;  %v5648_v57 = vld [vmem:[%s12975_s11 + $0x88] sm:$0xff] }
 0x403   : > { %5035 = vmatpush2.msra.mxu0 %v7327_v27  ;;  %4603 = vmatpush2.msra.mxu1 %v4099_v12  ;;  %v7346_v27 = vld [vmem:[%s12971_s7 + $0x9e0] sm:$0xff]  ;;  %v7345_v12 = vld [vmem:[%s12971_s7 + $0x9d8] sm:$0xff] }
 0x404   : > { %5036 = vmatprep.subr.mxu0 %v7325_v29  ;;  %4604 = vmatprep.subr.mxu1 %v4097_v30  ;;  %v7341_v29 = vld [vmem:[%s12971_s7 + $0x9b8] sm:$0xff] }
 0x405   : > { %5037 = vmatpush2.msra.mxu0 %v7324_v46  ;;  %4605 = vmatpush2.msra.mxu1 %v4096_v48  ;;  %v7293_v30 = vld [vmem:[%s12971_s7 + $0x838] sm:$0xff]  ;;  %v7290_v46 = vld [vmem:[%s12971_s7 + $0x820] sm:$0xff]  ;;  %v7335_v48 = vld [vmem:[%s12971_s7 + $0x988] sm:$0xff] }
 0x406   : > { %5038 = vmatprep.subr.mxu0 %v7322_v50  ;;  %4606 = vmatprep.subr.mxu1 %v4094_v41  ;;  %v7287_v50 = vld [vmem:[%s12971_s7 + $0x808] sm:$0xff]  ;;  %v7332_v41 = vld [vmem:[%s12971_s7 + $0x970] sm:$0xff] }
 0x407   : > { %5039 = vmatpush2.msra.mxu0 %v7321_v23  ;;  %4607 = vmatpush2.msra.mxu1 %v4093_v60  ;;  %v7284_v23 = vld [vmem:[%s12971_s7 + $0x7f0] sm:$0xff]  ;;  %v7329_v60 = vld [vmem:[%s12971_s7 + $0x958] sm:$0xff] }
 0x408   : > { %5040 = vmatprep.subr.mxu0 %v7319_v39  ;;  %4608 = vmatprep.subr.mxu1 %v4091_v7  ;;  %v7281_v39 = vld [vmem:[%s12971_s7 + $0x7d8] sm:$0xff]  ;;  %v7326_v7 = vld [vmem:[%s12971_s7 + $0x940] sm:$0xff] }
 0x409   : > { %5041 = vmatpush2.msra.mxu0 %v7318_v63  ;;  %4609 = vmatpush2.msra.mxu1 %v4090_v0  ;;  %v7278_v63 = vld [vmem:[%s12971_s7 + $0x7c0] sm:$0xff]  ;;  %v7275_v0 = vld [vmem:[%s12971_s7 + $0x7a8] sm:$0xff] }
 0x40a   : > { %5042 = vmatprep.subr.mxu0 %v7316_v4  ;;  %4610 = vmatprep.subr.mxu1 %v4088_v9  ;;  %v7320_v4 = vld [vmem:[%s12971_s7 + $0x910] sm:$0xff] }
 0x40b   : > { %5043 = vmatpush2.msra.mxu0 %v7315_v14  ;;  %4611 = vmatpush2.msra.mxu1 %v4087_v18  ;;  %v7272_v9 = vld [vmem:[%s12971_s7 + $0x790] sm:$0xff]  ;;  %v7317_v14 = vld [vmem:[%s12971_s7 + $0x8f8] sm:$0xff] }
 0x40c   : > { %5044 = vmatprep.subr.mxu0 %v7313_v20  ;;  %4612 = vmatprep.subr.mxu1 %v4085_v2  ;;  %v7269_v18 = vld [vmem:[%s12971_s7 + $0x778] sm:$0xff]  ;;  %v7314_v20 = vld [vmem:[%s12971_s7 + $0x8e0] sm:$0xff] }
 0x40d   : > { %5045 = vmatpush2.msra.mxu0 %v7312_v5  ;;  %4613 = vmatpush2.msra.mxu1 %v4084_v42  ;;  %v7266_v2 = vld [vmem:[%s12971_s7 + $0x760] sm:$0xff]  ;;  %v7311_v5 = vld [vmem:[%s12971_s7 + $0x8c8] sm:$0xff] }
 0x40e   : > { %5046 = vmatprep.subr.mxu0 %v7310_v17  ;;  %4614 = vmatprep.subr.mxu1 %v4082_v10  ;;  %v7263_v42 = vld [vmem:[%s12971_s7 + $0x748] sm:$0xff]  ;;  %v7308_v17 = vld [vmem:[%s12971_s7 + $0x8b0] sm:$0xff] }
 0x40f   : > { %5047 = vmatpush2.msra.mxu0 %v7309_v1  ;;  %4615 = vmatpush2.msra.mxu1 %v4081_v3  ;;  %v7260_v10 = vld [vmem:[%s12971_s7 + $0x730] sm:$0xff]  ;;  %v7305_v1 = vld [vmem:[%s12971_s7 + $0x898] sm:$0xff] }
 0x410   : > { %5048 = vmatprep.subr.mxu0 %v7307_v43  ;;  %4616 = vmatprep.subr.mxu1 %v4079_v26  ;;  %v7257_v3 = vld [vmem:[%s12971_s7 + $0x718] sm:$0xff]  ;;  %v7302_v43 = vld [vmem:[%s12971_s7 + $0x880] sm:$0xff] }
 0x411   : > { %5049 = vmatpush2.msra.mxu0 %v7306_v32  ;;  %4617 = vmatpush2.msra.mxu1 %v4078_v13  ;;  %v7254_v26 = vld [vmem:[%s12971_s7 + $0x700] sm:$0xff]  ;;  %v7299_v32 = vld [vmem:[%s12971_s7 + $0x868] sm:$0xff] }
 0x412   : > { %5050 = vmatprep.subr.mxu0 %v7304_v52  ;;  %4618 = vmatprep.subr.mxu1 %v4076_v11  ;;  %v7251_v13 = vld [vmem:[%s12971_s7 + $0x6e8] sm:$0xff]  ;;  %v7296_v52 = vld [vmem:[%s12971_s7 + $0x850] sm:$0xff] }
 0x413   : > { %5051 = vmatpush2.msra.mxu0 %v7303_v33  ;;  %4619 = vmatpush2.msra.mxu1 %v4075_v54  ;;  %v7248_v11 = vld [vmem:[%s12971_s7 + $0x6d0] sm:$0xff]  ;;  %v7353_v33 = vld [vmem:[%s12971_s7 + $0xa18] sm:$0xff]  ;;  %v7350_v54 = vld [vmem:[%s12971_s7 + $0xa00] sm:$0xff] }
 0x414   : > { %5052 = vmatprep.subr.mxu0 %v7301_v45  ;;  %4620 = vmatprep.subr.mxu1 %v4073_v34  ;;  %v7347_v45 = vld [vmem:[%s12971_s7 + $0x9e8] sm:$0xff]  ;;  %v7344_v34 = vld [vmem:[%s12971_s7 + $0x9d0] sm:$0xff] }
 0x415   : > { %5053 = vmatpush2.msra.mxu0 %v7300_v44  ;;  %4621 = vmatpush2.msra.mxu1 %v4072_v47  ;;  %v5661_v44 = vld [vmem:[%s12975_s11 + $0xf0] sm:$0xff]  ;;  %v5660_v47 = vld [vmem:[%s12975_s11 + $0xe8] sm:$0xff] }
 0x416   : > { %5054 = vmatprep.subr.mxu0 %v7298_v49  ;;  %4622 = vmatprep.subr.mxu1 %v4070_v25  ;;  %v5657_v49 = vld [vmem:[%s12975_s11 + $0xd0] sm:$0xff]  ;;  %v5656_v25 = vld [vmem:[%s12975_s11 + $0xc8] sm:$0xff] }
 0x417   : > { %5055 = vmatpush2.msra.mxu0 %v7297_v24  ;;  %4623 = vmatpush2.msra.mxu1 %v4069_v51  ;;  %v5655_v24 = vld [vmem:[%s12975_s11 + $0xc0] sm:$0xff]  ;;  %v5654_v51 = vld [vmem:[%s12975_s11 + $0xb8] sm:$0xff] }
 0x418   : > { %5056 = vmatprep.subr.mxu0 %v7295_v53  ;;  %4624 = vmatprep.subr.mxu1 %v4067_v28  ;;  %v5653_v53 = vld [vmem:[%s12975_s11 + $0xb0] sm:$0xff]  ;;  %v5652_v28 = vld [vmem:[%s12975_s11 + $0xa8] sm:$0xff] }
 0x419   : > { %5057 = vmatpush2.msra.mxu0 %v7294_v31  ;;  %4625 = vmatpush2.msra.mxu1 %v4066_v56  ;;  %v5650_v31 = vld [vmem:[%s12975_s11 + $0x98] sm:$0xff]  ;;  %v5649_v56 = vld [vmem:[%s12975_s11 + $0x90] sm:$0xff] }
 0x41a   : > { %5059 = vmatmul.mubr.f32.vlgmr.msra.gmra.mxu0 %v11439_v61  ;;  %4626 = vmatprep.subr.mxu1 %v4064_v19  ;;  %v5647_v19 = vld [vmem:[%s12975_s11 + $0x80] sm:$0xff] }
 0x41b   : > { %5064 = vmatprep.mubr.f32.mxu0 %v11034_v35  ;;  %4627 = vmatpush2.msra.mxu1 %v4063_v58 }
 0x41c   : > { %4629 = vmatmul.mubr.f32.vlgmr.msra.gmra.mxu1 %v10724_v16  ;;  %5095 = vmatprep.subr.mxu1 %v7352_v62  ;;  %v7343_v16 = vld [vmem:[%s12971_s7 + $0x9c8] sm:$0xff]  ;;  %v5645_v62 = vld [vmem:[%s12975_s11 + $0x70] sm:$0xff] }
 0x41d   : > { %4634 = vmatprep.mubr.f32.mxu1 %v10726_v8  ;;  %5096 = vmatpush1.msra.mxu1 %v7351_v22  ;;  %v7342_v8 = vld [vmem:[%s12971_s7 + $0x9c0] sm:$0xff]  ;;  %v5644_v22 = vld [vmem:[%s12975_s11 + $0x68] sm:$0xff] }
 0x41e   : > { %5065 = vmatmul.mubr.f32.gmra.mxu0 %v11422_v15  ;;  %5097 = vmatprep.subr.mxu1 %v7349_v40  ;;  %v5643_v40 = vld [vmem:[%s12975_s11 + $0x60] sm:$0xff] }
 0x41f   : > { %5098 = vmatpush1.msra.mxu1 %v7348_v36 }
 0x420   : > { %4635 = vmatmul.mubr.f32.gmra.mxu1 %v10722_v6  ;;  %5099 = vmatprep.subr.mxu1 %v7346_v27  ;;  %v7338_v6 = vld [vmem:[%s12971_s7 + $0x9a0] sm:$0xff]  ;;  %v5642_v27 = vld [vmem:[%s12975_s11 + $0x58] sm:$0xff] }
 0x421   : > { %5100 = vmatpush1.msra.mxu1 %v7345_v12  ;;  %5135 = vmatprep.mubr.f32.mxu1 %v13042_v55  ;;  %v5641_v12 = vld [vmem:[%s12975_s11 + $0x50] sm:$0xff] }
 0x422   : > { %5101 = vmatprep.subr.mxu1 %v7343_v16  ;;  %v5640_v16 = vld [vmem:[%s12975_s11 + $0x48] sm:$0xff] }
 0x423   : > { %5102 = vmatpush1.msra.mxu1 %v7342_v8  ;;  %v5639_v8 = vld [vmem:[%s12975_s11 + $0x40] sm:$0xff] }
 0x424   : > { %7354 = vmatmul.mubr.msk.f32.vlgmr.msra.gmra.mxu1 %vm4251_vm8, %v10822_v38  ;;  %7845 = vmatprep.subr.mxu1 %v7341_v29 }
 0x425   : > { %7846 = vmatpush3.msra.mxu1 %v7293_v30  ;;  %5141 = vmatprep.mubr.f32.mxu1 %v13042_v55  ;;  %v5638_v30 = vld [vmem:[%s12975_s11 + $0x38] sm:$0xff] }
 0x426   : > { %7847 = vmatprep.subr.mxu1 %v7338_v6  ;;  %v5637_v6 = vld [vmem:[%s12975_s11 + $0x30] sm:$0xff] }
 0x427   : > { %7848 = vmatpush3.msra.mxu1 %v7290_v46  ;;  %v5636_v46 = vld [vmem:[%s12975_s11 + $0x28] sm:$0xff] }
 0x428   : > { %7355 = vmatmul.mubr.msk.f32.gmra.mxu1 %vm4251_vm8, %v10791_v21  ;;  %7849 = vmatprep.subr.mxu1 %v7335_v48  ;;  %v5635_v48 = vld [vmem:[%s12975_s11 + $0x20] sm:$0xff] }
 0x429   : > { %7850 = vmatpush3.msra.mxu1 %v7287_v50  ;;  %5212 = vmatprep.mubr.f32.mxu1 %v11052_v59  ;;  %v7323_v59 = vld [vmem:[%s12971_s7 + $0x928] sm:$0xff] }
 0x42a   : > { %7851 = vmatprep.subr.mxu1 %v7332_v41 }
 0x42b   : > { %7852 = vmatpush3.msra.mxu1 %v7284_v23  ;;  %v5634_v23 = vld [vmem:[%s12975_s11 + $0x18] sm:$0xff] }
 0x42c   : > { %7853 = vmatprep.subr.mxu1 %v7329_v60  ;;  %v5633_v60 = vld [vmem:[%s12975_s11 + $0x10] sm:$0xff] }
 0x42d   : > { %7854 = vmatpush3.msra.mxu1 %v7281_v39 }
 0x42e   : > { %7855 = vmatprep.subr.mxu1 %v7326_v7  ;;  %v5632_v7 = vld [vmem:[%s12975_s11 + $0x8] sm:$0xff] }
 0x42f   : > { %7856 = vmatpush3.msra.mxu1 %v7278_v63  ;;  %v5631_v63 = vld [vmem:[%s12975_s11] sm:$0xff] }
 0x430   : > { %7857 = vmatprep.subr.mxu1 %v7323_v59 }
 0x431   : > { %7858 = vmatpush3.msra.mxu1 %v7275_v0  ;;  %v5694_v0 = vld [vmem:[%s12975_s11 + $0x1f8] sm:$0xff] }
 0x432   : > { %7859 = vmatprep.subr.mxu1 %v7320_v4  ;;  %v5693_v4 = vld [vmem:[%s12975_s11 + $0x1f0] sm:$0xff] }
 0x433   : > { %7860 = vmatpush3.msra.mxu1 %v7272_v9 }
 0x434   : > { %7861 = vmatprep.subr.mxu1 %v7317_v14  ;;  %v5692_v14 = vld [vmem:[%s12975_s11 + $0x1e8] sm:$0xff] }
 0x435   : > { %7862 = vmatpush3.msra.mxu1 %v7269_v18  ;;  %v5691_v18 = vld [vmem:[%s12975_s11 + $0x1e0] sm:$0xff] }
 0x436   : > { %7863 = vmatprep.subr.mxu1 %v7314_v20 }
 0x437   : > { %7864 = vmatpush3.msra.mxu1 %v7266_v2  ;;  %v5690_v2 = vld [vmem:[%s12975_s11 + $0x1d8] sm:$0xff] }
 0x438   : > { %7865 = vmatprep.subr.mxu1 %v7311_v5  ;;  %v5689_v5 = vld [vmem:[%s12975_s11 + $0x1d0] sm:$0xff] }
 0x439   : > { %7866 = vmatpush3.msra.mxu1 %v7263_v42 }
 0x43a   : > { %7867 = vmatprep.subr.mxu1 %v7308_v17  ;;  %v5688_v17 = vld [vmem:[%s12975_s11 + $0x1c8] sm:$0xff] }
 0x43b   : > { %7868 = vmatpush3.msra.mxu1 %v7260_v10  ;;  %v5687_v10 = vld [vmem:[%s12975_s11 + $0x1c0] sm:$0xff] }
 0x43c   : > { %7869 = vmatprep.subr.mxu1 %v7305_v1 }
 0x43d   : > { %7870 = vmatpush3.msra.mxu1 %v7257_v3  ;;  %v5686_v3 = vld [vmem:[%s12975_s11 + $0x1b8] sm:$0xff] }
 0x43e   : > { %7871 = vmatprep.subr.mxu1 %v7302_v43  ;;  %v5685_v43 = vld [vmem:[%s12975_s11 + $0x1b0] sm:$0xff] }
 0x43f   : > { %7872 = vmatpush3.msra.mxu1 %v7254_v26 }
 0x440   : > { %7873 = vmatprep.subr.mxu1 %v7299_v32 }
 0x441   : > { %7874 = vmatpush3.msra.mxu1 %v7251_v13  ;;  %v5684_v13 = vld [vmem:[%s12975_s11 + $0x1a8] sm:$0xff] }
 0x442   : > { %7875 = vmatprep.subr.mxu1 %v7296_v52  ;;  %v5683_v52 = vld [vmem:[%s12975_s11 + $0x1a0] sm:$0xff] }
 0x443   : > { %7876 = vmatpush3.msra.mxu1 %v7248_v11 }
 0x444   : > { %5213 = vmatmul.mubr.f32.vlgmr.msra.gmra.mxu1 %v11439_v61  ;;  %8102 = vmatprep.subr.mxu1 %v7353_v33  ;;  %v5646_v61 = vld [vmem:[%s12975_s11 + $0x78] sm:$0xff] }
 0x445   : > { %5217 = vmatprep.mubr.f32.mxu1 %v11034_v35  ;;  %8103 = vmatpush3.msra.mxu1 %v7353_v33  ;;  %v5662_v35 = vld [vmem:[%s12975_s11 + $0xf8] sm:$0xff] }
 0x446   : > { %8104 = vmatprep.subr.mxu1 %v7350_v54  ;;  %5714 = vmatprep.subr.mxu0 %v5662_v35  ;;  %v11642_v58 = vpop.f32.mrf.mxu0  ;;  %v5682_v33 = vld [vmem:[%s12975_s11 + $0x198] sm:$0xff]  ;;  %v5679_v35 = vld [vmem:[%s12975_s11 + $0x180] sm:$0xff] }
 0x447   : > { %8105 = vmatpush3.msra.mxu1 %v7350_v54  ;;  %5715 = vmatpush1.msra.mxu0 %v5661_v44  ;;  %v5681_v54 = vld [vmem:[%s12975_s11 + $0x190] sm:$0xff] }
 0x448   : > { %5218 = vmatmul.mubr.f32.gmra.mxu1 %v11422_v15  ;;  %8106 = vmatprep.subr.mxu1 %v7347_v45  ;;  %v5651_v15 = vld [vmem:[%s12975_s11 + $0xa0] sm:$0xff]  ;;  %v11656_v36 = vpop.f32.mrf.mxu0 }
 0x449   : > { %8107 = vmatpush3.msra.mxu1 %v7347_v45  ;;  %8110 = vmatprep.mubr.msk.f32.mxu1 %vm4251_vm8, %v10822_v38  ;;  %v5659_v38 = vld [vmem:[%s12975_s11 + $0xe0] sm:$0xff] }
 0x44a   : > { %8108 = vmatprep.subr.mxu1 %v7344_v34  ;;  %5716 = vmatprep.subr.mxu0 %v5660_v47  ;;  %v11670_v29 = vpop.f32.mrf.mxu0  ;;  %v5678_v47 = vld [vmem:[%s12975_s11 + $0x178] sm:$0xff] }
 0x44b   : > { %8109 = vmatpush3.msra.mxu1 %v7344_v34  ;;  %5717 = vmatpush1.msra.mxu0 %v5659_v38  ;;  %v5680_v34 = vld [vmem:[%s12975_s11 + $0x188] sm:$0xff]  ;;  %v5677_v38 = vld [vmem:[%s12975_s11 + $0x170] sm:$0xff] }
 0x44c   : > { %8111 = vmatmul.mubr.msk.f32.vlgmr.msra.gmra.mxu1 %vm4251_vm8, %v10791_v21  ;;  %v5658_v21 = vld [vmem:[%s12975_s11 + $0xd8] sm:$0xff]  ;;  %v11684_v50 = vpop.f32.mrf.mxu0 }
 0x44d   : > { %5406 = vmatprep.mubr.f32.mxu1 %v13042_v55  ;;  %5718 = vmatprep.subr.mxu0 %v5658_v21 }
 0x44e   : > { %5719 = vmatpush1.msra.mxu0 %v5657_v49  ;;  %v5676_v49 = vld [vmem:[%s12975_s11 + $0x168] sm:$0xff] }
 0x44f   : > { %5720 = vmatprep.subr.mxu0 %v5656_v25 }
 0x450   : > { %5721 = vmatpush1.msra.mxu0 %v5655_v24 }
 0x451   : > { %5722 = vmatprep.subr.mxu0 %v5654_v51 }
 0x452   : > { %5723 = vmatpush1.msra.mxu0 %v5653_v53 }
 0x453   : > { %5724 = vmatprep.subr.mxu0 %v5652_v28 }
 0x454   : > { %5725 = vmatpush1.msra.mxu0 %v5651_v15 }
 0x455   : > { %5726 = vmatprep.subr.mxu0 %v5650_v31 }
 0x456   : > { %5727 = vmatpush1.msra.mxu0 %v5649_v56 }
 0x457   : > { %5728 = vmatprep.subr.mxu0 %v5648_v57 }
 0x458   : > { %5729 = vmatpush1.msra.mxu0 %v5647_v19 }
 0x459   : > { %5730 = vmatprep.subr.mxu0 %v5646_v61 }
 0x45a   : > { %5731 = vmatpush1.msra.mxu0 %v5645_v62 }
 0x45b   : > { %5732 = vmatprep.subr.mxu0 %v5644_v22 }
 0x45c   : > { %5733 = vmatpush1.msra.mxu0 %v5643_v40 }
 0x45d   : > { %5734 = vmatprep.subr.mxu0 %v5642_v27 }
 0x45e   : > { %5735 = vmatpush1.msra.mxu0 %v5641_v12 }
 0x45f   : > { %5736 = vmatprep.subr.mxu0 %v5640_v16 }
 0x460   : > { %5737 = vmatpush1.msra.mxu0 %v5639_v8 }
 0x461   : > { %5738 = vmatprep.subr.mxu0 %v5638_v30 }
 0x462   : > { %5739 = vmatpush1.msra.mxu0 %v5637_v6 }
 0x463   : > { %5740 = vmatprep.subr.mxu0 %v5636_v46 }
 0x464   : > { %5741 = vmatpush1.msra.mxu0 %v5635_v48 }
 0x465   : > { %5742 = vmatprep.subr.mxu0 %v5634_v23 }
 0x466   : > { %5743 = vmatpush1.msra.mxu0 %v5633_v60 }
 0x467   : > { %5744 = vmatprep.subr.mxu0 %v5632_v7 }
 0x468   : > { %5745 = vmatpush1.msra.mxu0 %v5631_v63 }
 0x469   : > { %v11694_v39 = vpop.f32.mrf.mxu0  ;;  %5746 = vmatprep.subr.mxu0 %v5694_v0 }
 0x46a   : > { %5747 = vmatpush2.msra.mxu0 %v5693_v4 }
 0x46b   : > { %v11710_v9 = vpop.f32.mrf.mxu0  ;;  %5748 = vmatprep.subr.mxu0 %v5692_v14 }
 0x46c   : > { %v11686_v41 = vpop.f32.mrf.mxu1  ;;  %5749 = vmatpush2.msra.mxu0 %v5691_v18 }
 0x46d   : > { %5750 = vmatprep.subr.mxu0 %v5690_v2  ;;  %v4400_v8 = vadd.f32 %v11686_v41, %v11642_v58  ;;  %v5304_v58 = vld [vmem:[%s12972_s8] sm:$0x7] }
 0x46e   : > { %v11702_v59 = vpop.f32.mrf.mxu1  ;;  %v11724_v42 = vpop.f32.mrf.mxu0  ;;  %5751 = vmatpush2.msra.mxu0 %v5689_v5 }
 0x46f   : > { %5752 = vmatprep.subr.mxu0 %v5688_v17  ;;  %v4402_v12 = vadd.f32 %v11702_v59, %v11656_v36  ;;  %v13045_v17 = vld [vmem:[#allocation20_spill] sm:$0xff] }
 0x470   : > { %v4715_v26 = vpop.f32.mrf.mxu0  ;;  %5753 = vmatpush2.msra.mxu0 %v5687_v10  ;;  %v5313_v10 = vrot.slane %v5304_v58, %v13045_v17 }
 0x471   : > { %5754 = vmatprep.subr.mxu0 %v5686_v3  ;;  %v13046_v3 = vld [vmem:[#allocation19_spill] sm:$0xff] }
 0x472   : > { %v4405_v20 = vpop.f32.mrf.mxu1  ;;  %5755 = vmatpush2.msra.mxu0 %v5685_v43 }
 0x473   : > { %5756 = vmatprep.subr.mxu0 %v5684_v13  ;;  %v4406_v40 = vadd.f32 %v4405_v20, %v11670_v29 }
 0x474   : > { %v4407_v1 = vpop.f32.mrf.mxu1  ;;  %5757 = vmatpush2.msra.mxu0 %v5683_v52 }
 0x475   : > { %5758 = vmatprep.subr.mxu0 %v5682_v33  ;;  %v4408_v16 = vadd.f32 %v4407_v1, %v11684_v50 }
 0x476   : > { %5759 = vmatpush2.msra.mxu0 %v5681_v54 }
 0x477   : > { %5760 = vmatprep.subr.mxu0 %v5680_v34 }
 0x478   : > { %5761 = vmatpush2.msra.mxu0 %v5679_v35 }
 0x479   : > { %5762 = vmatprep.subr.mxu0 %v5678_v47 }
 0x47a   : > { %5763 = vmatpush2.msra.mxu0 %v5677_v38 }
 0x47b   : > { %5764 = vmatprep.subr.mxu0 %v5676_v49 }
 0x48c   : > { %v11746_v11 = vpop.f32.mrf.mxu0 }
 0x48e   : > { %v11762_v44 = vpop.f32.mrf.mxu0 }
 0x48f   : > { %v11738_v32 = vpop.f32.mrf.mxu1 }
 0x491   : > { %v11754_v45 = vpop.f32.mrf.mxu1 }
 0x492   : > { %v11773_v25 = vpop.f32.mrf.mxu0  ;;  %v7791_v54 = vadd.f32 %v11754_v45, %v11738_v32  ;;  %v13047_v32 = vsub.s32 2, %v13034_v37  ;;  %v5483_v37 = vld [vmem:[%s12974_s10] sm:$0x1f] }
 0x494   : > { %v7837_v51 = vpop.f32.mrf.mxu0  ;;  %v5317_v45 = vrot.slane %v5304_v58, %v13047_v32  ;;  %v5882_v32 = vld [vmem:[%s12976_s12 + $0xd0] sm:$0xff] }
 0x495   : > { %v7792_v21 = vpop.f32.mrf.mxu1  ;;  %v7838_v47 = vadd.f32 %v7837_v51, %v11773_v25 }
 0x497   : > { %v7793_v24 = vpop.f32.mrf.mxu1 }
 0x498   : > { %v11775_v28 = vpop.f32.mrf.mxu0  ;;  %v7794_v52 = vadd.f32 %v7793_v24, %v7792_v21 }
 0x49a   : > { %v11777_v31 = vpop.f32.mrf.mxu0 }
 0x49b   : > { %v8090_v53 = vpop.f32.mrf.mxu1 }
 0x49c   : > { %v4557_v34 = vadd.f32 %v8090_v53, %v7794_v52 }
 0x49d   : > { %v4551_v15 = vpop.f32.mrf.mxu1 }
 0x49e   : > { %v4552_v38 = vadd.f32 %v7791_v54, %v4551_v15 }
 0x4da   : > { %v5060_v57 = vpop.f32.mrf.mxu0 }
 0x4dc   : > { %v4630_v56 = vpop.f32.mrf.mxu1  ;;  %v5062_v62 = vpop.f32.mrf.mxu0 }
 0x4dd   : > { %v4631_v60 = vadd.f32 %v4630_v56, %v4400_v8  ;;  %v7835_v56 = vadd.f32 %v11762_v44, %v11746_v11  ;;  %v5710_v44 = vld [vmem:[%s12975_s11 + $0x278] sm:$0xff] }
 0x4de   : > { %v4632_v19 = vpop.f32.mrf.mxu1  ;;  %v5066_v30 = vpop.f32.mrf.mxu0  ;;  %v5674_v8 = vld [vmem:[%s12975_s11 + $0x158] sm:$0xff] }
 0x4df   : > { %v4633_v48 = vadd.f32 %v4632_v19, %v4402_v12  ;;  %v4708_v59 = vadd.f32 %v11694_v39, %v4631_v60  ;;  %v5327_v39 = vld [vmem:[%s12973_s9] sm:$0x1f] }
 0x4e0   : > { %v4636_v61 = vpop.f32.mrf.mxu1  ;;  %v5068_v4 = vpop.f32.mrf.mxu0  ;;  %v5671_v60 = vld [vmem:[%s12975_s11 + $0x140] sm:$0xff] }
 0x4e1   : > { %v4637_v6 = vadd.f32 %v4636_v61, %v4406_v40  ;;  %v4710_v36 = vadd.f32 %v11710_v9, %v4633_v48  ;;  %v4785_v61 = vadd.f32 %v7835_v56, %v4552_v38  ;;  %v5672_v48 = vld [vmem:[%s12975_s11 + $0x148] sm:$0xff]  ;;  %v5934_v38 = vld [vmem:[%s12976_s12 + $0x270] sm:$0xff] }
 0x4e2   : > { %v4638_v22 = vpop.f32.mrf.mxu1  ;;  %v5886_v56 = vld [vmem:[%s12976_s12 + $0xf0] sm:$0xff] }
 0x4e3   : > { %v4639_v23 = vadd.f32 %v4638_v22, %v4408_v16  ;;  %v4714_v29 = vadd.f32 %v11724_v42, %v4637_v6  ;;  %v5309_v42 = vrot.slane %v5304_v58, %v13046_v3  ;;  %v4860_v25 = vadd.f32 %v11777_v31, %v4785_v61  ;;  %v5675_v31 = vld [vmem:[%s12975_s11 + $0x160] sm:$0xff]  ;;  %v5708_v16 = vld [vmem:[%s12975_s11 + $0x268] sm:$0xff]  ;;  %v5673_v6 = vld [vmem:[%s12975_s11 + $0x150] sm:$0xff] }
 0x4e4   : > { %v5137_v27 = vpop.f32.mrf.mxu1  ;;  %5765 = vmatpush2.msra.mxu0 %v5675_v31  ;;  %v5666_v58 = vld [vmem:[%s12975_s11 + $0x118] sm:$0xff]  ;;  %v5876_v31 = vld [vmem:[%s12976_s12 + $0xa0] sm:$0xff] }
 0x4e5   : > { %v5138_v14 = vadd.f32 %v5137_v27, %v5060_v57  ;;  %v4716_v50 = vadd.f32 %v4715_v26, %v4639_v23  ;;  %v4790_v57 = vadd.f32 %v7838_v47, %v4557_v34  ;;  %5766 = vmatprep.subr.mxu0 %v5674_v8  ;;  %v5705_v23 = vld [vmem:[%s12975_s11 + $0x250] sm:$0xff]  ;;  %v5875_v8 = vld [vmem:[%s12976_s12 + $0x98] sm:$0xff] }
 0x4e6   : > { %v5139_v46 = vpop.f32.mrf.mxu1  ;;  %5767 = vmatpush2.msra.mxu0 %v5673_v6  ;;  %v5874_v6 = vld [vmem:[%s12976_s12 + $0x90] sm:$0xff] }
 0x4e7   : > { %v5140_v63 = vadd.f32 %v5139_v46, %v5062_v62  ;;  %v5298_v1 = vadd.f32 %v5138_v14, %v4708_v59  ;;  %v4865_v21 = vadd.f32 %v11775_v28, %v4790_v57  ;;  %v5709_v28 = vld [vmem:[%s12975_s11 + $0x270] sm:$0xff]  ;;  %v5706_v46 = vld [vmem:[%s12975_s11 + $0x258] sm:$0xff]  ;;  %5768 = vmatprep.subr.mxu0 %v5672_v48  ;;  %v5668_v14 = vld [vmem:[%s12975_s11 + $0x128] sm:$0xff] }
 0x4e8   : > { %v5143_v7 = vpop.f32.mrf.mxu1  ;;  %5769 = vmatpush2.msra.mxu0 %v5671_v60  ;;  %v5665_v59 = vld [vmem:[%s12975_s11 + $0x110] sm:$0xff]  ;;  %v5933_v57 = vld [vmem:[%s12976_s12 + $0x268] sm:$0xff]  ;;  %v5872_v60 = vld [vmem:[%s12976_s12 + $0x80] sm:$0xff] }
 0x4e9   : > { %v5144_v0 = vadd.f32 %v5143_v7, %v5066_v30  ;;  %v5299_v2 = vadd.f32 %v5140_v63, %v4710_v36  ;;  %v5321_v26 = vadd.f32 %v5309_v42, %v5298_v1  ;;  %v5707_v30 = vld [vmem:[%s12975_s11 + $0x260] sm:$0xff]  ;;  %v5704_v7 = vld [vmem:[%s12975_s11 + $0x248] sm:$0xff]  ;;  %v5670_v63 = vld [vmem:[%s12975_s11 + $0x138] sm:$0xff] }
 0x4ea   : > { %v5145_v18 = vpop.f32.mrf.mxu1  ;;  %5770 = vmatprep.subr.mxu0 %v5670_v63  ;;  %v5667_v36 = vld [vmem:[%s12975_s11 + $0x120] sm:$0xff]  ;;  %v5696_v1 = vld [vmem:[%s12975_s11 + $0x208] sm:$0xff]  ;;  %v5870_v63 = vld [vmem:[%s12976_s12 + $0x70] sm:$0xff] }
 0x4eb   : > { %v5146_v41 = vadd.f32 %v5145_v18, %v5068_v4  ;;  %v5301_v20 = vadd.f32 %v5144_v0, %v4714_v29  ;;  %v5322_v9 = vadd.f32 %v5313_v10, %v5299_v2  ;;  %v5703_v0 = vld [vmem:[%s12975_s11 + $0x240] sm:$0xff]  ;;  %v5669_v4 = vld [vmem:[%s12975_s11 + $0x130] sm:$0xff]  ;;  %v5702_v29 = vld [vmem:[%s12975_s11 + $0x238] sm:$0xff] }
 0x4ec   : > { %5771 = vmatpush2.msra.mxu0 %v5669_v4  ;;  %v5701_v18 = vld [vmem:[%s12975_s11 + $0x230] sm:$0xff]  ;;  %v5664_v2 = vld [vmem:[%s12975_s11 + $0x108] sm:$0xff]  ;;  %v5868_v4 = vld [vmem:[%s12976_s12 + $0x60] sm:$0xff] }
 0x4ed   : > { %v5302_v5 = vadd.f32 %v5146_v41, %v4716_v50  ;;  %v5324_v13 = vadd.f32 %v5309_v42, %v5301_v20  ;;  %5772 = vmatprep.subr.mxu0 %v5668_v14  ;;  %v5700_v50 = vld [vmem:[%s12975_s11 + $0x228] sm:$0xff]  ;;  %v5699_v41 = vld [vmem:[%s12975_s11 + $0x220] sm:$0xff]  ;;  %v5698_v20 = vld [vmem:[%s12975_s11 + $0x218] sm:$0xff] }
 0x4ee   : > { %5773 = vmatpush2.msra.mxu0 %v5667_v36  ;;  %v5695_v42 = vld [vmem:[%s12975_s11 + $0x200] sm:$0xff]  ;;  %v5873_v48 = vld [vmem:[%s12976_s12 + $0x88] sm:$0xff]  ;;  %v5866_v14 = vld [vmem:[%s12976_s12 + $0x50] sm:$0xff] }
 0x4ef   : > { %v5325_v43 = vadd.f32 %v5313_v10, %v5302_v5  ;;  %5774 = vmatprep.subr.mxu0 %v5666_v58  ;;  %v5697_v5 = vld [vmem:[%s12975_s11 + $0x210] sm:$0xff]  ;;  %v5663_v10 = vld [vmem:[%s12975_s11 + $0x100] sm:$0xff] }
 0x4f0   : > { %5775 = vmatpush2.msra.mxu0 %v5665_v59  ;;  %v5864_v36 = vld [vmem:[%s12976_s12 + $0x40] sm:$0xff]  ;;  %v5862_v58 = vld [vmem:[%s12976_s12 + $0x30] sm:$0xff] }
 0x4f1   : > { %7358 = vmatprep.subr.msk.mxu1 %vm5332_vm9, %v5325_v43  ;;  %5776 = vmatprep.subr.mxu0 %v5664_v2  ;;  %v5860_v59 = vld [vmem:[%s12976_s12 + $0x20] sm:$0xff]  ;;  %v5858_v2 = vld [vmem:[%s12976_s12 + $0x10] sm:$0xff] }
 0x4f2   : > { %7359 = vmatpush1.msk.msra.mxu1 %vm5332_vm9, %v5324_v13  ;;  %5777 = vmatpush2.msra.mxu0 %v5663_v10  ;;  %v5856_v10 = vld [vmem:[%s12976_s12] sm:$0xff] }
 0x4f3   : > { %5372 = vmatprep.subr.mxu1 %v5322_v9 }
 0x4f4   : > { %5373 = vmatpush1.msra.mxu1 %v5321_v26 }
 0x4f5   : > { %7360 = vmatmul.mubr.msk.f32.vlgmr.msra.gmra.mxu1 %vm5328_vm10, %v5327_v39  ;;  %8113 = vmatprep.subr.mxu1 %v13042_v55 }
 0x4f6   : > { %8117 = vmatprep.mubr.msk.f32.mxu1 %vm8254_vm3, %v13042_v55 }
 0x504   : > { %v7877_v33 = vpop.f32.mrf.mxu1 }
 0x506   : > { %v7878_v35 = vpop.f32.mrf.mxu1 }
 0x507   : > { %v7879_v40 = vadd.f32 %v7878_v35, %v7877_v33 }
 0x508   : > { %v7880_v49 = vpop.f32.mrf.mxu1 }
 0x50a   : > { %v7881_v19 = vpop.f32.mrf.mxu1 }
 0x50b   : > { %v7882_v62 = vadd.f32 %v7881_v19, %v7880_v49  ;;  %v5885_v19 = vld [vmem:[%s12976_s12 + $0xe8] sm:$0xff] }
 0x50c   : > { %v8112_v22 = vpop.f32.mrf.mxu1 }
 0x50d   : > { %v5295_v24 = vadd.f32 %v8112_v22, %v7882_v62  ;;  %v5932_v62 = vld [vmem:[%s12976_s12 + $0x260] sm:$0xff] }
 0x50e   : > { %v5289_v53 = vpop.f32.mrf.mxu1  ;;  %v5884_v22 = vld [vmem:[%s12976_s12 + $0xe0] sm:$0xff] }
 0x50f   : > { %v5303_v27 = vadd.f32 %v5295_v24, %v4865_v21  ;;  %v5290_v51 = vadd.f32 %v7879_v40, %v5289_v53  ;;  %v5931_v40 = vld [vmem:[%s12976_s12 + $0x258] sm:$0xff]  ;;  %v5930_v24 = vld [vmem:[%s12976_s12 + $0x250] sm:$0xff]  ;;  %v5881_v53 = vld [vmem:[%s12976_s12 + $0xc8] sm:$0xff] }
 0x510   : > { %v5883_v21 = vld [vmem:[%s12976_s12 + $0xd8] sm:$0xff] }
 0x511   : > { %v5326_v15 = vadd.f32 %v5317_v45, %v5303_v27  ;;  %v5300_v12 = vadd.f32 %v5290_v51, %v4860_v25  ;;  %v5928_v27 = vld [vmem:[%s12976_s12 + $0x240] sm:$0xff]  ;;  %v5927_v51 = vld [vmem:[%s12976_s12 + $0x238] sm:$0xff] }
 0x512   : > { %v5880_v25 = vld [vmem:[%s12976_s12 + $0xc0] sm:$0xff] }
 0x513   : > { %v5323_v11 = vadd.f32 %v5317_v45, %v5300_v12  ;;  %8114 = vmatpush3.msk.msra.mxu1 %vm5332_vm9, %v5326_v15  ;;  %v5929_v45 = vld [vmem:[%s12976_s12 + $0x248] sm:$0xff]  ;;  %v5926_v12 = vld [vmem:[%s12976_s12 + $0x230] sm:$0xff] }
 0x514   : > { %8115 = vmatprep.subr.mxu1 %v13042_v55 }
 0x515   : > { %8116 = vmatpush3.msra.mxu1 %v5323_v11 }
 0x516   : > { %8118 = vmatmul.mubr.msk.f32.vlgmr.msra.gmra.mxu1 %vm5328_vm10, %v5327_v39  ;;  %7363 = vmatprep.subr.msk.mxu1 %vm5332_vm9, %v5325_v43  ;;  %v5935_v43 = vld [vmem:[%s12976_s12 + $0x278] sm:$0xff] }
 0x517   : > { %7364 = vmatpush1.msk.msra.mxu1 %vm5332_vm9, %v5324_v13  ;;  %5551 = vmatprep.mubr.f32.mxu1 %v13042_v55  ;;  %v5887_v13 = vld [vmem:[%s12976_s12 + $0xf8] sm:$0xff] }
 0x518   : > { %5517 = vmatprep.subr.mxu1 %v5322_v9  ;;  %6023 = vmatprep.subr.mxu0 %v5935_v43  ;;  %v5917_v43 = vld [vmem:[%s12976_s12 + $0x1e8] sm:$0xff] }
 0x519   : > { %5518 = vmatpush1.msra.mxu1 %v5321_v26 }
 0x51a   : > { %7365 = vmatmul.mubr.msk.f32.vlgmr.msra.gmra.mxu1 %vm5328_vm10, %v5483_v37  ;;  %8120 = vmatprep.subr.mxu1 %v13042_v55 }
 0x51b   : > { %8121 = vmatpush3.msk.msra.mxu1 %vm5332_vm9, %v5326_v15  ;;  %8124 = vmatprep.mubr.msk.f32.mxu1 %vm8254_vm3, %v13042_v55  ;;  %v5879_v15 = vld [vmem:[%s12976_s12 + $0xb8] sm:$0xff] }
 0x51c   : > { %8122 = vmatprep.subr.mxu1 %v13042_v55 }
 0x51d   : > { %8123 = vmatpush3.msra.mxu1 %v5323_v11  ;;  %v5878_v11 = vld [vmem:[%s12976_s12 + $0xb0] sm:$0xff] }
 0x51e   : > { %8125 = vmatmul.mubr.msk.f32.vlgmr.msra.gmra.mxu1 %vm5328_vm10, %v5483_v37  ;;  %5801 = vmatprep.subr.mxu1 %v5710_v44  ;;  %v5925_v37 = vld [vmem:[%s12976_s12 + $0x228] sm:$0xff] }
 0x51f   : > { %5802 = vmatpush1.msra.mxu1 %v5709_v28  ;;  %5849 = vmatprep.mubr.f32.mxu1 %v13042_v55  ;;  %v5877_v44 = vld [vmem:[%s12976_s12 + $0xa8] sm:$0xff]  ;;  %v5924_v28 = vld [vmem:[%s12976_s12 + $0x220] sm:$0xff] }
 0x520   : > { %5803 = vmatprep.subr.mxu1 %v5708_v16  ;;  %v5923_v16 = vld [vmem:[%s12976_s12 + $0x218] sm:$0xff] }
 0x521   : > { %5804 = vmatpush1.msra.mxu1 %v5707_v30  ;;  %v5922_v30 = vld [vmem:[%s12976_s12 + $0x210] sm:$0xff] }
 0x522   : > { %5805 = vmatprep.subr.mxu1 %v5706_v46  ;;  %v5921_v46 = vld [vmem:[%s12976_s12 + $0x208] sm:$0xff] }
 0x523   : > { %5806 = vmatpush1.msra.mxu1 %v5705_v23  ;;  %v5920_v23 = vld [vmem:[%s12976_s12 + $0x200] sm:$0xff] }
 0x524   : > { %5807 = vmatprep.subr.mxu1 %v5704_v7  ;;  %v5871_v7 = vld [vmem:[%s12976_s12 + $0x78] sm:$0xff] }
 0x525   : > { %5808 = vmatpush1.msra.mxu1 %v5703_v0  ;;  %v5869_v0 = vld [vmem:[%s12976_s12 + $0x68] sm:$0xff] }
 0x526   : > { %5809 = vmatprep.subr.mxu1 %v5702_v29  ;;  %v5867_v29 = vld [vmem:[%s12976_s12 + $0x58] sm:$0xff] }
 0x527   : > { %5810 = vmatpush1.msra.mxu1 %v5701_v18  ;;  %v5865_v18 = vld [vmem:[%s12976_s12 + $0x48] sm:$0xff] }
 0x528   : > { %5811 = vmatprep.subr.mxu1 %v5700_v50  ;;  %v5863_v50 = vld [vmem:[%s12976_s12 + $0x38] sm:$0xff] }
 0x529   : > { %5812 = vmatpush1.msra.mxu1 %v5699_v41  ;;  %v5861_v41 = vld [vmem:[%s12976_s12 + $0x28] sm:$0xff] }
 0x52a   : > { %5813 = vmatprep.subr.mxu1 %v5698_v20  ;;  %v5859_v20 = vld [vmem:[%s12976_s12 + $0x18] sm:$0xff] }
 0x52b   : > { %5814 = vmatpush1.msra.mxu1 %v5697_v5  ;;  %v5857_v5 = vld [vmem:[%s12976_s12 + $0x8] sm:$0xff] }
 0x52c   : > { %5815 = vmatprep.subr.mxu1 %v5696_v1  ;;  %v5919_v1 = vld [vmem:[%s12976_s12 + $0x1f8] sm:$0xff] }
 0x52d   : > { %5816 = vmatpush1.msra.mxu1 %v5695_v42  ;;  %v5918_v42 = vld [vmem:[%s12976_s12 + $0x1f0] sm:$0xff] }
 0x52e   : > { %5936 = vmatprep.subr.mxu1 %v5887_v13  ;;  %v5916_v13 = vld [vmem:[%s12976_s12 + $0x1e0] sm:$0xff] }
 0x5b5   : > { %v5408_v9 = vpop.f32.mrf.mxu1 }
 0x5b7   : > { %v5410_v26 = vpop.f32.mrf.mxu1 }
 0x5d6   : > { %v5479_v39 = vpop.f32.mrf.mxu1 }
 0x5d8   : > { %v8119_v52 = vpop.f32.mrf.mxu1 }
 0x5d9   : > { %v5912_v52 = vld [vmem:[%s12976_s12 + $0x1c0] sm:$0xff] }
 0x5da   : > { %v5553_v33 = vpop.f32.mrf.mxu1 }
 0x5db   : > { %v11921_v35 = vmax.f32 %v5408_v9, %v5553_v33  ;;  %v5915_v9 = vld [vmem:[%s12976_s12 + $0x1d8] sm:$0xff] }
 0x5dc   : > { %v5555_v54 = vpop.f32.mrf.mxu1  ;;  %v5911_v33 = vld [vmem:[%s12976_s12 + $0x1b8] sm:$0xff] }
 0x5dd   : > { %v5629_v34 = vmax.f32 %v5410_v26, %v5555_v54  ;;  %v5914_v26 = vld [vmem:[%s12976_s12 + $0x1d0] sm:$0xff] }
 0x5de   : > { %v5624_v47 = vpop.f32.mrf.mxu1  ;;  %v5910_v54 = vld [vmem:[%s12976_s12 + $0x1b0] sm:$0xff] }
 0x5df   : > { %v11926_v49 = vmax.f32 %v5479_v39, %v5624_v47  ;;  %5778 = vmatprep.mubr.f32.mxu0 %v5629_v34  ;;  %v5913_v39 = vld [vmem:[%s12976_s12 + $0x1c8] sm:$0xff]  ;;  %v5908_v47 = vld [vmem:[%s12976_s12 + $0x1a0] sm:$0xff] }
 0x5e0   : > { %5779 = vmatmul.mubr.f32.vlgmr.msra.gmra.mxu0 %v11921_v35  ;;  %v8126_v61 = vpop.f32.mrf.mxu1 }
 0x5e1   : > { %6024 = vmatpush1.msra.mxu0 %v5934_v38  ;;  %7368 = vmatmul.mubr.msk.f32.vlgmr.msra.gmra.mxu1 %vm2868_vm7, %v11926_v49  ;;  %v5907_v38 = vld [vmem:[%s12976_s12 + $0x198] sm:$0xff]  ;;  %v5902_v61 = vld [vmem:[%s12976_s12 + $0x170] sm:$0xff] }
 0x5e2   : > { %5937 = vmatpush1.msra.mxu1 %v5886_v56  ;;  %6025 = vmatprep.subr.mxu0 %v5933_v57  ;;  %v5905_v56 = vld [vmem:[%s12976_s12 + $0x188] sm:$0xff]  ;;  %v5904_v57 = vld [vmem:[%s12976_s12 + $0x180] sm:$0xff] }
 0x5e3   : > { %5938 = vmatprep.subr.mxu1 %v5885_v19  ;;  %6000 = vmatprep.mubr.f32.mxu1 %v5629_v34  ;;  %v5909_v34 = vld [vmem:[%s12976_s12 + $0x1a8] sm:$0xff]  ;;  %v5903_v19 = vld [vmem:[%s12976_s12 + $0x178] sm:$0xff] }
 0x5e4   : > { %6026 = vmatpush1.msra.mxu0 %v5932_v62  ;;  %5939 = vmatpush1.msra.mxu1 %v5884_v22  ;;  %v5901_v62 = vld [vmem:[%s12976_s12 + $0x168] sm:$0xff]  ;;  %v5900_v22 = vld [vmem:[%s12976_s12 + $0x160] sm:$0xff] }
 0x5e5   : > { %6027 = vmatprep.subr.mxu0 %v5931_v40  ;;  %5940 = vmatprep.subr.mxu1 %v5883_v21  ;;  %v5899_v40 = vld [vmem:[%s12976_s12 + $0x158] sm:$0xff]  ;;  %v5898_v21 = vld [vmem:[%s12976_s12 + $0x150] sm:$0xff] }
 0x5e6   : > { %6028 = vmatpush1.msra.mxu0 %v5930_v24  ;;  %5941 = vmatpush1.msra.mxu1 %v5882_v32  ;;  %v5897_v24 = vld [vmem:[%s12976_s12 + $0x148] sm:$0xff]  ;;  %v5896_v32 = vld [vmem:[%s12976_s12 + $0x140] sm:$0xff] }
 0x5e7   : > { %6029 = vmatprep.subr.mxu0 %v5929_v45  ;;  %5942 = vmatprep.subr.mxu1 %v5881_v53  ;;  %v5895_v45 = vld [vmem:[%s12976_s12 + $0x138] sm:$0xff]  ;;  %v5894_v53 = vld [vmem:[%s12976_s12 + $0x130] sm:$0xff] }
 0x5e8   : > { %6030 = vmatpush1.msra.mxu0 %v5928_v27  ;;  %5943 = vmatpush1.msra.mxu1 %v5880_v25  ;;  %v5893_v27 = vld [vmem:[%s12976_s12 + $0x128] sm:$0xff]  ;;  %v5892_v25 = vld [vmem:[%s12976_s12 + $0x120] sm:$0xff] }
 0x5e9   : > { %6031 = vmatprep.subr.mxu0 %v5927_v51  ;;  %5944 = vmatprep.subr.mxu1 %v5879_v15  ;;  %v5891_v51 = vld [vmem:[%s12976_s12 + $0x118] sm:$0xff]  ;;  %v5890_v15 = vld [vmem:[%s12976_s12 + $0x110] sm:$0xff] }
 0x5ea   : > { %6032 = vmatpush1.msra.mxu0 %v5926_v12  ;;  %5945 = vmatpush1.msra.mxu1 %v5878_v11  ;;  %v5889_v12 = vld [vmem:[%s12976_s12 + $0x108] sm:$0xff]  ;;  %v5888_v11 = vld [vmem:[%s12976_s12 + $0x100] sm:$0xff] }
 0x5eb   : > { %6033 = vmatprep.subr.mxu0 %v5925_v37  ;;  %5946 = vmatprep.subr.mxu1 %v5877_v44  ;;  %v6113_v37 = vld [vmem:[%s12977_s13 + $0xf8] sm:$0xff]  ;;  %v6112_v44 = vld [vmem:[%s12977_s13 + $0xf0] sm:$0xff] }
 0x5ec   : > { %6034 = vmatpush1.msra.mxu0 %v5924_v28  ;;  %5947 = vmatpush1.msra.mxu1 %v5876_v31  ;;  %v7401_v28 = vld [vmem:[%s12977_s13 + $0x238] sm:$0xff]  ;;  %v6111_v31 = vld [vmem:[%s12977_s13 + $0xe8] sm:$0xff] }
 0x5ed   : > { %6035 = vmatprep.subr.mxu0 %v5923_v16  ;;  %5948 = vmatprep.subr.mxu1 %v5875_v8  ;;  %v6110_v16 = vld [vmem:[%s12977_s13 + $0xe0] sm:$0xff]  ;;  %v7399_v8 = vld [vmem:[%s12977_s13 + $0x228] sm:$0xff] }
 0x5ee   : > { %6036 = vmatpush1.msra.mxu0 %v5922_v30  ;;  %5949 = vmatpush1.msra.mxu1 %v5874_v6  ;;  %v6109_v30 = vld [vmem:[%s12977_s13 + $0xd8] sm:$0xff]  ;;  %v7398_v6 = vld [vmem:[%s12977_s13 + $0x220] sm:$0xff] }
 0x5ef   : > { %6037 = vmatprep.subr.mxu0 %v5921_v46  ;;  %5950 = vmatprep.subr.mxu1 %v5873_v48  ;;  %v6108_v46 = vld [vmem:[%s12977_s13 + $0xd0] sm:$0xff]  ;;  %v7397_v48 = vld [vmem:[%s12977_s13 + $0x218] sm:$0xff] }
 0x5f0   : > { %6038 = vmatpush1.msra.mxu0 %v5920_v23  ;;  %6071 = vmatprep.mubr.f32.mxu0 %v13042_v55  ;;  %v6107_v23 = vld [vmem:[%s12977_s13 + $0xc8] sm:$0xff] }
 0x5f1   : > { %5951 = vmatpush1.msra.mxu1 %v5872_v60  ;;  %7369 = vmatmul.mubr.msk.f32.vlgmr.msra.gmra.mxu0 %vm2868_vm7, %v11926_v49  ;;  %v5906_v49 = vld [vmem:[%s12976_s12 + $0x190] sm:$0xff] }
 0x5f2   : > { %5952 = vmatprep.subr.mxu1 %v5871_v7  ;;  %6170 = vmatprep.subr.mxu0 %v7401_v28  ;;  %v7396_v60 = vld [vmem:[%s12977_s13 + $0x210] sm:$0xff]  ;;  %v7395_v7 = vld [vmem:[%s12977_s13 + $0x208] sm:$0xff]  ;;  %v6121_v28 = vld [vmem:[%s12977_s13 + $0x138] sm:$0xff] }
 0x5f3   : > { %5953 = vmatpush1.msra.mxu1 %v5870_v63  ;;  %v6106_v63 = vld [vmem:[%s12977_s13 + $0xc0] sm:$0xff] }
 0x5f4   : > { %5954 = vmatprep.subr.mxu1 %v5869_v0  ;;  %v7394_v0 = vld [vmem:[%s12977_s13 + $0x200] sm:$0xff] }
 0x5f5   : > { %5955 = vmatpush1.msra.mxu1 %v5868_v4  ;;  %v6105_v4 = vld [vmem:[%s12977_s13 + $0xb8] sm:$0xff] }
 0x5f6   : > { %5956 = vmatprep.subr.mxu1 %v5867_v29  ;;  %v7393_v29 = vld [vmem:[%s12977_s13 + $0x1f8] sm:$0xff] }
 0x5f7   : > { %5957 = vmatpush1.msra.mxu1 %v5866_v14  ;;  %v6104_v14 = vld [vmem:[%s12977_s13 + $0xb0] sm:$0xff] }
 0x5f8   : > { %5958 = vmatprep.subr.mxu1 %v5865_v18  ;;  %v7392_v18 = vld [vmem:[%s12977_s13 + $0x1f0] sm:$0xff] }
 0x5f9   : > { %5959 = vmatpush1.msra.mxu1 %v5864_v36  ;;  %v6103_v36 = vld [vmem:[%s12977_s13 + $0xa8] sm:$0xff] }
 0x5fa   : > { %5960 = vmatprep.subr.mxu1 %v5863_v50  ;;  %v7391_v50 = vld [vmem:[%s12977_s13 + $0x1e8] sm:$0xff] }
 0x5fb   : > { %5961 = vmatpush1.msra.mxu1 %v5862_v58  ;;  %v6102_v58 = vld [vmem:[%s12977_s13 + $0xa0] sm:$0xff] }
 0x5fc   : > { %5962 = vmatprep.subr.mxu1 %v5861_v41  ;;  %v7390_v41 = vld [vmem:[%s12977_s13 + $0x1e0] sm:$0xff] }
 0x5fd   : > { %5963 = vmatpush1.msra.mxu1 %v5860_v59  ;;  %v6101_v59 = vld [vmem:[%s12977_s13 + $0x98] sm:$0xff] }
 0x5fe   : > { %5964 = vmatprep.subr.mxu1 %v5859_v20  ;;  %v7389_v20 = vld [vmem:[%s12977_s13 + $0x1d8] sm:$0xff] }
 0x5ff   : > { %5965 = vmatpush1.msra.mxu1 %v5858_v2  ;;  %v6100_v2 = vld [vmem:[%s12977_s13 + $0x90] sm:$0xff] }
 0x600   : > { %5966 = vmatprep.subr.mxu1 %v5857_v5  ;;  %v7388_v5 = vld [vmem:[%s12977_s13 + $0x1d0] sm:$0xff] }
 0x601   : > { %5967 = vmatpush1.msra.mxu1 %v5856_v10  ;;  %v6099_v10 = vld [vmem:[%s12977_s13 + $0x88] sm:$0xff] }
 0x602   : > { %5968 = vmatprep.subr.mxu1 %v5919_v1  ;;  %v7387_v1 = vld [vmem:[%s12977_s13 + $0x1c8] sm:$0xff] }
 0x603   : > { %5969 = vmatpush2.msra.mxu1 %v5918_v42  ;;  %v6098_v42 = vld [vmem:[%s12977_s13 + $0x80] sm:$0xff] }
 0x604   : > { %5970 = vmatprep.subr.mxu1 %v5917_v43  ;;  %v7386_v43 = vld [vmem:[%s12977_s13 + $0x1c0] sm:$0xff] }
 0x605   : > { %5971 = vmatpush2.msra.mxu1 %v5916_v13  ;;  %v6097_v13 = vld [vmem:[%s12977_s13 + $0x78] sm:$0xff] }
 0x606   : > { %5972 = vmatprep.subr.mxu1 %v5915_v9  ;;  %v7385_v9 = vld [vmem:[%s12977_s13 + $0x1b8] sm:$0xff] }
 0x607   : > { %5973 = vmatpush2.msra.mxu1 %v5914_v26  ;;  %v6096_v26 = vld [vmem:[%s12977_s13 + $0x70] sm:$0xff] }
 0x608   : > { %5974 = vmatprep.subr.mxu1 %v5913_v39  ;;  %v7384_v39 = vld [vmem:[%s12977_s13 + $0x1b0] sm:$0xff] }
 0x609   : > { %5975 = vmatpush2.msra.mxu1 %v5912_v52  ;;  %v6095_v52 = vld [vmem:[%s12977_s13 + $0x68] sm:$0xff] }
 0x60a   : > { %5976 = vmatprep.subr.mxu1 %v5911_v33  ;;  %v7383_v33 = vld [vmem:[%s12977_s13 + $0x1a8] sm:$0xff] }
 0x60b   : > { %5977 = vmatpush2.msra.mxu1 %v5910_v54  ;;  %v6094_v54 = vld [vmem:[%s12977_s13 + $0x60] sm:$0xff] }
 0x60c   : > { %5978 = vmatprep.subr.mxu1 %v5909_v34  ;;  %v7382_v34 = vld [vmem:[%s12977_s13 + $0x1a0] sm:$0xff] }
 0x60d   : > { %5979 = vmatpush2.msra.mxu1 %v5908_v47  ;;  %v6093_v47 = vld [vmem:[%s12977_s13 + $0x58] sm:$0xff] }
 0x60e   : > { %5980 = vmatprep.subr.mxu1 %v5907_v38  ;;  %v7381_v38 = vld [vmem:[%s12977_s13 + $0x198] sm:$0xff] }
 0x60f   : > { %5981 = vmatpush2.msra.mxu1 %v5906_v49  ;;  %v6092_v49 = vld [vmem:[%s12977_s13 + $0x50] sm:$0xff] }
 0x610   : > { %5982 = vmatprep.subr.mxu1 %v5905_v56  ;;  %v7380_v56 = vld [vmem:[%s12977_s13 + $0x190] sm:$0xff] }
 0x611   : > { %5983 = vmatpush2.msra.mxu1 %v5904_v57  ;;  %v6091_v57 = vld [vmem:[%s12977_s13 + $0x48] sm:$0xff] }
 0x612   : > { %5984 = vmatprep.subr.mxu1 %v5903_v19  ;;  %v7379_v19 = vld [vmem:[%s12977_s13 + $0x188] sm:$0xff] }
 0x613   : > { %5985 = vmatpush2.msra.mxu1 %v5902_v61  ;;  %v6090_v61 = vld [vmem:[%s12977_s13 + $0x40] sm:$0xff] }
 0x614   : > { %5986 = vmatprep.subr.mxu1 %v5901_v62  ;;  %v7378_v62 = vld [vmem:[%s12977_s13 + $0x180] sm:$0xff] }
 0x615   : > { %5987 = vmatpush2.msra.mxu1 %v5900_v22  ;;  %v6089_v22 = vld [vmem:[%s12977_s13 + $0x38] sm:$0xff] }
 0x616   : > { %5988 = vmatprep.subr.mxu1 %v5899_v40  ;;  %v7377_v40 = vld [vmem:[%s12977_s13 + $0x178] sm:$0xff] }
 0x617   : > { %5989 = vmatpush2.msra.mxu1 %v5898_v21  ;;  %v6088_v21 = vld [vmem:[%s12977_s13 + $0x30] sm:$0xff] }
 0x618   : > { %5990 = vmatprep.subr.mxu1 %v5897_v24  ;;  %v7376_v24 = vld [vmem:[%s12977_s13 + $0x170] sm:$0xff] }
 0x619   : > { %5991 = vmatpush2.msra.mxu1 %v5896_v32  ;;  %v6087_v32 = vld [vmem:[%s12977_s13 + $0x28] sm:$0xff] }
 0x61a   : > { %5992 = vmatprep.subr.mxu1 %v5895_v45  ;;  %v7375_v45 = vld [vmem:[%s12977_s13 + $0x168] sm:$0xff] }
 0x61b   : > { %5993 = vmatpush2.msra.mxu1 %v5894_v53  ;;  %v6086_v53 = vld [vmem:[%s12977_s13 + $0x20] sm:$0xff] }
 0x61c   : > { %5994 = vmatprep.subr.mxu1 %v5893_v27  ;;  %v7374_v27 = vld [vmem:[%s12977_s13 + $0x160] sm:$0xff] }
 0x61d   : > { %5995 = vmatpush2.msra.mxu1 %v5892_v25  ;;  %v6085_v25 = vld [vmem:[%s12977_s13 + $0x18] sm:$0xff] }
 0x61e   : > { %5996 = vmatprep.subr.mxu1 %v5891_v51  ;;  %v7373_v51 = vld [vmem:[%s12977_s13 + $0x158] sm:$0xff] }
 0x61f   : > { %5997 = vmatpush2.msra.mxu1 %v5890_v15  ;;  %v6084_v15 = vld [vmem:[%s12977_s13 + $0x10] sm:$0xff] }
 0x620   : > { %5998 = vmatprep.subr.mxu1 %v5889_v12  ;;  %v6083_v12 = vld [vmem:[%s12977_s13 + $0x8] sm:$0xff] }
 0x621   : > { %5999 = vmatpush2.msra.mxu1 %v5888_v11  ;;  %v7372_v11 = vld [vmem:[%s12977_s13 + $0x150] sm:$0xff] }
 0x622   : > { %6001 = vmatmul.mubr.f32.vlgmr.msra.gmra.mxu1 %v11921_v35  ;;  %6243 = vmatprep.subr.mxu1 %v6113_v37  ;;  %v7400_v35 = vld [vmem:[%s12977_s13 + $0x230] sm:$0xff]  ;;  %v6082_v37 = vld [vmem:[%s12977_s13] sm:$0xff] }
 0x623   : > { %6244 = vmatpush1.msra.mxu1 %v6112_v44  ;;  %6171 = vmatpush1.msra.mxu0 %v7400_v35  ;;  %v7371_v44 = vld [vmem:[%s12977_s13 + $0x148] sm:$0xff]  ;;  %v6120_v35 = vld [vmem:[%s12977_s13 + $0x130] sm:$0xff] }
 0x624   : > { %6245 = vmatprep.subr.mxu1 %v6111_v31  ;;  %6172 = vmatprep.subr.mxu0 %v7399_v8  ;;  %v7370_v31 = vld [vmem:[%s12977_s13 + $0x140] sm:$0xff]  ;;  %v6119_v8 = vld [vmem:[%s12977_s13 + $0x128] sm:$0xff] }
 0x625   : > { %6246 = vmatpush1.msra.mxu1 %v6110_v16  ;;  %6173 = vmatpush1.msra.mxu0 %v7398_v6  ;;  %v7409_v16 = vld [vmem:[%s12977_s13 + $0x278] sm:$0xff]  ;;  %v6118_v6 = vld [vmem:[%s12977_s13 + $0x120] sm:$0xff] }
 0x626   : > { %6247 = vmatprep.subr.mxu1 %v6109_v30  ;;  %6174 = vmatprep.subr.mxu0 %v7397_v48  ;;  %v7408_v30 = vld [vmem:[%s12977_s13 + $0x270] sm:$0xff]  ;;  %v6117_v48 = vld [vmem:[%s12977_s13 + $0x118] sm:$0xff] }
 0x627   : > { %6248 = vmatpush1.msra.mxu1 %v6108_v46  ;;  %6175 = vmatpush1.msra.mxu0 %v7396_v60  ;;  %v7407_v46 = vld [vmem:[%s12977_s13 + $0x268] sm:$0xff]  ;;  %v6116_v60 = vld [vmem:[%s12977_s13 + $0x110] sm:$0xff] }
 0x628   : > { %6249 = vmatprep.subr.mxu1 %v6107_v23  ;;  %6176 = vmatprep.subr.mxu0 %v7395_v7  ;;  %v7406_v23 = vld [vmem:[%s12977_s13 + $0x260] sm:$0xff]  ;;  %v7405_v7 = vld [vmem:[%s12977_s13 + $0x258] sm:$0xff] }
 0x629   : > { %6250 = vmatpush1.msra.mxu1 %v6106_v63  ;;  %6177 = vmatpush1.msra.mxu0 %v7394_v0  ;;  %v6115_v63 = vld [vmem:[%s12977_s13 + $0x108] sm:$0xff]  ;;  %v7404_v0 = vld [vmem:[%s12977_s13 + $0x250] sm:$0xff] }
 0x62a   : > { %6251 = vmatprep.subr.mxu1 %v6105_v4  ;;  %6178 = vmatprep.subr.mxu0 %v7393_v29  ;;  %v6114_v4 = vld [vmem:[%s12977_s13 + $0x100] sm:$0xff]  ;;  %v7403_v29 = vld [vmem:[%s12977_s13 + $0x248] sm:$0xff] }
 0x62b   : > { %6252 = vmatpush1.msra.mxu1 %v6104_v14  ;;  %6179 = vmatpush1.msra.mxu0 %v7392_v18  ;;  %v7484_v14 = vld [vmem:[%s12977_s13 + $0x4b8] sm:$0xff]  ;;  %v7402_v18 = vld [vmem:[%s12977_s13 + $0x240] sm:$0xff] }
 0x62c   : > { %6253 = vmatprep.subr.mxu1 %v6103_v36  ;;  %6180 = vmatprep.subr.mxu0 %v7391_v50  ;;  %v7443_v36 = vld [vmem:[%s12977_s13 + $0x378] sm:$0xff] }
 0x62d   : > { %6254 = vmatpush1.msra.mxu1 %v6102_v58  ;;  %6181 = vmatpush1.msra.mxu0 %v7390_v41 }
 0x62e   : > { %6255 = vmatprep.subr.mxu1 %v6101_v59  ;;  %6182 = vmatprep.subr.mxu0 %v7389_v20 }
 0x62f   : > { %6256 = vmatpush1.msra.mxu1 %v6100_v2  ;;  %6183 = vmatpush1.msra.mxu0 %v7388_v5 }
 0x630   : > { %6257 = vmatprep.subr.mxu1 %v6099_v10  ;;  %6184 = vmatprep.subr.mxu0 %v7387_v1 }
 0x631   : > { %6258 = vmatpush1.msra.mxu1 %v6098_v42  ;;  %6185 = vmatpush1.msra.mxu0 %v7386_v43 }
 0x632   : > { %6259 = vmatprep.subr.mxu1 %v6097_v13  ;;  %6186 = vmatprep.subr.mxu0 %v7385_v9 }
 0x633   : > { %6260 = vmatpush1.msra.mxu1 %v6096_v26  ;;  %6187 = vmatpush1.msra.mxu0 %v7384_v39 }
 0x634   : > { %6261 = vmatprep.subr.mxu1 %v6095_v52  ;;  %6188 = vmatprep.subr.mxu0 %v7383_v33  ;;  %v7483_v33 = vld [vmem:[%s12977_s13 + $0x4b0] sm:$0xff] }
 0x635   : > { %6262 = vmatpush1.msra.mxu1 %v6094_v54  ;;  %6189 = vmatpush1.msra.mxu0 %v7382_v34  ;;  %v7482_v34 = vld [vmem:[%s12977_s13 + $0x4a8] sm:$0xff] }
 0x636   : > { %6263 = vmatprep.subr.mxu1 %v6093_v47  ;;  %6190 = vmatprep.subr.mxu0 %v7381_v38  ;;  %v7481_v38 = vld [vmem:[%s12977_s13 + $0x4a0] sm:$0xff] }
 0x637   : > { %6264 = vmatpush1.msra.mxu1 %v6092_v49  ;;  %6191 = vmatpush1.msra.mxu0 %v7380_v56  ;;  %v7442_v56 = vld [vmem:[%s12977_s13 + $0x370] sm:$0xff] }
 0x638   : > { %6265 = vmatprep.subr.mxu1 %v6091_v57  ;;  %6192 = vmatprep.subr.mxu0 %v7379_v19  ;;  %v7441_v57 = vld [vmem:[%s12977_s13 + $0x368] sm:$0xff] }
 0x639   : > { %6266 = vmatpush1.msra.mxu1 %v6090_v61  ;;  %6193 = vmatpush1.msra.mxu0 %v7378_v62  ;;  %v7480_v61 = vld [vmem:[%s12977_s13 + $0x498] sm:$0xff]  ;;  %v7440_v62 = vld [vmem:[%s12977_s13 + $0x360] sm:$0xff] }
 0x63a   : > { %6267 = vmatprep.subr.mxu1 %v6089_v22  ;;  %6194 = vmatprep.subr.mxu0 %v7377_v40  ;;  %v7479_v22 = vld [vmem:[%s12977_s13 + $0x490] sm:$0xff]  ;;  %v7439_v40 = vld [vmem:[%s12977_s13 + $0x358] sm:$0xff] }
 0x63b   : > { %6268 = vmatpush1.msra.mxu1 %v6088_v21  ;;  %6195 = vmatpush1.msra.mxu0 %v7376_v24  ;;  %v7478_v21 = vld [vmem:[%s12977_s13 + $0x488] sm:$0xff]  ;;  %v7438_v24 = vld [vmem:[%s12977_s13 + $0x350] sm:$0xff] }
 0x63c   : > { %6269 = vmatprep.subr.mxu1 %v6087_v32  ;;  %6196 = vmatprep.subr.mxu0 %v7375_v45  ;;  %v7477_v32 = vld [vmem:[%s12977_s13 + $0x480] sm:$0xff]  ;;  %v7437_v45 = vld [vmem:[%s12977_s13 + $0x348] sm:$0xff] }
 0x63d   : > { %6270 = vmatpush1.msra.mxu1 %v6086_v53  ;;  %6197 = vmatpush1.msra.mxu0 %v7374_v27  ;;  %v7476_v53 = vld [vmem:[%s12977_s13 + $0x478] sm:$0xff]  ;;  %v7436_v27 = vld [vmem:[%s12977_s13 + $0x340] sm:$0xff] }
 0x63e   : > { %6271 = vmatprep.subr.mxu1 %v6085_v25  ;;  %6198 = vmatprep.subr.mxu0 %v7373_v51  ;;  %v7475_v25 = vld [vmem:[%s12977_s13 + $0x470] sm:$0xff]  ;;  %v7435_v51 = vld [vmem:[%s12977_s13 + $0x338] sm:$0xff] }
 0x63f   : > { %6272 = vmatpush1.msra.mxu1 %v6084_v15  ;;  %6199 = vmatpush1.msra.mxu0 %v7372_v11  ;;  %v7474_v15 = vld [vmem:[%s12977_s13 + $0x468] sm:$0xff]  ;;  %v7473_v11 = vld [vmem:[%s12977_s13 + $0x460] sm:$0xff] }
 0x640   : > { %6273 = vmatprep.subr.mxu1 %v6083_v12  ;;  %6200 = vmatprep.subr.mxu0 %v7371_v44  ;;  %v7434_v12 = vld [vmem:[%s12977_s13 + $0x330] sm:$0xff]  ;;  %v7472_v44 = vld [vmem:[%s12977_s13 + $0x458] sm:$0xff] }
 0x641   : > { %6274 = vmatpush1.msra.mxu1 %v6082_v37  ;;  %6201 = vmatpush1.msra.mxu0 %v7370_v31  ;;  %v7433_v37 = vld [vmem:[%s12977_s13 + $0x328] sm:$0xff]  ;;  %v7471_v31 = vld [vmem:[%s12977_s13 + $0x450] sm:$0xff] }
 0x642   : > { %6299 = vmatprep.subr.mxu1 %v6121_v28  ;;  %6226 = vmatprep.subr.mxu0 %v7409_v16  ;;  %v7432_v28 = vld [vmem:[%s12977_s13 + $0x320] sm:$0xff]  ;;  %v7470_v16 = vld [vmem:[%s12977_s13 + $0x448] sm:$0xff] }
 0x643   : > { %6300 = vmatpush2.msra.mxu1 %v6120_v35  ;;  %6227 = vmatpush2.msra.mxu0 %v7408_v30  ;;  %v7431_v35 = vld [vmem:[%s12977_s13 + $0x318] sm:$0xff]  ;;  %v7469_v30 = vld [vmem:[%s12977_s13 + $0x440] sm:$0xff] }
 0x644   : > { %6301 = vmatprep.subr.mxu1 %v6119_v8  ;;  %6228 = vmatprep.subr.mxu0 %v7407_v46  ;;  %v7430_v8 = vld [vmem:[%s12977_s13 + $0x310] sm:$0xff]  ;;  %v7468_v46 = vld [vmem:[%s12977_s13 + $0x438] sm:$0xff] }
 0x645   : > { %6302 = vmatpush2.msra.mxu1 %v6118_v6  ;;  %6229 = vmatpush2.msra.mxu0 %v7406_v23  ;;  %v7429_v6 = vld [vmem:[%s12977_s13 + $0x308] sm:$0xff]  ;;  %v7467_v23 = vld [vmem:[%s12977_s13 + $0x430] sm:$0xff] }
 0x646   : > { %6303 = vmatprep.subr.mxu1 %v6117_v48  ;;  %6230 = vmatprep.subr.mxu0 %v7405_v7  ;;  %v7428_v48 = vld [vmem:[%s12977_s13 + $0x300] sm:$0xff]  ;;  %v7466_v7 = vld [vmem:[%s12977_s13 + $0x428] sm:$0xff] }
 0x647   : > { %6304 = vmatpush2.msra.mxu1 %v6116_v60  ;;  %6231 = vmatpush2.msra.mxu0 %v7404_v0  ;;  %v7427_v60 = vld [vmem:[%s12977_s13 + $0x2f8] sm:$0xff]  ;;  %v7465_v0 = vld [vmem:[%s12977_s13 + $0x420] sm:$0xff] }
 0x648   : > { %6305 = vmatprep.subr.mxu1 %v6115_v63  ;;  %6232 = vmatprep.subr.mxu0 %v7403_v29  ;;  %v7426_v63 = vld [vmem:[%s12977_s13 + $0x2f0] sm:$0xff]  ;;  %v7464_v29 = vld [vmem:[%s12977_s13 + $0x418] sm:$0xff] }
 0x649   : > { %6306 = vmatpush2.msra.mxu1 %v6114_v4  ;;  %6233 = vmatpush2.msra.mxu0 %v7402_v18  ;;  %v7425_v4 = vld [vmem:[%s12977_s13 + $0x2e8] sm:$0xff]  ;;  %v7463_v18 = vld [vmem:[%s12977_s13 + $0x410] sm:$0xff] }
 0x64a   : > { %6479 = vmatprep.subr.mxu1 %v7484_v14  ;;  %6360 = vmatprep.subr.mxu0 %v7443_v36  ;;  %v7424_v14 = vld [vmem:[%s12977_s13 + $0x2e0] sm:$0xff]  ;;  %v7423_v36 = vld [vmem:[%s12977_s13 + $0x2d8] sm:$0xff] }
 0x6a0   : > { %v5780_v50 = vpop.f32.mrf.mxu0 }
 0x6a1   : > { %v5851_v58 = vpop.f32.mrf.mxu1 }
 0x6a2   : > { %v5782_v41 = vpop.f32.mrf.mxu0  ;;  %v5852_v5 = vadd.f32 %v5851_v58, %v5780_v50  ;;  %v7462_v50 = vld [vmem:[%s12977_s13 + $0x408] sm:$0xff]  ;;  %v7422_v58 = vld [vmem:[%s12977_s13 + $0x2d0] sm:$0xff] }
 0x6a3   : > { %v5853_v59 = vpop.f32.mrf.mxu1 }
 0x6a4   : > { %v5854_v43 = vadd.f32 %v5853_v59, %v5782_v41  ;;  %v7461_v41 = vld [vmem:[%s12977_s13 + $0x400] sm:$0xff]  ;;  %v7421_v59 = vld [vmem:[%s12977_s13 + $0x2c8] sm:$0xff] }
 0x6b1   : > { %v6073_v20 = vpop.f32.mrf.mxu0 }
 0x6b3   : > { %v6075_v1 = vpop.f32.mrf.mxu0 }
 0x6e2   : > { %v6002_v2 = vpop.f32.mrf.mxu1 }
 0x6e3   : > { %v6074_v10 = vadd.f32 %v6073_v20, %v6002_v2  ;;  %v7460_v20 = vld [vmem:[%s12977_s13 + $0x3f8] sm:$0xff]  ;;  %v7420_v2 = vld [vmem:[%s12977_s13 + $0x2c0] sm:$0xff] }
 0x6e4   : > { %v6004_v42 = vpop.f32.mrf.mxu1 }
 0x6e5   : > { %v6078_v13 = vmax.f32 %v5852_v5, %v6074_v10  ;;  %v6076_v9 = vadd.f32 %v6075_v1, %v6004_v42  ;;  %v7459_v5 = vld [vmem:[%s12977_s13 + $0x3f0] sm:$0xff]  ;;  %v7419_v10 = vld [vmem:[%s12977_s13 + $0x2b8] sm:$0xff]  ;;  %v7458_v1 = vld [vmem:[%s12977_s13 + $0x3e8] sm:$0xff] }
 0x6e6   : > { %v7418_v42 = vld [vmem:[%s12977_s13 + $0x2b0] sm:$0xff] }
 0x6e7   : > { %v6079_v26 = vmax.f32 %v5854_v43, %v6076_v9  ;;  %v12412_v39 = vmax.f32 %v6078_v13, 0.0  ;;  %v7457_v43 = vld [vmem:[%s12977_s13 + $0x3e0] sm:$0xff]  ;;  %v7417_v13 = vld [vmem:[%s12977_s13 + $0x2a8] sm:$0xff]  ;;  %v7456_v9 = vld [vmem:[%s12977_s13 + $0x3d8] sm:$0xff] }
 0x6e9   : > { %v12414_v52 = vmax.f32 %v6079_v26, 0.0  ;;  %v6165_v49 = vrot.slane %v12412_v39, 1  ;;  %v7416_v26 = vld [vmem:[%s12977_s13 + $0x2a0] sm:$0xff] }
 0x6eb   : > { %7411 = vmatprep.mubr.msk.f32.mxu1 %vm4251_vm8, %v12414_v52  ;;  %v6166_v54 = vrot.slane %v12414_v52, 1  ;;  %v6475_v47 = vrot.slane %v12414_v52, 3  ;;  %v6356_v19 = vrot.slane %v12414_v52, 2 }
 0x6ec   : > { %6308 = vmatmul.mubr.f32.vlgmr.msra.gmra.mxu1 %v12412_v39 }
 0x6ed   : > { %6480 = vmatpush1.msra.mxu1 %v7483_v33  ;;  %7410 = vmatprep.mubr.msk.f32.mxu0 %vm4251_vm8, %v6166_v54  ;;  %v7455_v33 = vld [vmem:[%s12977_s13 + $0x3d0] sm:$0xff]  ;;  %v7415_v54 = vld [vmem:[%s12977_s13 + $0x298] sm:$0xff] }
 0x6ee   : > { %6481 = vmatprep.subr.mxu1 %v7482_v34  ;;  %7493 = vmatprep.mubr.msk.f32.mxu1 %vm4251_vm8, %v6475_v47  ;;  %v7454_v34 = vld [vmem:[%s12977_s13 + $0x3c8] sm:$0xff]  ;;  %v7414_v47 = vld [vmem:[%s12977_s13 + $0x290] sm:$0xff] }
 0x6ef   : > { %6235 = vmatmul.mubr.f32.vlgmr.msra.gmra.mxu0 %v6165_v49  ;;  %6482 = vmatpush1.msra.mxu1 %v7481_v38  ;;  %v7453_v38 = vld [vmem:[%s12977_s13 + $0x3c0] sm:$0xff]  ;;  %v7413_v49 = vld [vmem:[%s12977_s13 + $0x288] sm:$0xff] }
 0x6f0   : > { %6361 = vmatpush1.msra.mxu0 %v7442_v56  ;;  %7452 = vmatprep.mubr.msk.f32.mxu0 %vm4251_vm8, %v6356_v19  ;;  %v7492_v56 = vld [vmem:[%s12977_s13 + $0x4f8] sm:$0xff]  ;;  %v7491_v19 = vld [vmem:[%s12977_s13 + $0x4f0] sm:$0xff] }
 0x6f1   : > { %6362 = vmatprep.subr.mxu0 %v7441_v57  ;;  %6483 = vmatprep.subr.mxu1 %v7480_v61  ;;  %v7412_v57 = vld [vmem:[%s12977_s13 + $0x280] sm:$0xff]  ;;  %v7451_v61 = vld [vmem:[%s12977_s13 + $0x3b8] sm:$0xff] }
 0x6f2   : > { %6363 = vmatpush1.msra.mxu0 %v7440_v62  ;;  %6484 = vmatpush1.msra.mxu1 %v7479_v22  ;;  %v7490_v62 = vld [vmem:[%s12977_s13 + $0x4e8] sm:$0xff]  ;;  %v7450_v22 = vld [vmem:[%s12977_s13 + $0x3b0] sm:$0xff] }
 0x6f3   : > { %6364 = vmatprep.subr.mxu0 %v7439_v40  ;;  %6485 = vmatprep.subr.mxu1 %v7478_v21  ;;  %v7489_v40 = vld [vmem:[%s12977_s13 + $0x4e0] sm:$0xff]  ;;  %v7449_v21 = vld [vmem:[%s12977_s13 + $0x3a8] sm:$0xff] }
 0x6f4   : > { %6365 = vmatpush1.msra.mxu0 %v7438_v24  ;;  %6486 = vmatpush1.msra.mxu1 %v7477_v32  ;;  %v7488_v24 = vld [vmem:[%s12977_s13 + $0x4d8] sm:$0xff]  ;;  %v7448_v32 = vld [vmem:[%s12977_s13 + $0x3a0] sm:$0xff] }
 0x6f5   : > { %6366 = vmatprep.subr.mxu0 %v7437_v45  ;;  %6487 = vmatprep.subr.mxu1 %v7476_v53  ;;  %v7487_v45 = vld [vmem:[%s12977_s13 + $0x4d0] sm:$0xff]  ;;  %v7447_v53 = vld [vmem:[%s12977_s13 + $0x398] sm:$0xff] }
 0x6f6   : > { %6367 = vmatpush1.msra.mxu0 %v7436_v27  ;;  %6488 = vmatpush1.msra.mxu1 %v7475_v25  ;;  %v7486_v27 = vld [vmem:[%s12977_s13 + $0x4c8] sm:$0xff]  ;;  %v7446_v25 = vld [vmem:[%s12977_s13 + $0x390] sm:$0xff] }
 0x6f7   : > { %6368 = vmatprep.subr.mxu0 %v7435_v51  ;;  %6489 = vmatprep.subr.mxu1 %v7474_v15  ;;  %v7485_v51 = vld [vmem:[%s12977_s13 + $0x4c0] sm:$0xff]  ;;  %v7445_v15 = vld [vmem:[%s12977_s13 + $0x388] sm:$0xff] }
 0x6f8   : > { %6369 = vmatpush1.msra.mxu0 %v7434_v12  ;;  %6490 = vmatpush1.msra.mxu1 %v7473_v11  ;;  %v6474_v12 = vrot.slane %v12412_v39, 3  ;;  %v7444_v11 = vld [vmem:[%s12977_s13 + $0x380] sm:$0xff] }
 0x6f9   : > { %6370 = vmatprep.subr.mxu0 %v7433_v37  ;;  %6491 = vmatprep.subr.mxu1 %v7472_v44  ;;  %v7525_v37 = vld [vmem:[%s12977_s13 + $0x5f8] sm:$0xff]  ;;  %v6355_v44 = vrot.slane %v12412_v39, 2 }
 0x6fa   : > { %6371 = vmatpush1.msra.mxu0 %v7432_v28  ;;  %6492 = vmatpush1.msra.mxu1 %v7471_v31  ;;  %v7524_v28 = vld [vmem:[%s12977_s13 + $0x5f0] sm:$0xff]  ;;  %v6594_v31 = vrot.slane %v12414_v52, 4 }
 0x6fb   : > { %6372 = vmatprep.subr.mxu0 %v7431_v35  ;;  %6493 = vmatprep.subr.mxu1 %v7470_v16  ;;  %v7523_v35 = vld [vmem:[%s12977_s13 + $0x5e8] sm:$0xff]  ;;  %v7522_v16 = vld [vmem:[%s12977_s13 + $0x5e0] sm:$0xff]  ;;  %v7520_v52 = vld [vmem:[%s12977_s13 + $0x5d0] sm:$0xff] }
 0x6fc   : > { %6373 = vmatpush1.msra.mxu0 %v7430_v8  ;;  %6494 = vmatpush1.msra.mxu1 %v7469_v30  ;;  %v7521_v8 = vld [vmem:[%s12977_s13 + $0x5d8] sm:$0xff]  ;;  %v7519_v30 = vld [vmem:[%s12977_s13 + $0x5c8] sm:$0xff] }
 0x6fd   : > { %6374 = vmatprep.subr.mxu0 %v7429_v6  ;;  %6495 = vmatprep.subr.mxu1 %v7468_v46  ;;  %v7518_v6 = vld [vmem:[%s12977_s13 + $0x5c0] sm:$0xff]  ;;  %v7517_v46 = vld [vmem:[%s12977_s13 + $0x5b8] sm:$0xff] }
 0x6fe   : > { %6375 = vmatpush1.msra.mxu0 %v7428_v48  ;;  %6496 = vmatpush1.msra.mxu1 %v7467_v23  ;;  %v7516_v48 = vld [vmem:[%s12977_s13 + $0x5b0] sm:$0xff]  ;;  %v7515_v23 = vld [vmem:[%s12977_s13 + $0x5a8] sm:$0xff] }
 0x6ff   : > { %6376 = vmatprep.subr.mxu0 %v7427_v60  ;;  %6497 = vmatprep.subr.mxu1 %v7466_v7  ;;  %v7514_v60 = vld [vmem:[%s12977_s13 + $0x5a0] sm:$0xff]  ;;  %v7513_v7 = vld [vmem:[%s12977_s13 + $0x598] sm:$0xff] }
 0x700   : > { %6377 = vmatpush1.msra.mxu0 %v7426_v63  ;;  %6498 = vmatpush1.msra.mxu1 %v7465_v0  ;;  %v7512_v63 = vld [vmem:[%s12977_s13 + $0x590] sm:$0xff]  ;;  %v7511_v0 = vld [vmem:[%s12977_s13 + $0x588] sm:$0xff] }
 0x701   : > { %6378 = vmatprep.subr.mxu0 %v7425_v4  ;;  %6499 = vmatprep.subr.mxu1 %v7464_v29  ;;  %v7510_v4 = vld [vmem:[%s12977_s13 + $0x580] sm:$0xff]  ;;  %v7509_v29 = vld [vmem:[%s12977_s13 + $0x578] sm:$0xff] }
 0x702   : > { %6379 = vmatpush1.msra.mxu0 %v7424_v14  ;;  %6500 = vmatpush1.msra.mxu1 %v7463_v18  ;;  %v7508_v14 = vld [vmem:[%s12977_s13 + $0x570] sm:$0xff]  ;;  %v7507_v18 = vld [vmem:[%s12977_s13 + $0x568] sm:$0xff] }
 0x703   : > { %6380 = vmatprep.subr.mxu0 %v7423_v36  ;;  %6501 = vmatprep.subr.mxu1 %v7462_v50  ;;  %v7506_v36 = vld [vmem:[%s12977_s13 + $0x560] sm:$0xff]  ;;  %v7505_v50 = vld [vmem:[%s12977_s13 + $0x558] sm:$0xff] }
 0x704   : > { %6381 = vmatpush1.msra.mxu0 %v7422_v58  ;;  %6502 = vmatpush1.msra.mxu1 %v7461_v41  ;;  %v7504_v58 = vld [vmem:[%s12977_s13 + $0x550] sm:$0xff]  ;;  %v7503_v41 = vld [vmem:[%s12977_s13 + $0x548] sm:$0xff] }
 0x705   : > { %6382 = vmatprep.subr.mxu0 %v7421_v59  ;;  %6503 = vmatprep.subr.mxu1 %v7460_v20  ;;  %v7502_v59 = vld [vmem:[%s12977_s13 + $0x540] sm:$0xff]  ;;  %v7501_v20 = vld [vmem:[%s12977_s13 + $0x538] sm:$0xff] }
 0x706   : > { %6383 = vmatpush1.msra.mxu0 %v7420_v2  ;;  %6504 = vmatpush1.msra.mxu1 %v7459_v5  ;;  %v7500_v2 = vld [vmem:[%s12977_s13 + $0x530] sm:$0xff]  ;;  %v7499_v5 = vld [vmem:[%s12977_s13 + $0x528] sm:$0xff] }
 0x707   : > { %6384 = vmatprep.subr.mxu0 %v7419_v10  ;;  %6505 = vmatprep.subr.mxu1 %v7458_v1  ;;  %v7498_v10 = vld [vmem:[%s12977_s13 + $0x520] sm:$0xff]  ;;  %v7497_v1 = vld [vmem:[%s12977_s13 + $0x518] sm:$0xff] }
 0x708   : > { %6385 = vmatpush1.msra.mxu0 %v7418_v42  ;;  %6506 = vmatpush1.msra.mxu1 %v7457_v43  ;;  %v7496_v42 = vld [vmem:[%s12977_s13 + $0x510] sm:$0xff]  ;;  %v7495_v43 = vld [vmem:[%s12977_s13 + $0x508] sm:$0xff] }
 0x709   : > { %6386 = vmatprep.subr.mxu0 %v7417_v13  ;;  %6507 = vmatprep.subr.mxu1 %v7456_v9  ;;  %v7494_v13 = vld [vmem:[%s12977_s13 + $0x500] sm:$0xff]  ;;  %v7533_v9 = vld [vmem:[%s12977_s13 + $0x638] sm:$0xff] }
 0x70a   : > { %6387 = vmatpush1.msra.mxu0 %v7416_v26  ;;  %6508 = vmatpush1.msra.mxu1 %v7455_v33  ;;  %v7532_v26 = vld [vmem:[%s12977_s13 + $0x630] sm:$0xff]  ;;  %v7531_v33 = vld [vmem:[%s12977_s13 + $0x628] sm:$0xff] }
 0x70b   : > { %6388 = vmatprep.subr.mxu0 %v7415_v54  ;;  %6509 = vmatprep.subr.mxu1 %v7454_v34  ;;  %v7530_v54 = vld [vmem:[%s12977_s13 + $0x620] sm:$0xff]  ;;  %v7529_v34 = vld [vmem:[%s12977_s13 + $0x618] sm:$0xff] }
 0x70c   : > { %6389 = vmatpush1.msra.mxu0 %v7414_v47  ;;  %6510 = vmatpush1.msra.mxu1 %v7453_v38  ;;  %v7528_v47 = vld [vmem:[%s12977_s13 + $0x610] sm:$0xff]  ;;  %v7527_v38 = vld [vmem:[%s12977_s13 + $0x608] sm:$0xff] }
 0x70d   : > { %6390 = vmatprep.subr.mxu0 %v7413_v49  ;;  %6535 = vmatprep.subr.mxu1 %v7492_v56  ;;  %v7526_v49 = vld [vmem:[%s12977_s13 + $0x600] sm:$0xff]  ;;  %v6593_v56 = vrot.slane %v12412_v39, 4  ;;  %v6716_v39 = vld [vmem:[%s12979_s15 + $0xe8] sm:$0xff] }
 0x70e   : > { %6391 = vmatpush1.msra.mxu0 %v7412_v57  ;;  %6536 = vmatpush2.msra.mxu1 %v7491_v19  ;;  %v6718_v57 = vld [vmem:[%s12979_s15 + $0xf8] sm:$0xff] }
 0x70f   : > { %6416 = vmatprep.subr.mxu0 %v7451_v61  ;;  %6537 = vmatprep.subr.mxu1 %v7490_v62  ;;  %v6702_v19 = vld [vmem:[%s12979_s15 + $0x78] sm:$0xff]  ;;  %v6717_v61 = vld [vmem:[%s12979_s15 + $0xf0] sm:$0xff] }
 0x710   : > { %6417 = vmatpush2.msra.mxu0 %v7450_v22  ;;  %6538 = vmatpush2.msra.mxu1 %v7489_v40  ;;  %v6701_v62 = vld [vmem:[%s12979_s15 + $0x70] sm:$0xff]  ;;  %v6700_v22 = vld [vmem:[%s12979_s15 + $0x68] sm:$0xff]  ;;  %v6715_v40 = vld [vmem:[%s12979_s15 + $0xe0] sm:$0xff] }
 0x711   : > { %6418 = vmatprep.subr.mxu0 %v7449_v21  ;;  %6539 = vmatprep.subr.mxu1 %v7488_v24  ;;  %v6699_v21 = vld [vmem:[%s12979_s15 + $0x60] sm:$0xff]  ;;  %v6714_v24 = vld [vmem:[%s12979_s15 + $0xd8] sm:$0xff] }
 0x712   : > { %6419 = vmatpush2.msra.mxu0 %v7448_v32  ;;  %6540 = vmatpush2.msra.mxu1 %v7487_v45  ;;  %v6698_v32 = vld [vmem:[%s12979_s15 + $0x58] sm:$0xff]  ;;  %v6713_v45 = vld [vmem:[%s12979_s15 + $0xd0] sm:$0xff] }
 0x713   : > { %6420 = vmatprep.subr.mxu0 %v7447_v53  ;;  %6541 = vmatprep.subr.mxu1 %v7486_v27  ;;  %v6697_v53 = vld [vmem:[%s12979_s15 + $0x50] sm:$0xff]  ;;  %v6712_v27 = vld [vmem:[%s12979_s15 + $0xc8] sm:$0xff] }
 0x714   : > { %6421 = vmatpush2.msra.mxu0 %v7446_v25  ;;  %6542 = vmatpush2.msra.mxu1 %v7485_v51  ;;  %v6696_v25 = vld [vmem:[%s12979_s15 + $0x48] sm:$0xff]  ;;  %v6711_v51 = vld [vmem:[%s12979_s15 + $0xc0] sm:$0xff] }
 0x715   : > { %6422 = vmatprep.subr.mxu0 %v7445_v15  ;;  %6544 = vmatmul.mubr.f32.vlgmr.msra.gmra.mxu1 %v6474_v12  ;;  %v6695_v15 = vld [vmem:[%s12979_s15 + $0x40] sm:$0xff]  ;;  %v6710_v12 = vld [vmem:[%s12979_s15 + $0xb8] sm:$0xff] }
 0x716   : > { %6423 = vmatpush2.msra.mxu0 %v7444_v11  ;;  %7895 = vmatprep.subr.mxu1 %v6718_v57  ;;  %v6694_v11 = vld [vmem:[%s12979_s15 + $0x38] sm:$0xff]  ;;  %v6792_v57 = vld [vmem:[%s12981_s17 + $0x8] sm:$0xff] }
 0x717   : > { %6425 = vmatmul.mubr.f32.vlgmr.msra.gmra.mxu0 %v6355_v44  ;;  %6598 = vmatprep.subr.mxu0 %v7525_v37  ;;  %v6709_v37 = vld [vmem:[%s12979_s15 + $0xb0] sm:$0xff] }
 0x718   : > { %6599 = vmatpush1.msra.mxu0 %v7524_v28  ;;  %7534 = vmatprep.mubr.msk.f32.mxu0 %vm4251_vm8, %v6594_v31  ;;  %v6693_v44 = vld [vmem:[%s12979_s15 + $0x30] sm:$0xff]  ;;  %v6708_v28 = vld [vmem:[%s12979_s15 + $0xa8] sm:$0xff] }
 0x719   : > { %6600 = vmatprep.subr.mxu0 %v7523_v35  ;;  %7896 = vmatpush3.msra.mxu1 %v6702_v19  ;;  %v6692_v31 = vld [vmem:[%s12979_s15 + $0x28] sm:$0xff]  ;;  %v6707_v35 = vld [vmem:[%s12979_s15 + $0xa0] sm:$0xff] }
 0x71a   : > { %6601 = vmatpush1.msra.mxu0 %v7522_v16  ;;  %7897 = vmatprep.subr.mxu1 %v6717_v61  ;;  %v6691_v16 = vld [vmem:[%s12979_s15 + $0x20] sm:$0xff] }
 0x71b   : > { %6602 = vmatprep.subr.mxu0 %v7521_v8  ;;  %7898 = vmatpush3.msra.mxu1 %v6701_v62  ;;  %v6706_v8 = vld [vmem:[%s12979_s15 + $0x98] sm:$0xff]  ;;  %v6791_v19 = vld [vmem:[%s12981_s17] sm:$0xff] }
 0x71c   : > { %6603 = vmatpush1.msra.mxu0 %v7520_v52  ;;  %7899 = vmatprep.subr.mxu1 %v6716_v39  ;;  %v6690_v52 = vld [vmem:[%s12979_s15 + $0x18] sm:$0xff]  ;;  %v6719_v62 = vld [vmem:[%s12980_s16] sm:$0x1] }
 0x71d   : > { %6604 = vmatprep.subr.mxu0 %v7519_v30  ;;  %7900 = vmatpush3.msra.mxu1 %v6700_v22  ;;  %v6705_v30 = vld [vmem:[%s12979_s15 + $0x90] sm:$0xff] }
 0x71e   : > { %6605 = vmatpush1.msra.mxu0 %v7518_v6  ;;  %7901 = vmatprep.subr.mxu1 %v6715_v40  ;;  %v6689_v6 = vld [vmem:[%s12979_s15 + $0x10] sm:$0xff] }
 0x71f   : > { %6606 = vmatprep.subr.mxu0 %v7517_v46  ;;  %7902 = vmatpush3.msra.mxu1 %v6699_v21  ;;  %v6704_v46 = vld [vmem:[%s12979_s15 + $0x88] sm:$0xff] }
 0x720   : > { %6607 = vmatpush1.msra.mxu0 %v7516_v48  ;;  %7903 = vmatprep.subr.mxu1 %v6714_v24  ;;  %v6688_v48 = vld [vmem:[%s12979_s15 + $0x8] sm:$0xff] }
 0x721   : > { %6608 = vmatprep.subr.mxu0 %v7515_v23  ;;  %7904 = vmatpush3.msra.mxu1 %v6698_v32  ;;  %v6703_v23 = vld [vmem:[%s12979_s15 + $0x80] sm:$0xff] }
 0x722   : > { %6609 = vmatpush1.msra.mxu0 %v7514_v60  ;;  %7905 = vmatprep.subr.mxu1 %v6713_v45  ;;  %v6687_v60 = vld [vmem:[%s12979_s15] sm:$0xff] }
 0x723   : > { %6610 = vmatprep.subr.mxu0 %v7513_v7  ;;  %7906 = vmatpush3.msra.mxu1 %v6697_v53 }
 0x724   : > { %6611 = vmatpush1.msra.mxu0 %v7512_v63  ;;  %7907 = vmatprep.subr.mxu1 %v6712_v27 }
 0x725   : > { %6612 = vmatprep.subr.mxu0 %v7511_v0  ;;  %7908 = vmatpush3.msra.mxu1 %v6696_v25 }
 0x726   : > { %6613 = vmatpush1.msra.mxu0 %v7510_v4  ;;  %7909 = vmatprep.subr.mxu1 %v6711_v51 }
 0x727   : > { %6614 = vmatprep.subr.mxu0 %v7509_v29  ;;  %7910 = vmatpush3.msra.mxu1 %v6695_v15 }
 0x728   : > { %6615 = vmatpush1.msra.mxu0 %v7508_v14  ;;  %7911 = vmatprep.subr.mxu1 %v6710_v12 }
 0x729   : > { %6616 = vmatprep.subr.mxu0 %v7507_v18  ;;  %7912 = vmatpush3.msra.mxu1 %v6694_v11 }
 0x72a   : > { %6617 = vmatpush1.msra.mxu0 %v7506_v36  ;;  %7913 = vmatprep.subr.mxu1 %v6709_v37 }
 0x72b   : > { %6618 = vmatprep.subr.mxu0 %v7505_v50  ;;  %7914 = vmatpush3.msra.mxu1 %v6693_v44 }
 0x72c   : > { %6619 = vmatpush1.msra.mxu0 %v7504_v58  ;;  %7915 = vmatprep.subr.mxu1 %v6708_v28 }
 0x72d   : > { %6620 = vmatprep.subr.mxu0 %v7503_v41  ;;  %7916 = vmatpush3.msra.mxu1 %v6692_v31 }
 0x72e   : > { %6621 = vmatpush1.msra.mxu0 %v7502_v59  ;;  %7917 = vmatprep.subr.mxu1 %v6707_v35  ;;  %v6671_v59 = vld [vmem:[%s12978_s14] sm:$0x3] }
 0x72f   : > { %6622 = vmatprep.subr.mxu0 %v7501_v20  ;;  %7918 = vmatpush3.msra.mxu1 %v6691_v16 }
 0x730   : > { %6623 = vmatpush1.msra.mxu0 %v7500_v2  ;;  %7919 = vmatprep.subr.mxu1 %v6706_v8 }
 0x731   : > { %6624 = vmatprep.subr.mxu0 %v7499_v5  ;;  %7920 = vmatpush3.msra.mxu1 %v6690_v52 }
 0x732   : > { %6625 = vmatpush1.msra.mxu0 %v7498_v10  ;;  %7921 = vmatprep.subr.mxu1 %v6705_v30  ;;  %v6676_v10 = vrot.slane %v6671_v59, %v13046_v3  ;;  %v6797_v3 = vld [vmem:[%s12981_s17 + $0x30] sm:$0xff] }
 0x733   : > { %6626 = vmatprep.subr.mxu0 %v7497_v1  ;;  %7922 = vmatpush3.msra.mxu1 %v6689_v6 }
 0x734   : > { %6627 = vmatpush1.msra.mxu0 %v7496_v42  ;;  %7923 = vmatprep.subr.mxu1 %v6704_v46 }
 0x735   : > { %6628 = vmatprep.subr.mxu0 %v7495_v43  ;;  %7924 = vmatpush3.msra.mxu1 %v6688_v48  ;;  %v6680_v43 = vrot.slane %v6671_v59, %v13045_v17  ;;  %v6796_v17 = vld [vmem:[%s12981_s17 + $0x28] sm:$0xff] }
 0x736   : > { %6629 = vmatpush1.msra.mxu0 %v7494_v13  ;;  %7925 = vmatprep.subr.mxu1 %v6703_v23 }
 0x737   : > { %6654 = vmatprep.subr.mxu0 %v7533_v9  ;;  %7926 = vmatpush3.msra.mxu1 %v6687_v60 }
 0x738   : > { %6655 = vmatpush2.msra.mxu0 %v7532_v26  ;;  %8127 = vmatprep.subr.mxu1 %v13042_v55 }
 0x739   : > { %6656 = vmatprep.subr.mxu0 %v7531_v33 }
 0x73a   : > { %6657 = vmatpush2.msra.mxu0 %v7530_v54 }
 0x73b   : > { %6658 = vmatprep.subr.mxu0 %v7529_v34 }
 0x73c   : > { %6659 = vmatpush2.msra.mxu0 %v7528_v47  ;;  %v6798_v47 = vld [vmem:[%s12981_s17 + $0x38] sm:$0xff] }
 0x73d   : > { %6660 = vmatprep.subr.mxu0 %v7527_v38  ;;  %v6795_v38 = vld [vmem:[%s12981_s17 + $0x20] sm:$0xff] }
 0x73e   : > { %6661 = vmatpush2.msra.mxu0 %v7526_v49  ;;  %v6794_v49 = vld [vmem:[%s12981_s17 + $0x18] sm:$0xff] }
 0x73f   : > { %6663 = vmatmul.mubr.f32.vlgmr.msra.gmra.mxu0 %v6593_v56  ;;  %v6793_v56 = vld [vmem:[%s12981_s17 + $0x10] sm:$0xff] }
 0x7ac   : > { %v6309_v0 = vpop.f32.mrf.mxu1 }
 0x7ae   : > { %v6311_v14 = vpop.f32.mrf.mxu1 }
 0x7af   : > { %v6236_v7 = vpop.f32.mrf.mxu0 }
 0x7b0   : > { %v6310_v29 = vadd.f32 %v6309_v0, %v6236_v7 }
 0x7b1   : > { %v6238_v63 = vpop.f32.mrf.mxu0 }
 0x7b2   : > { %v6312_v36 = vadd.f32 %v6311_v14, %v6238_v63 }
 0x7d5   : > { %v6545_v58 = vpop.f32.mrf.mxu1 }
 0x7d7   : > { %v6426_v4 = vpop.f32.mrf.mxu0  ;;  %v6547_v2 = vpop.f32.mrf.mxu1 }
 0x7d8   : > { %v6431_v50 = vadd.f32 %v6426_v4, %v6310_v29 }
 0x7d9   : > { %v6428_v18 = vpop.f32.mrf.mxu0 }
 0x7da   : > { %v6432_v41 = vadd.f32 %v6428_v18, %v6312_v36  ;;  %v6550_v20 = vadd.f32 %v6545_v58, %v6431_v50 }
 0x7dc   : > { %v6551_v42 = vadd.f32 %v6547_v2, %v6432_v41 }
 0x7ff   : > { %v6664_v5 = vpop.f32.mrf.mxu0 }
 0x800   : > { %v6669_v1 = vadd.f32 %v6664_v5, %v6550_v20 }
 0x801   : > { %v6666_v13 = vpop.f32.mrf.mxu0 }
 0x802   : > { %v6670_v9 = vadd.f32 %v6666_v13, %v6551_v42  ;;  %v6683_v26 = vadd.f32 %v6676_v10, %v6669_v1 }
 0x804   : > { %v6684_v33 = vadd.f32 %v6680_v43, %v6670_v9  ;;  %v6685_v34 = vmax.f32 %v6683_v26, 0.0 }
 0x806   : > { %v6686_v54 = vmax.f32 %v6684_v33, 0.0 }
 0x808   : > { %6784 = vmatprep.mubr.f32.mxu1 %v6686_v54 }
 0x809   : > { %6785 = vmatmul.mubr.f32.vlgmr.msra.gmra.mxu1 %v6685_v34 }
 0x80a   : > { %8128 = vmatpush3.msra.mxu1 %v6798_v47  ;;  %8143 = vmatprep.mubr.msk.f32.mxu1 %vm8254_vm3, %v13042_v55 }
 0x80b   : > { %8129 = vmatprep.subr.mxu1 %v13042_v55 }
 0x80c   : > { %8130 = vmatpush3.msra.mxu1 %v6797_v3 }
 0x80d   : > { %8131 = vmatprep.subr.mxu1 %v13042_v55 }
 0x80e   : > { %8132 = vmatpush3.msra.mxu1 %v6796_v17 }
 0x80f   : > { %8133 = vmatprep.subr.mxu1 %v13042_v55 }
 0x810   : > { %8134 = vmatpush3.msra.mxu1 %v6795_v38 }
 0x811   : > { %8135 = vmatprep.subr.mxu1 %v13042_v55 }
 0x812   : > { %8136 = vmatpush3.msra.mxu1 %v6794_v49 }
 0x813   : > { %8137 = vmatprep.subr.mxu1 %v13042_v55 }
 0x814   : > { %8138 = vmatpush3.msra.mxu1 %v6793_v56 }
 0x815   : > { %8139 = vmatprep.subr.mxu1 %v13042_v55 }
 0x816   : > { %8140 = vmatpush3.msra.mxu1 %v6792_v57 }
 0x817   : > { %8141 = vmatprep.subr.mxu1 %v13042_v55  ;;  %v6799_v55 = vld [vmem:[%s12982_s18] sm:$0x1] }
 0x818   : > { %8142 = vmatpush3.msra.mxu1 %v6791_v19 }
 0x8c9   : > { %v7927_v61 = vpop.f32.mrf.mxu1 }
 0x8cb   : > { %v7928_v39 = vpop.f32.mrf.mxu1 }
 0x8cc   : > { %v7929_v22 = vadd.f32 %v7928_v39, %v7927_v61 }
 0x8ce   : > { %v6787_v40 = vadd.f32 %v7929_v22, %v6719_v62 }
 0x8d0   : > { %v6790_v21 = vmax.f32 %v6787_v40, 0.0 }
 0x8d2   : > { %8144 = vmatmul.mubr.msk.f32.vlgmr.msra.gmra.mxu1 %vm2868_vm7, %v6790_v21 }
 0x992   : > { %v6869_v24 = vpop.f32.mrf.mxu1 }
 0x993   : > { %v6870_v32 = vadd.f32 %v6869_v24, %v6799_v55 }
 0x994   : > { %v8145_v45 = vpop.f32.mrf.mxu1 }
 0x995   : > { %v6874_v53 = vsel %vm6873_vm11, %v6870_v32, -inf }
 0x996   : > { %6875 = vmax.xlane.f32.xlu0 %v6874_v53 }
 0xa1f   : > { %v6876_v27 = vpop.xlane.xlu0 %6875 }
 0xa20   : > { %v6877_v25 = vsub.f32 %v6870_v32, %v6876_v27 }
 0xa22   : > { %v6878_v51 = vmul.f32 1.442695, %v6877_v25 }
 0xa24   : > { %8187 = vpow2.f32 %v6878_v51 }
 0xa31   : > { %v8188_v15 = vpop.eup %8187 }
 0xa32   : > { %v6880_v12 = vsel %vm6873_vm11, %v8188_v15, 0.0 }
 0xa33   : > { %6881 = vadd.xlane.f32.xlu0 %v6880_v12 }
 0xabc   : > { %v6882_v11 = vpop.xlane.xlu0 %6881 }
 0xabd   : > { %8189 = vrcp.f32 %v6882_v11 }
 0xaca   : > { %v8190_v37 = vpop.eup %8189 }
 0xacb   : > { %v6884_v44 = vmul.f32 %v8190_v37, %v8188_v15 }
 0xacd   : > { %6885 = vst.msk [vmem:[%s594_s27] sm:$0x1] %vm6873_vm11, %v6884_v44 }
 0xace   : > { %8204 = shalt.err (!%p8201_p3)
}
 0xacf   : > { %s8205_s25 = scalar_lea.hbm %s6897_s20, 16  ;;  %s8209_s27 = scalar_lea.hbm %s13048_s23, 32 }
 0xad0   : > { %p8206_p4 = scmp.ne.s32.totalorder %s6897_s20, %s8205_s25  ;;  %p8210_p9 = scmp.lt.s32.totalorder %s6897_s20, %s13048_s23 }
 0xad1   : > { %p8211_p10 = scmp.lt.s32.totalorder %s8209_s27, %s8205_s25 }
 0xad2   : > { %p8207_p7 = pnand %p8206_p4, %p8394_p5 }
 0xad3   : > { %p8212_p11 = por %p8211_p10, %p8210_p9 }
 0xad4   : > { %p8208_p8 = pneg %p8207_p7 }
 0xad6   : > { %p8213_p12 = pnand %p8212_p11, %p8208_p8 }
 0xad8   : > { %8216 = shalt.err (!%p8213_p12)
}
 0xad9   : > { %8146 = dma.vmem_to_hbm [thread:$0]  (%p8394_p5), %s6900_s28, 16, %s6897_s20, %s6887_s2  }
 0xada PF: > { %s13049_s4 = sld [smem:[#allocation7_spill]] }
 0xadb   : > { %s13050_s24 = sld [smem:[#allocation5_spill]] }
 0xae0   : > { %p8152_p13 = scmp.ge.s32.totalorder %s13049_s4, 2 }
 0xae1   : > { %s6911_s1 = sand.u32 1, %s13050_s24  }
 0xae2   : > { %p8149_p0 = pnand %p8152_p13, %p8398_p6  ;;  %s6912_s21 = scalar_lea.sflag [#allocation3], %s6911_s1 }
 0xae4   : > { %p8150_p1 = pneg %p8149_p0 }
 0xae6   : > { %8234 = dma.done.wait (%p8150_p1), %s6912_s21, 16  }
 0xae7   : > { %8236 = vsyncadd (%p8150_p1), %s6912_s21, 4294967280  ;;  %s13052_s21 = sld [smem:[#allocation8_spill]]  ;;  %s13055_s0 = smov %s8243_s30 }
 0xae8   : > { %s13053_s5 = sld [smem:[#allocation6_spill]] }
 0xae9   : > { %s13054_s20 = sld [smem:[#allocation9_spill]] }
 0xaed   : > { %p29_p2 = scmp.ge.s32.totalorder %s13052_s21, 4  }
 0xaee   : > { %s13056_s30 = smov %s13053_s5 }
 0xaef   :  { %31 = sbr.rel (!%p29_p2) target bundleno = 11 (0xb), region = 141 }
 0xaf4   :  { %6916 = vsyncpa [#allocation3], 1 }
 0xaf5   :  { %6918 = vsyncpa [#allocation3 + $0x1], 1 }

</bundles_post_ra>
